<compile_context>
chip_gen: v5e
topology: v5e:2x2
jax: 0.10.0
libtpu: 0.0.40
codegen_flags: <defaults>
</compile_context>

<pallas_src>
import jax
import jax.numpy as jnp
from jax.experimental import pallas as pl
from jax.experimental.pallas import tpu as pltpu

EMBED_DIM = 32
LAYER_NUM = 2
LN_EPS = 1e-5     # nn.LayerNorm default
GN_EPS = 1e-5     # pyg GraphNorm default
JK_CAT = True     # model_config['JK'] == 'True'  -> JumpingKnowledge('cat')
# TODO(synk): nn.Dropout is stochastic; with dropout_rate=0.0 it is an exact identity.
# TODO(synk): the BatchNorm1d modules are constructed but never used in the torch
#             forward, so they are intentionally absent here.


# --------------------------------------------------------------------------
# Fused Pallas kernel: both layers + angle MLPs + norms + JK-cat + mean pool
# --------------------------------------------------------------------------
def encoder_kernel(a_src_ref, a_dst_ref, b_src_ref, b_dst_ref, batch_ref,
                   x0_ref, ehid0_ref, ceattr_ref, angle_ref, inv_cnt_ref,
                   a_we_ref, a_w1_ref, a_w2_ref,
                   b_we_ref, b_w1_ref, b_w2_ref,
                   ang_w2_ref, small_ref,
                   out_ref,
                   x_sc, e_sc, cattr_sc, agg_n, agg_e, msg_a, msg_b, feat_sc):
    D = EMBED_DIM
    N = x0_ref.shape[0]
    Ea = ehid0_ref.shape[0]
    Eb = angle_ref.shape[0]

    # carried state + JK slab column block 0 (hidden[0] = initial atom embedding)
    x_sc[...] = x0_ref[...]
    e_sc[...] = ehid0_ref[...]
    feat_sc[:, 0:D] = x0_ref[...]

    def edge_pass(n_edges, src_ref, dst_ref, nodes_ref, proj_ref, acc_ref):
        """acc[dst[e]] += relu(nodes[src[e]] + proj[e])  (GINE message + sum-agg)."""
        def body(e, carry):
            s = src_ref[e]                                         # SMEM scalar read
            d = dst_ref[e]
            m = jnp.maximum(nodes_ref[pl.ds(s, 1), :] + proj_ref[pl.ds(e, 1), :], 0.0)
            acc_ref[pl.ds(d, 1), :] = acc_ref[pl.ds(d, 1), :] + m
            return carry
        jax.lax.fori_loop(0, n_edges, body, 0)

    def gine_nn_and_norms(z, w1, b1, w2, b2, ln_g, ln_b, gn_w, gn_b, gn_ms,
                          apply_relu, residual):
        # GINE MLP: Linear(D, 2D) -> ReLU -> Linear(2D, D)
        z = jnp.maximum(jnp.dot(z, w1, preferred_element_type=jnp.float32) + b1, 0.0)
        z = jnp.dot(z, w2, preferred_element_type=jnp.float32) + b2
        # LayerNorm over the feature dim
        mu = jnp.mean(z, axis=-1, keepdims=True)
        var = jnp.mean((z - mu) ** 2, axis=-1, keepdims=True)
        z = (z - mu) * jax.lax.rsqrt(var + LN_EPS) * ln_g + ln_b
        # GraphNorm, batch=None -> single group: plain column stats
        m = jnp.mean(z, axis=0, keepdims=True)
        c = z - m * gn_ms
        v = jnp.mean(c * c, axis=0, keepdims=True)
        z = gn_w * (c * jax.lax.rsqrt(v + GN_EPS)) + gn_b
        # last-layer ReLU; Dropout(p=0) = identity; residual add
        if apply_relu:
            z = jnp.maximum(z, 0.0)
        return z + residual

    for l in range(LAYER_NUM):
        last = (l == LAYER_NUM - 1)
        small = small_ref[l]                                       # [16, 2D] packed

        def unpack(base, small=small):
            b1 = small[base:base + 1, :]
            be = small[base + 1:base + 2, :D]
            b2 = small[base + 1:base + 2, D:]
            ln_g = small[base + 2:base + 3, :D]
            ln_b = small[base + 2:base + 3, D:]
            gn_w = small[base + 3:base + 4, :D]
            gn_b = small[base + 3:base + 4, D:]
            gn_ms = small[base + 4:base + 5, :D]
            return be, b1, b2, ln_g, ln_b, gn_w, gn_b, gn_ms

        # -------------------- atom-graph GINEConv block --------------------
        a_be, a_b1, a_b2, a_ln_g, a_ln_b, a_gn_w, a_gn_b, a_gn_ms = unpack(0)
        x_prev = x_sc[...]
        # GINEConv edge projection Linear(edge_dim, D) on hidden_edge[l]
        msg_a[...] = (jnp.dot(e_sc[...], a_we_ref[l],
                              preferred_element_type=jnp.float32) + a_be)
        agg_n[...] = x_prev                          # (1 + eps) * x with eps = 0
        edge_pass(Ea, a_src_ref, a_dst_ref, x_sc, msg_a, agg_n)
        x_new = gine_nn_and_norms(agg_n[...], a_w1_ref[l], a_b1, a_w2_ref[l], a_b2,
                                  a_ln_g, a_ln_b, a_gn_w, a_gn_b, a_gn_ms,
                                  apply_relu=last, residual=x_prev)

        # ---------- bond-angle MLP: Linear(1,D) -> ReLU -> Linear(D,D) ----------
        ang_w1 = small[10:11, :D]
        ang_b1 = small[10:11, D:]
        ang_b2 = small[11:12, :D]
        ang_h = jnp.maximum(angle_ref[...] * ang_w1 + ang_b1, 0.0)        # [Eb, D]
        cur_angle = (jnp.dot(ang_h, ang_w2_ref[l],
                             preferred_element_type=jnp.float32) + ang_b2)

        # ------------------ bond (line-graph) GINEConv block ------------------
        b_be, b_b1, b_b2, b_ln_g, b_ln_b, b_gn_w, b_gn_b, b_gn_ms = unpack(5)
        e_prev = e_sc[...]
        cattr_sc[...] = ceattr_ref[l]                # fresh per-layer bond embedding
        msg_b[...] = (jnp.dot(cur_angle, b_we_ref[l],
                              preferred_element_type=jnp.float32) + b_be)
        agg_e[...] = cattr_sc[...]
        edge_pass(Eb, b_src_ref, b_dst_ref, cattr_sc, msg_b, agg_e)
        e_new = gine_nn_and_norms(agg_e[...], b_w1_ref[l], b_b1, b_w2_ref[l], b_b2,
                                  b_ln_g, b_ln_b, b_gn_w, b_gn_b, b_gn_ms,
                                  apply_relu=last, residual=e_prev)

        # commit carried state + lane-contiguous JK slab column block
        x_sc[...] = x_new
        e_sc[...] = e_new
        feat_sc[:, (l + 1) * D:(l + 2) * D] = x_new

    # ---------------- JK('cat') + global_mean_pool readout ----------------
    out_ref[...] = jnp.zeros_like(out_ref)

    def pool_body(n, carry):
        g = batch_ref[n]
        out_ref[pl.ds(g, 1), :] = out_ref[pl.ds(g, 1), :] + feat_sc[pl.ds(n, 1), :]
        return carry
    jax.lax.fori_loop(0, N, pool_body, 0)
    out_ref[...] = out_ref[...] * inv_cnt_ref[...]


# --------------------------------------------------------------------------
# Plain-JAX glue: embeddings, parameter setup, forward orchestration
# --------------------------------------------------------------------------
def embed_sum(tables, idx):
    """atom/bond embedding net: sum of per-feature-column embedding lookups."""
    out = jnp.zeros((idx.shape[0], EMBED_DIM), jnp.float32)
    for f, tab in enumerate(tables):
        out = out + jnp.take(tab, idx[:, f], axis=0)
    return out


def _lin(key, fan_in, fan_out):
    kw, kb = jax.random.split(key)
    bound = 1.0 / jnp.sqrt(jnp.float32(fan_in))
    w = jax.random.uniform(kw, (fan_in, fan_out), jnp.float32, -bound, bound)
    b = jax.random.uniform(kb, (1, fan_out), jnp.float32, -bound, bound)
    return w, b


def _pack_small(atom, bond, angle):
    """Pack all tiny per-layer vectors into one [16, 2D] f32 array.

    rows 0-4  : atom  block [b1 | be,b2 | ln_g,ln_b | gn_w,gn_b | gn_ms,0]
    rows 5-9  : bond  block (same layout)
    rows 10-11: angle MLP  [w1_row,b1 | b2,0]
    rows 12-15: zero padding (sublane alignment)
    """
    D = EMBED_DIM
    zero = jnp.zeros((D,), jnp.float32)

    def block_rows(p):
        return jnp.stack([
            p['b1'][0],
            jnp.concatenate([p['be'][0], p['b2'][0]]),
            jnp.concatenate([p['ln_g'][0], p['ln_b'][0]]),
            jnp.concatenate([p['gn_w'][0], p['gn_b'][0]]),
            jnp.concatenate([p['gn_ms'][0], zero]),
        ])

    ang_rows = jnp.stack([
        jnp.concatenate([angle['w1_row'][0], angle['b1'][0]]),
        jnp.concatenate([angle['b2'][0], zero]),
    ])
    packed = jnp.concatenate([block_rows(atom), block_rows(bond), ang_rows], axis=0)
    pad = jnp.zeros((16 - packed.shape[0], 2 * D), jnp.float32)
    return jnp.concatenate([packed, pad], axis=0)


def init_params(key, n_atom_feat, n_bond_feat, atom_vocab, bond_vocab):
    D = EMBED_DIM
    keys = iter(jax.random.split(key, 256))

    def emb_tables(n_feat, vocab):
        return [jax.random.normal(next(keys), (vocab, D), jnp.float32) * 0.1
                for _ in range(n_feat)]

    def gine_raw():
        we, be = _lin(next(keys), D, D)          # GINEConv edge Linear(edge_dim, D)
        w1, b1 = _lin(next(keys), D, 2 * D)      # nn: Linear(D, 2D)
        w2, b2 = _lin(next(keys), 2 * D, D)      # nn: Linear(2D, D)
        return dict(we=we, be=be, w1=w1, b1=b1, w2=w2, b2=b2,
                    ln_g=jnp.ones((1, D), jnp.float32),
                    ln_b=jnp.zeros((1, D), jnp.float32),
                    gn_w=jnp.ones((1, D), jnp.float32),
                    gn_b=jnp.zeros((1, D), jnp.float32),
                    gn_ms=jnp.ones((1, D), jnp.float32))

    layers = []
    for _ in range(LAYER_NUM):
        atom = gine_raw()
        bond = gine_raw()
        aw1, ab1 = _lin(next(keys), 1, D)        # bond_angle_embed_nn Linear(1, D)
        aw2, ab2 = _lin(next(keys), D, D)        # bond_angle_embed_nn Linear(D, D)
        layers.append(dict(
            a_we=atom['we'], a_w1=atom['w1'], a_w2=atom['w2'],
            b_we=bond['we'], b_w1=bond['w1'], b_w2=bond['w2'],
            ang_w2=aw2,
            small=_pack_small(atom, bond, dict(w1_row=aw1, b1=ab1, b2=ab2)),
            bond_embed=emb_tables(n_bond_feat, bond_vocab),
        ))
    return dict(
        atom_init=emb_tables(n_atom_feat, atom_vocab),
        bond_init=emb_tables(n_bond_feat, bond_vocab),
        layers=layers,
    )


def drug_3d_encoder_forward(params, drug_atom, drug_bond, num_graphs):
    D = EMBED_DIM
    N = drug_atom['x'].shape[0]
    Ea = drug_atom['edge_index'].shape[1]
    Eb = drug_bond['edge_index'].shape[1]
    out_dim = D * (LAYER_NUM + 1) if JK_CAT else D

    # --- integer embedding lookups stay in plain-JAX glue (XLA gathers) ---
    x0 = embed_sum(params['atom_init'], drug_atom['x'])                        # [N, D]
    ehid0 = embed_sum(params['bond_init'], drug_atom['edge_attr'])             # [Ea, D]
    ceattr = jnp.stack([embed_sum(lp['bond_embed'], drug_atom['edge_attr'])
                        for lp in params['layers']])                           # [L, Ea, D]

    # --- stacked per-layer dense weights & packed small params ---
    stack = lambda name: jnp.stack([lp[name] for lp in params['layers']])
    a_we, a_w1, a_w2 = stack('a_we'), stack('a_w1'), stack('a_w2')
    b_we, b_w1, b_w2 = stack('b_we'), stack('b_w1'), stack('b_w2')
    ang_w2, small = stack('ang_w2'), stack('small')

    # --- graph structure as int32 index vectors (SMEM residents, no one-hots) ---
    a_src = drug_atom['edge_index'][0].astype(jnp.int32)
    a_dst = drug_atom['edge_index'][1].astype(jnp.int32)
    b_src = drug_bond['edge_index'][0].astype(jnp.int32)
    b_dst = drug_bond['edge_index'][1].astype(jnp.int32)
    batch = drug_atom['batch'].astype(jnp.int32)

    cnt = jnp.zeros((num_graphs,), jnp.float32).at[batch].add(1.0)
    inv_cnt = (1.0 / jnp.maximum(cnt, 1.0))[:, None]                            # [G, 1]
    angle = drug_bond['edge_attr'].astype(jnp.float32)                          # [Eb, 1]

    args = (a_src, a_dst, b_src, b_dst, batch,
            x0, ehid0, ceattr, angle, inv_cnt,
            a_we, a_w1, a_w2, b_we, b_w1, b_w2, ang_w2, small)

    smem = pl.BlockSpec(memory_space=pltpu.MemorySpace.SMEM)
    vmem = pl.BlockSpec(memory_space=pltpu.MemorySpace.VMEM)
    in_specs = [smem] * 5 + [vmem] * 13

    # advisory cost estimate for the XLA scheduler
    flops = 0
    for _ in range(LAYER_NUM):
        flops += 2 * Ea * D * D                            # atom edge Linear
        flops += 2 * N * D * 2 * D + 2 * N * 2 * D * D     # atom GINE MLP
        flops += 2 * Eb * D * D                            # angle Linear(D, D)
        flops += 2 * Eb * D * D                            # bond edge Linear
        flops += 2 * Ea * D * 2 * D + 2 * Ea * 2 * D * D   # bond GINE MLP
    bytes_accessed = int(sum(int(a.size) * a.dtype.itemsize for a in args)
                         + num_graphs * out_dim * 4)

    return pl.pallas_call(
        encoder_kernel,
        out_shape=jax.ShapeDtypeStruct((num_graphs, out_dim), jnp.float32),
        in_specs=in_specs,
        out_specs=vmem,
        scratch_shapes=[
            pltpu.VMEM((N, D), jnp.float32),        # x_sc (carried node state)
            pltpu.VMEM((Ea, D), jnp.float32),       # e_sc (carried edge state)
            pltpu.VMEM((Ea, D), jnp.float32),       # cattr_sc
            pltpu.VMEM((N, D), jnp.float32),        # agg_n
            pltpu.VMEM((Ea, D), jnp.float32),       # agg_e
            pltpu.VMEM((Ea, D), jnp.float32),       # msg_a (edge projections)
            pltpu.VMEM((Eb, D), jnp.float32),       # msg_b (angle projections)
            pltpu.VMEM((N, out_dim), jnp.float32),  # feat_sc (lane-dense JK slab)
        ],
        compiler_params=pltpu.CompilerParams(vmem_limit_bytes=32 * 1024 * 1024),
        cost_estimate=pl.CostEstimate(flops=flops, transcendentals=0,
                                      bytes_accessed=bytes_accessed),
    )(*args)


# --------------------------------------------------------------------------
# Example run
# --------------------------------------------------------------------------
if __name__ == "__main__":
    key = jax.random.PRNGKey(0)
    k_param, k_x, k_ea, k_ei, k_bi, k_ang = jax.random.split(key, 6)

    # small synthetic molecule batch: 2 graphs, 16 atoms, 32 bonds, 48 bond angles
    N, Ea, Eb, G = 16, 32, 48, 2
    N_ATOM_FEAT, N_BOND_FEAT = 4, 3
    ATOM_VOCAB, BOND_VOCAB = 16, 8

    drug_atom = dict(
        x=jax.random.randint(k_x, (N, N_ATOM_FEAT), 0, ATOM_VOCAB, jnp.int32),
        edge_index=jax.random.randint(k_ei, (2, Ea), 0, N, jnp.int32),
        edge_attr=jax.random.randint(k_ea, (Ea, N_BOND_FEAT), 0, BOND_VOCAB, jnp.int32),
        batch=jnp.concatenate([jnp.zeros(N // 2, jnp.int32),
                               jnp.ones(N - N // 2, jnp.int32)]),
    )
    drug_bond = dict(
        edge_index=jax.random.randint(k_bi, (2, Eb), 0, Ea, jnp.int32),
        edge_attr=jax.random.uniform(k_ang, (Eb, 1), jnp.float32, 0.0, 3.14159),
    )

    params = init_params(k_param, N_ATOM_FEAT, N_BOND_FEAT, ATOM_VOCAB, BOND_VOCAB)

    graph_repr = drug_3d_encoder_forward(params, drug_atom, drug_bond, num_graphs=G)
    graph_repr = jax.block_until_ready(graph_repr)

    expected = (G, EMBED_DIM * (LAYER_NUM + 1)) if JK_CAT else (G, EMBED_DIM)
    assert graph_repr.shape == expected, graph_repr.shape
    assert jnp.all(jnp.isfinite(graph_repr))
    print("KERNEL_OK")
</pallas_src>

<mosaic_0001>
module attributes {stable_mosaic.version = 11 : i64} {
  func.func @encoder_kernel(%arg0: memref<32xi32, #tpu.memory_space<smem>>, %arg1: memref<32xi32, #tpu.memory_space<smem>>, %arg2: memref<48xi32, #tpu.memory_space<smem>>, %arg3: memref<48xi32, #tpu.memory_space<smem>>, %arg4: memref<16xi32, #tpu.memory_space<smem>>, %arg5: memref<16x32xf32, #tpu.memory_space<vmem>>, %arg6: memref<32x32xf32, #tpu.memory_space<vmem>>, %arg7: memref<2x32x32xf32, #tpu.memory_space<vmem>>, %arg8: memref<48x1xf32, #tpu.memory_space<vmem>>, %arg9: memref<2x1xf32, #tpu.memory_space<vmem>>, %arg10: memref<2x32x32xf32, #tpu.memory_space<vmem>>, %arg11: memref<2x32x64xf32, #tpu.memory_space<vmem>>, %arg12: memref<2x64x32xf32, #tpu.memory_space<vmem>>, %arg13: memref<2x32x32xf32, #tpu.memory_space<vmem>>, %arg14: memref<2x32x64xf32, #tpu.memory_space<vmem>>, %arg15: memref<2x64x32xf32, #tpu.memory_space<vmem>>, %arg16: memref<2x32x32xf32, #tpu.memory_space<vmem>>, %arg17: memref<2x16x64xf32, #tpu.memory_space<vmem>>, %arg18: memref<2x96xf32, #tpu.memory_space<vmem>>, %arg19: memref<16x32xf32, #tpu.memory_space<vmem>>, %arg20: memref<32x32xf32, #tpu.memory_space<vmem>>, %arg21: memref<32x32xf32, #tpu.memory_space<vmem>>, %arg22: memref<16x32xf32, #tpu.memory_space<vmem>>, %arg23: memref<32x32xf32, #tpu.memory_space<vmem>>, %arg24: memref<32x32xf32, #tpu.memory_space<vmem>>, %arg25: memref<48x32xf32, #tpu.memory_space<vmem>>, %arg26: memref<16x96xf32, #tpu.memory_space<vmem>>) attributes {dimension_semantics = [], scalar_prefetch = 0 : i64, scratch_operands = 8 : i64, tpu.core_type = #tpu.core_type<tc>} {
    %c0 = arith.constant 0 : index
    %c0_0 = arith.constant 0 : index
    %0 = vector.load %arg5[%c0, %c0_0] : memref<16x32xf32, #tpu.memory_space<vmem>>, vector<16x32xf32>
    %c0_1 = arith.constant 0 : index
    %c0_2 = arith.constant 0 : index
    %1 = vector.load %arg19[%c0_1, %c0_2] : memref<16x32xf32, #tpu.memory_space<vmem>>, vector<16x32xf32>
    tpu.vector_store %arg19[%c0_1, %c0_2], %0 {strides = array<i32>} : memref<16x32xf32, #tpu.memory_space<vmem>>, vector<16x32xf32>,
    %c0_3 = arith.constant 0 : index
    %c0_4 = arith.constant 0 : index
    %2 = vector.load %arg6[%c0_3, %c0_4] : memref<32x32xf32, #tpu.memory_space<vmem>>, vector<32x32xf32>
    %c0_5 = arith.constant 0 : index
    %c0_6 = arith.constant 0 : index
    %3 = vector.load %arg20[%c0_5, %c0_6] : memref<32x32xf32, #tpu.memory_space<vmem>>, vector<32x32xf32>
    tpu.vector_store %arg20[%c0_5, %c0_6], %2 {strides = array<i32>} : memref<32x32xf32, #tpu.memory_space<vmem>>, vector<32x32xf32>,
    %c0_7 = arith.constant 0 : index
    %c0_8 = arith.constant 0 : index
    %4 = vector.load %arg5[%c0_7, %c0_8] : memref<16x32xf32, #tpu.memory_space<vmem>>, vector<16x32xf32>
    %c0_9 = arith.constant 0 : index
    %c0_10 = arith.constant 0 : index
    %5 = vector.load %arg26[%c0_9, %c0_10] : memref<16x96xf32, #tpu.memory_space<vmem>>, vector<16x32xf32>
    tpu.vector_store %arg26[%c0_9, %c0_10], %4 {strides = array<i32>} : memref<16x96xf32, #tpu.memory_space<vmem>>, vector<16x32xf32>,
    %c0_11 = arith.constant 0 : index
    %c0_12 = arith.constant 0 : index
    %c0_13 = arith.constant 0 : index
    %6 = vector.load %arg17[%c0_11, %c0_12, %c0_13] : memref<2x16x64xf32, #tpu.memory_space<vmem>>, vector<1x16x64xf32>
    %7 = vector.shape_cast %6 : vector<1x16x64xf32> to vector<16x64xf32>
    %8 = vector.extract_strided_slice %7 {offsets = [0, 0], sizes = [1, 64], strides = [1, 1]} : vector<16x64xf32> to vector<1x64xf32>
    %9 = vector.extract_strided_slice %7 {offsets = [1, 0], sizes = [1, 32], strides = [1, 1]} : vector<16x64xf32> to vector<1x32xf32>
    %10 = vector.extract_strided_slice %7 {offsets = [1, 32], sizes = [1, 32], strides = [1, 1]} : vector<16x64xf32> to vector<1x32xf32>
    %11 = vector.extract_strided_slice %7 {offsets = [2, 0], sizes = [1, 32], strides = [1, 1]} : vector<16x64xf32> to vector<1x32xf32>
    %12 = vector.extract_strided_slice %7 {offsets = [2, 32], sizes = [1, 32], strides = [1, 1]} : vector<16x64xf32> to vector<1x32xf32>
    %13 = vector.extract_strided_slice %7 {offsets = [3, 0], sizes = [1, 32], strides = [1, 1]} : vector<16x64xf32> to vector<1x32xf32>
    %14 = vector.extract_strided_slice %7 {offsets = [3, 32], sizes = [1, 32], strides = [1, 1]} : vector<16x64xf32> to vector<1x32xf32>
    %15 = vector.extract_strided_slice %7 {offsets = [4, 0], sizes = [1, 32], strides = [1, 1]} : vector<16x64xf32> to vector<1x32xf32>
    %c0_14 = arith.constant 0 : index
    %c0_15 = arith.constant 0 : index
    %16 = vector.load %arg19[%c0_14, %c0_15] : memref<16x32xf32, #tpu.memory_space<vmem>>, vector<16x32xf32>
    %c0_16 = arith.constant 0 : index
    %c0_17 = arith.constant 0 : index
    %17 = vector.load %arg20[%c0_16, %c0_17] : memref<32x32xf32, #tpu.memory_space<vmem>>, vector<32x32xf32>
    %c0_18 = arith.constant 0 : index
    %c0_19 = arith.constant 0 : index
    %c0_20 = arith.constant 0 : index
    %18 = vector.load %arg10[%c0_18, %c0_19, %c0_20] : memref<2x32x32xf32, #tpu.memory_space<vmem>>, vector<1x32x32xf32>
    %19 = vector.shape_cast %18 : vector<1x32x32xf32> to vector<32x32xf32>
    %cst = arith.constant dense<0.000000e+00> : vector<32x32xf32>
    %20 = tpu.matmul %17, %19, %cst {dimension_numbers = #tpu.dot_dimension_numbers<[1], [0], [0], [1], [0, 0, 1, 1], [], []>} : vector<32x32xf32>, vector<32x32xf32>, vector<32x32xf32> -> vector<32x32xf32>
    %21 = vector.broadcast %9 : vector<1x32xf32> to vector<32x32xf32>
    %22 = arith.addf %20, %21 : vector<32x32xf32>
    %c0_21 = arith.constant 0 : index
    %c0_22 = arith.constant 0 : index
    %23 = vector.load %arg24[%c0_21, %c0_22] : memref<32x32xf32, #tpu.memory_space<vmem>>, vector<32x32xf32>
    tpu.vector_store %arg24[%c0_21, %c0_22], %22 {strides = array<i32>} : memref<32x32xf32, #tpu.memory_space<vmem>>, vector<32x32xf32>,
    %c0_23 = arith.constant 0 : index
    %c0_24 = arith.constant 0 : index
    %24 = vector.load %arg22[%c0_23, %c0_24] : memref<16x32xf32, #tpu.memory_space<vmem>>, vector<16x32xf32>
    tpu.vector_store %arg22[%c0_23, %c0_24], %16 {strides = array<i32>} : memref<16x32xf32, #tpu.memory_space<vmem>>, vector<16x32xf32>,
    %c0_i32 = arith.constant 0 : i32
    %c32_i32 = arith.constant 32 : i32
    %25 = arith.addi %c0_i32, %c32_i32 : i32
    %c1_i32 = arith.constant 1 : i32
    scf.for %arg27 = %c0_i32 to %25 step %c1_i32  : i32 {
      %366 = arith.index_cast %arg27 : i32 to index
      %367 = memref.load %arg0[%366] : memref<32xi32, #tpu.memory_space<smem>>
      %368 = arith.index_cast %arg27 : i32 to index
      %369 = memref.load %arg1[%368] : memref<32xi32, #tpu.memory_space<smem>>
      %370 = arith.index_cast %367 : i32 to index
      %c0_207 = arith.constant 0 : index
      %371 = vector.load %arg19[%370, %c0_207] : memref<16x32xf32, #tpu.memory_space<vmem>>, vector<1x32xf32>
      %372 = arith.index_cast %arg27 : i32 to index
      %c0_208 = arith.constant 0 : index
      %373 = vector.load %arg24[%372, %c0_208] : memref<32x32xf32, #tpu.memory_space<vmem>>, vector<1x32xf32>
      %374 = arith.addf %371, %373 : vector<1x32xf32>
      %cst_209 = arith.constant 0.000000e+00 : f32
      %375 = vector.broadcast %cst_209 : f32 to vector<1x32xf32>
      %376 = arith.maximumf %374, %375 : vector<1x32xf32>
      %377 = arith.index_cast %369 : i32 to index
      %c0_210 = arith.constant 0 : index
      %378 = vector.load %arg22[%377, %c0_210] : memref<16x32xf32, #tpu.memory_space<vmem>>, vector<1x32xf32>
      %379 = arith.addf %378, %376 : vector<1x32xf32>
      %380 = arith.index_cast %369 : i32 to index
      %c0_211 = arith.constant 0 : index
      %381 = vector.load %arg22[%380, %c0_211] : memref<16x32xf32, #tpu.memory_space<vmem>>, vector<1x32xf32>
      tpu.vector_store %arg22[%380, %c0_211], %379 {strides = array<i32>} : memref<16x32xf32, #tpu.memory_space<vmem>>, vector<1x32xf32>,
    }
    %c32_i32_25 = arith.constant 32 : i32
    %c0_26 = arith.constant 0 : index
    %c0_27 = arith.constant 0 : index
    %26 = vector.load %arg22[%c0_26, %c0_27] : memref<16x32xf32, #tpu.memory_space<vmem>>, vector<16x32xf32>
    %c0_28 = arith.constant 0 : index
    %c0_29 = arith.constant 0 : index
    %c0_30 = arith.constant 0 : index
    %27 = vector.load %arg11[%c0_28, %c0_29, %c0_30] : memref<2x32x64xf32, #tpu.memory_space<vmem>>, vector<1x32x64xf32>
    %28 = vector.shape_cast %27 : vector<1x32x64xf32> to vector<32x64xf32>
    %c0_31 = arith.constant 0 : index
    %c0_32 = arith.constant 0 : index
    %c0_33 = arith.constant 0 : index
    %29 = vector.load %arg12[%c0_31, %c0_32, %c0_33] : memref<2x64x32xf32, #tpu.memory_space<vmem>>, vector<1x64x32xf32>
    %30 = vector.shape_cast %29 : vector<1x64x32xf32> to vector<64x32xf32>
    %cst_34 = arith.constant dense<0.000000e+00> : vector<16x64xf32>
    %31 = tpu.matmul %26, %28, %cst_34 {dimension_numbers = #tpu.dot_dimension_numbers<[1], [0], [0], [1], [0, 0, 1, 1], [], []>} : vector<16x32xf32>, vector<32x64xf32>, vector<16x64xf32> -> vector<16x64xf32>
    %32 = vector.broadcast %8 : vector<1x64xf32> to vector<16x64xf32>
    %33 = arith.addf %31, %32 : vector<16x64xf32>
    %cst_35 = arith.constant 0.000000e+00 : f32
    %34 = vector.broadcast %cst_35 : f32 to vector<16x64xf32>
    %35 = arith.maximumf %33, %34 : vector<16x64xf32>
    %cst_36 = arith.constant dense<0.000000e+00> : vector<16x32xf32>
    %36 = tpu.matmul %35, %30, %cst_36 {dimension_numbers = #tpu.dot_dimension_numbers<[1], [0], [0], [1], [0, 0, 1, 1], [], []>} : vector<16x64xf32>, vector<64x32xf32>, vector<16x32xf32> -> vector<16x32xf32>
    %37 = vector.broadcast %10 : vector<1x32xf32> to vector<16x32xf32>
    %38 = arith.addf %36, %37 : vector<16x32xf32>
    %cst_37 = arith.constant dense<0.000000e+00> : vector<16xf32>
    %39 = vector.multi_reduction <add>, %38, %cst_37 [1] : vector<16x32xf32> to vector<16xf32>
    %40 = vector.shape_cast %39 : vector<16xf32> to vector<16x1xf32>
    %cst_38 = arith.constant 3.200000e+01 : f32
    %41 = vector.broadcast %cst_38 : f32 to vector<16x1xf32>
    %42 = arith.divf %40, %41 : vector<16x1xf32>
    %43 = vector.broadcast %42 : vector<16x1xf32> to vector<16x32xf32>
    %44 = arith.subf %38, %43 : vector<16x32xf32>
    %45 = arith.mulf %44, %44 : vector<16x32xf32>
    %cst_39 = arith.constant dense<0.000000e+00> : vector<16xf32>
    %46 = vector.multi_reduction <add>, %45, %cst_39 [1] : vector<16x32xf32> to vector<16xf32>
    %47 = vector.shape_cast %46 : vector<16xf32> to vector<16x1xf32>
    %cst_40 = arith.constant 3.200000e+01 : f32
    %48 = vector.broadcast %cst_40 : f32 to vector<16x1xf32>
    %49 = arith.divf %47, %48 : vector<16x1xf32>
    %50 = vector.broadcast %42 : vector<16x1xf32> to vector<16x32xf32>
    %51 = arith.subf %38, %50 : vector<16x32xf32>
    %cst_41 = arith.constant 9.99999974E-6 : f32
    %52 = vector.broadcast %cst_41 : f32 to vector<16x1xf32>
    %53 = arith.addf %49, %52 : vector<16x1xf32>
    %54 = math.rsqrt %53 : vector<16x1xf32>
    %55 = vector.broadcast %54 : vector<16x1xf32> to vector<16x32xf32>
    %56 = arith.mulf %51, %55 : vector<16x32xf32>
    %57 = vector.broadcast %11 : vector<1x32xf32> to vector<16x32xf32>
    %58 = arith.mulf %56, %57 : vector<16x32xf32>
    %59 = vector.broadcast %12 : vector<1x32xf32> to vector<16x32xf32>
    %60 = arith.addf %58, %59 : vector<16x32xf32>
    %cst_42 = arith.constant dense<0.000000e+00> : vector<32xf32>
    %61 = vector.multi_reduction <add>, %60, %cst_42 [0] : vector<16x32xf32> to vector<32xf32>
    %62 = vector.shape_cast %61 : vector<32xf32> to vector<1x32xf32>
    %cst_43 = arith.constant 1.600000e+01 : f32
    %63 = vector.broadcast %cst_43 : f32 to vector<1x32xf32>
    %64 = arith.divf %62, %63 : vector<1x32xf32>
    %65 = arith.mulf %64, %15 : vector<1x32xf32>
    %66 = vector.broadcast %65 : vector<1x32xf32> to vector<16x32xf32>
    %67 = arith.subf %60, %66 : vector<16x32xf32>
    %68 = arith.mulf %67, %67 : vector<16x32xf32>
    %cst_44 = arith.constant dense<0.000000e+00> : vector<32xf32>
    %69 = vector.multi_reduction <add>, %68, %cst_44 [0] : vector<16x32xf32> to vector<32xf32>
    %70 = vector.shape_cast %69 : vector<32xf32> to vector<1x32xf32>
    %cst_45 = arith.constant 1.600000e+01 : f32
    %71 = vector.broadcast %cst_45 : f32 to vector<1x32xf32>
    %72 = arith.divf %70, %71 : vector<1x32xf32>
    %cst_46 = arith.constant 9.99999974E-6 : f32
    %73 = vector.broadcast %cst_46 : f32 to vector<1x32xf32>
    %74 = arith.addf %72, %73 : vector<1x32xf32>
    %75 = math.rsqrt %74 : vector<1x32xf32>
    %76 = vector.broadcast %75 : vector<1x32xf32> to vector<16x32xf32>
    %77 = arith.mulf %67, %76 : vector<16x32xf32>
    %78 = vector.broadcast %13 : vector<1x32xf32> to vector<16x32xf32>
    %79 = arith.mulf %78, %77 : vector<16x32xf32>
    %80 = vector.broadcast %14 : vector<1x32xf32> to vector<16x32xf32>
    %81 = arith.addf %79, %80 : vector<16x32xf32>
    %82 = arith.addf %81, %16 : vector<16x32xf32>
    %83 = vector.extract_strided_slice %7 {offsets = [10, 0], sizes = [1, 32], strides = [1, 1]} : vector<16x64xf32> to vector<1x32xf32>
    %84 = vector.extract_strided_slice %7 {offsets = [10, 32], sizes = [1, 32], strides = [1, 1]} : vector<16x64xf32> to vector<1x32xf32>
    %85 = vector.extract_strided_slice %7 {offsets = [11, 0], sizes = [1, 32], strides = [1, 1]} : vector<16x64xf32> to vector<1x32xf32>
    %c0_47 = arith.constant 0 : index
    %c0_48 = arith.constant 0 : index
    %86 = vector.load %arg8[%c0_47, %c0_48] : memref<48x1xf32, #tpu.memory_space<vmem>>, vector<48x1xf32>
    %87 = vector.broadcast %86 : vector<48x1xf32> to vector<48x32xf32>
    %88 = vector.broadcast %83 : vector<1x32xf32> to vector<48x32xf32>
    %89 = arith.mulf %87, %88 : vector<48x32xf32>
    %90 = vector.broadcast %84 : vector<1x32xf32> to vector<48x32xf32>
    %91 = arith.addf %89, %90 : vector<48x32xf32>
    %cst_49 = arith.constant 0.000000e+00 : f32
    %92 = vector.broadcast %cst_49 : f32 to vector<48x32xf32>
    %93 = arith.maximumf %91, %92 : vector<48x32xf32>
    %c0_50 = arith.constant 0 : index
    %c0_51 = arith.constant 0 : index
    %c0_52 = arith.constant 0 : index
    %94 = vector.load %arg16[%c0_50, %c0_51, %c0_52] : memref<2x32x32xf32, #tpu.memory_space<vmem>>, vector<1x32x32xf32>
    %95 = vector.shape_cast %94 : vector<1x32x32xf32> to vector<32x32xf32>
    %cst_53 = arith.constant dense<0.000000e+00> : vector<48x32xf32>
    %96 = tpu.matmul %93, %95, %cst_53 {dimension_numbers = #tpu.dot_dimension_numbers<[1], [0], [0], [1], [0, 0, 1, 1], [], []>} : vector<48x32xf32>, vector<32x32xf32>, vector<48x32xf32> -> vector<48x32xf32>
    %97 = vector.broadcast %85 : vector<1x32xf32> to vector<48x32xf32>
    %98 = arith.addf %96, %97 : vector<48x32xf32>
    %99 = vector.extract_strided_slice %7 {offsets = [5, 0], sizes = [1, 64], strides = [1, 1]} : vector<16x64xf32> to vector<1x64xf32>
    %100 = vector.extract_strided_slice %7 {offsets = [6, 0], sizes = [1, 32], strides = [1, 1]} : vector<16x64xf32> to vector<1x32xf32>
    %101 = vector.extract_strided_slice %7 {offsets = [6, 32], sizes = [1, 32], strides = [1, 1]} : vector<16x64xf32> to vector<1x32xf32>
    %102 = vector.extract_strided_slice %7 {offsets = [7, 0], sizes = [1, 32], strides = [1, 1]} : vector<16x64xf32> to vector<1x32xf32>
    %103 = vector.extract_strided_slice %7 {offsets = [7, 32], sizes = [1, 32], strides = [1, 1]} : vector<16x64xf32> to vector<1x32xf32>
    %104 = vector.extract_strided_slice %7 {offsets = [8, 0], sizes = [1, 32], strides = [1, 1]} : vector<16x64xf32> to vector<1x32xf32>
    %105 = vector.extract_strided_slice %7 {offsets = [8, 32], sizes = [1, 32], strides = [1, 1]} : vector<16x64xf32> to vector<1x32xf32>
    %106 = vector.extract_strided_slice %7 {offsets = [9, 0], sizes = [1, 32], strides = [1, 1]} : vector<16x64xf32> to vector<1x32xf32>
    %c0_54 = arith.constant 0 : index
    %c0_55 = arith.constant 0 : index
    %107 = vector.load %arg20[%c0_54, %c0_55] : memref<32x32xf32, #tpu.memory_space<vmem>>, vector<32x32xf32>
    %c0_56 = arith.constant 0 : index
    %c0_57 = arith.constant 0 : index
    %c0_58 = arith.constant 0 : index
    %108 = vector.load %arg7[%c0_56, %c0_57, %c0_58] : memref<2x32x32xf32, #tpu.memory_space<vmem>>, vector<1x32x32xf32>
    %109 = vector.shape_cast %108 : vector<1x32x32xf32> to vector<32x32xf32>
    %c0_59 = arith.constant 0 : index
    %c0_60 = arith.constant 0 : index
    %110 = vector.load %arg21[%c0_59, %c0_60] : memref<32x32xf32, #tpu.memory_space<vmem>>, vector<32x32xf32>
    tpu.vector_store %arg21[%c0_59, %c0_60], %109 {strides = array<i32>} : memref<32x32xf32, #tpu.memory_space<vmem>>, vector<32x32xf32>,
    %c0_61 = arith.constant 0 : index
    %c0_62 = arith.constant 0 : index
    %c0_63 = arith.constant 0 : index
    %111 = vector.load %arg13[%c0_61, %c0_62, %c0_63] : memref<2x32x32xf32, #tpu.memory_space<vmem>>, vector<1x32x32xf32>
    %112 = vector.shape_cast %111 : vector<1x32x32xf32> to vector<32x32xf32>
    %cst_64 = arith.constant dense<0.000000e+00> : vector<48x32xf32>
    %113 = tpu.matmul %98, %112, %cst_64 {dimension_numbers = #tpu.dot_dimension_numbers<[1], [0], [0], [1], [0, 0, 1, 1], [], []>} : vector<48x32xf32>, vector<32x32xf32>, vector<48x32xf32> -> vector<48x32xf32>
    %114 = vector.broadcast %100 : vector<1x32xf32> to vector<48x32xf32>
    %115 = arith.addf %113, %114 : vector<48x32xf32>
    %c0_65 = arith.constant 0 : index
    %c0_66 = arith.constant 0 : index
    %116 = vector.load %arg25[%c0_65, %c0_66] : memref<48x32xf32, #tpu.memory_space<vmem>>, vector<48x32xf32>
    tpu.vector_store %arg25[%c0_65, %c0_66], %115 {strides = array<i32>} : memref<48x32xf32, #tpu.memory_space<vmem>>, vector<48x32xf32>,
    %c0_67 = arith.constant 0 : index
    %c0_68 = arith.constant 0 : index
    %117 = vector.load %arg21[%c0_67, %c0_68] : memref<32x32xf32, #tpu.memory_space<vmem>>, vector<32x32xf32>
    %c0_69 = arith.constant 0 : index
    %c0_70 = arith.constant 0 : index
    %118 = vector.load %arg23[%c0_69, %c0_70] : memref<32x32xf32, #tpu.memory_space<vmem>>, vector<32x32xf32>
    tpu.vector_store %arg23[%c0_69, %c0_70], %117 {strides = array<i32>} : memref<32x32xf32, #tpu.memory_space<vmem>>, vector<32x32xf32>,
    %c0_i32_71 = arith.constant 0 : i32
    %c48_i32 = arith.constant 48 : i32
    %119 = arith.addi %c0_i32_71, %c48_i32 : i32
    %c1_i32_72 = arith.constant 1 : i32
    scf.for %arg27 = %c0_i32_71 to %119 step %c1_i32_72  : i32 {
      %366 = arith.index_cast %arg27 : i32 to index
      %367 = memref.load %arg2[%366] : memref<48xi32, #tpu.memory_space<smem>>
      %368 = arith.index_cast %arg27 : i32 to index
      %369 = memref.load %arg3[%368] : memref<48xi32, #tpu.memory_space<smem>>
      %370 = arith.index_cast %367 : i32 to index
      %c0_207 = arith.constant 0 : index
      %371 = vector.load %arg21[%370, %c0_207] : memref<32x32xf32, #tpu.memory_space<vmem>>, vector<1x32xf32>
      %372 = arith.index_cast %arg27 : i32 to index
      %c0_208 = arith.constant 0 : index
      %373 = vector.load %arg25[%372, %c0_208] : memref<48x32xf32, #tpu.memory_space<vmem>>, vector<1x32xf32>
      %374 = arith.addf %371, %373 : vector<1x32xf32>
      %cst_209 = arith.constant 0.000000e+00 : f32
      %375 = vector.broadcast %cst_209 : f32 to vector<1x32xf32>
      %376 = arith.maximumf %374, %375 : vector<1x32xf32>
      %377 = arith.index_cast %369 : i32 to index
      %c0_210 = arith.constant 0 : index
      %378 = vector.load %arg23[%377, %c0_210] : memref<32x32xf32, #tpu.memory_space<vmem>>, vector<1x32xf32>
      %379 = arith.addf %378, %376 : vector<1x32xf32>
      %380 = arith.index_cast %369 : i32 to index
      %c0_211 = arith.constant 0 : index
      %381 = vector.load %arg23[%380, %c0_211] : memref<32x32xf32, #tpu.memory_space<vmem>>, vector<1x32xf32>
      tpu.vector_store %arg23[%380, %c0_211], %379 {strides = array<i32>} : memref<32x32xf32, #tpu.memory_space<vmem>>, vector<1x32xf32>,
    }
    %c48_i32_73 = arith.constant 48 : i32
    %c0_74 = arith.constant 0 : index
    %c0_75 = arith.constant 0 : index
    %120 = vector.load %arg23[%c0_74, %c0_75] : memref<32x32xf32, #tpu.memory_space<vmem>>, vector<32x32xf32>
    %c0_76 = arith.constant 0 : index
    %c0_77 = arith.constant 0 : index
    %c0_78 = arith.constant 0 : index
    %121 = vector.load %arg14[%c0_76, %c0_77, %c0_78] : memref<2x32x64xf32, #tpu.memory_space<vmem>>, vector<1x32x64xf32>
    %122 = vector.shape_cast %121 : vector<1x32x64xf32> to vector<32x64xf32>
    %c0_79 = arith.constant 0 : index
    %c0_80 = arith.constant 0 : index
    %c0_81 = arith.constant 0 : index
    %123 = vector.load %arg15[%c0_79, %c0_80, %c0_81] : memref<2x64x32xf32, #tpu.memory_space<vmem>>, vector<1x64x32xf32>
    %124 = vector.shape_cast %123 : vector<1x64x32xf32> to vector<64x32xf32>
    %cst_82 = arith.constant dense<0.000000e+00> : vector<32x64xf32>
    %125 = tpu.matmul %120, %122, %cst_82 {dimension_numbers = #tpu.dot_dimension_numbers<[1], [0], [0], [1], [0, 0, 1, 1], [], []>} : vector<32x32xf32>, vector<32x64xf32>, vector<32x64xf32> -> vector<32x64xf32>
    %126 = vector.broadcast %99 : vector<1x64xf32> to vector<32x64xf32>
    %127 = arith.addf %125, %126 : vector<32x64xf32>
    %cst_83 = arith.constant 0.000000e+00 : f32
    %128 = vector.broadcast %cst_83 : f32 to vector<32x64xf32>
    %129 = arith.maximumf %127, %128 : vector<32x64xf32>
    %cst_84 = arith.constant dense<0.000000e+00> : vector<32x32xf32>
    %130 = tpu.matmul %129, %124, %cst_84 {dimension_numbers = #tpu.dot_dimension_numbers<[1], [0], [0], [1], [0, 0, 1, 1], [], []>} : vector<32x64xf32>, vector<64x32xf32>, vector<32x32xf32> -> vector<32x32xf32>
    %131 = vector.broadcast %101 : vector<1x32xf32> to vector<32x32xf32>
    %132 = arith.addf %130, %131 : vector<32x32xf32>
    %cst_85 = arith.constant dense<0.000000e+00> : vector<32xf32>
    %133 = vector.multi_reduction <add>, %132, %cst_85 [1] : vector<32x32xf32> to vector<32xf32>
    %134 = vector.shape_cast %133 : vector<32xf32> to vector<32x1xf32>
    %cst_86 = arith.constant 3.200000e+01 : f32
    %135 = vector.broadcast %cst_86 : f32 to vector<32x1xf32>
    %136 = arith.divf %134, %135 : vector<32x1xf32>
    %137 = vector.broadcast %136 : vector<32x1xf32> to vector<32x32xf32>
    %138 = arith.subf %132, %137 : vector<32x32xf32>
    %139 = arith.mulf %138, %138 : vector<32x32xf32>
    %cst_87 = arith.constant dense<0.000000e+00> : vector<32xf32>
    %140 = vector.multi_reduction <add>, %139, %cst_87 [1] : vector<32x32xf32> to vector<32xf32>
    %141 = vector.shape_cast %140 : vector<32xf32> to vector<32x1xf32>
    %cst_88 = arith.constant 3.200000e+01 : f32
    %142 = vector.broadcast %cst_88 : f32 to vector<32x1xf32>
    %143 = arith.divf %141, %142 : vector<32x1xf32>
    %144 = vector.broadcast %136 : vector<32x1xf32> to vector<32x32xf32>
    %145 = arith.subf %132, %144 : vector<32x32xf32>
    %cst_89 = arith.constant 9.99999974E-6 : f32
    %146 = vector.broadcast %cst_89 : f32 to vector<32x1xf32>
    %147 = arith.addf %143, %146 : vector<32x1xf32>
    %148 = math.rsqrt %147 : vector<32x1xf32>
    %149 = vector.broadcast %148 : vector<32x1xf32> to vector<32x32xf32>
    %150 = arith.mulf %145, %149 : vector<32x32xf32>
    %151 = vector.broadcast %102 : vector<1x32xf32> to vector<32x32xf32>
    %152 = arith.mulf %150, %151 : vector<32x32xf32>
    %153 = vector.broadcast %103 : vector<1x32xf32> to vector<32x32xf32>
    %154 = arith.addf %152, %153 : vector<32x32xf32>
    %cst_90 = arith.constant dense<0.000000e+00> : vector<32xf32>
    %155 = vector.multi_reduction <add>, %154, %cst_90 [0] : vector<32x32xf32> to vector<32xf32>
    %156 = vector.shape_cast %155 : vector<32xf32> to vector<1x32xf32>
    %cst_91 = arith.constant 3.200000e+01 : f32
    %157 = vector.broadcast %cst_91 : f32 to vector<1x32xf32>
    %158 = arith.divf %156, %157 : vector<1x32xf32>
    %159 = arith.mulf %158, %106 : vector<1x32xf32>
    %160 = vector.broadcast %159 : vector<1x32xf32> to vector<32x32xf32>
    %161 = arith.subf %154, %160 : vector<32x32xf32>
    %162 = arith.mulf %161, %161 : vector<32x32xf32>
    %cst_92 = arith.constant dense<0.000000e+00> : vector<32xf32>
    %163 = vector.multi_reduction <add>, %162, %cst_92 [0] : vector<32x32xf32> to vector<32xf32>
    %164 = vector.shape_cast %163 : vector<32xf32> to vector<1x32xf32>
    %cst_93 = arith.constant 3.200000e+01 : f32
    %165 = vector.broadcast %cst_93 : f32 to vector<1x32xf32>
    %166 = arith.divf %164, %165 : vector<1x32xf32>
    %cst_94 = arith.constant 9.99999974E-6 : f32
    %167 = vector.broadcast %cst_94 : f32 to vector<1x32xf32>
    %168 = arith.addf %166, %167 : vector<1x32xf32>
    %169 = math.rsqrt %168 : vector<1x32xf32>
    %170 = vector.broadcast %169 : vector<1x32xf32> to vector<32x32xf32>
    %171 = arith.mulf %161, %170 : vector<32x32xf32>
    %172 = vector.broadcast %104 : vector<1x32xf32> to vector<32x32xf32>
    %173 = arith.mulf %172, %171 : vector<32x32xf32>
    %174 = vector.broadcast %105 : vector<1x32xf32> to vector<32x32xf32>
    %175 = arith.addf %173, %174 : vector<32x32xf32>
    %176 = arith.addf %175, %107 : vector<32x32xf32>
    %c0_95 = arith.constant 0 : index
    %c0_96 = arith.constant 0 : index
    %177 = vector.load %arg19[%c0_95, %c0_96] : memref<16x32xf32, #tpu.memory_space<vmem>>, vector<16x32xf32>
    tpu.vector_store %arg19[%c0_95, %c0_96], %82 {strides = array<i32>} : memref<16x32xf32, #tpu.memory_space<vmem>>, vector<16x32xf32>,
    %c0_97 = arith.constant 0 : index
    %c0_98 = arith.constant 0 : index
    %178 = vector.load %arg20[%c0_97, %c0_98] : memref<32x32xf32, #tpu.memory_space<vmem>>, vector<32x32xf32>
    tpu.vector_store %arg20[%c0_97, %c0_98], %176 {strides = array<i32>} : memref<32x32xf32, #tpu.memory_space<vmem>>, vector<32x32xf32>,
    %c0_99 = arith.constant 0 : index
    %c32 = arith.constant 32 : index
    %179 = vector.load %arg26[%c0_99, %c32] : memref<16x96xf32, #tpu.memory_space<vmem>>, vector<16x32xf32>
    tpu.vector_store %arg26[%c0_99, %c32], %82 {strides = array<i32>} : memref<16x96xf32, #tpu.memory_space<vmem>>, vector<16x32xf32>,
    %c1 = arith.constant 1 : index
    %c0_100 = arith.constant 0 : index
    %c0_101 = arith.constant 0 : index
    %180 = vector.load %arg17[%c1, %c0_100, %c0_101] : memref<2x16x64xf32, #tpu.memory_space<vmem>>, vector<1x16x64xf32>
    %181 = vector.shape_cast %180 : vector<1x16x64xf32> to vector<16x64xf32>
    %182 = vector.extract_strided_slice %181 {offsets = [0, 0], sizes = [1, 64], strides = [1, 1]} : vector<16x64xf32> to vector<1x64xf32>
    %183 = vector.extract_strided_slice %181 {offsets = [1, 0], sizes = [1, 32], strides = [1, 1]} : vector<16x64xf32> to vector<1x32xf32>
    %184 = vector.extract_strided_slice %181 {offsets = [1, 32], sizes = [1, 32], strides = [1, 1]} : vector<16x64xf32> to vector<1x32xf32>
    %185 = vector.extract_strided_slice %181 {offsets = [2, 0], sizes = [1, 32], strides = [1, 1]} : vector<16x64xf32> to vector<1x32xf32>
    %186 = vector.extract_strided_slice %181 {offsets = [2, 32], sizes = [1, 32], strides = [1, 1]} : vector<16x64xf32> to vector<1x32xf32>
    %187 = vector.extract_strided_slice %181 {offsets = [3, 0], sizes = [1, 32], strides = [1, 1]} : vector<16x64xf32> to vector<1x32xf32>
    %188 = vector.extract_strided_slice %181 {offsets = [3, 32], sizes = [1, 32], strides = [1, 1]} : vector<16x64xf32> to vector<1x32xf32>
    %189 = vector.extract_strided_slice %181 {offsets = [4, 0], sizes = [1, 32], strides = [1, 1]} : vector<16x64xf32> to vector<1x32xf32>
    %c0_102 = arith.constant 0 : index
    %c0_103 = arith.constant 0 : index
    %190 = vector.load %arg19[%c0_102, %c0_103] : memref<16x32xf32, #tpu.memory_space<vmem>>, vector<16x32xf32>
    %c0_104 = arith.constant 0 : index
    %c0_105 = arith.constant 0 : index
    %191 = vector.load %arg20[%c0_104, %c0_105] : memref<32x32xf32, #tpu.memory_space<vmem>>, vector<32x32xf32>
    %c1_106 = arith.constant 1 : index
    %c0_107 = arith.constant 0 : index
    %c0_108 = arith.constant 0 : index
    %192 = vector.load %arg10[%c1_106, %c0_107, %c0_108] : memref<2x32x32xf32, #tpu.memory_space<vmem>>, vector<1x32x32xf32>
    %193 = vector.shape_cast %192 : vector<1x32x32xf32> to vector<32x32xf32>
    %cst_109 = arith.constant dense<0.000000e+00> : vector<32x32xf32>
    %194 = tpu.matmul %191, %193, %cst_109 {dimension_numbers = #tpu.dot_dimension_numbers<[1], [0], [0], [1], [0, 0, 1, 1], [], []>} : vector<32x32xf32>, vector<32x32xf32>, vector<32x32xf32> -> vector<32x32xf32>
    %195 = vector.broadcast %183 : vector<1x32xf32> to vector<32x32xf32>
    %196 = arith.addf %194, %195 : vector<32x32xf32>
    %c0_110 = arith.constant 0 : index
    %c0_111 = arith.constant 0 : index
    %197 = vector.load %arg24[%c0_110, %c0_111] : memref<32x32xf32, #tpu.memory_space<vmem>>, vector<32x32xf32>
    tpu.vector_store %arg24[%c0_110, %c0_111], %196 {strides = array<i32>} : memref<32x32xf32, #tpu.memory_space<vmem>>, vector<32x32xf32>,
    %c0_112 = arith.constant 0 : index
    %c0_113 = arith.constant 0 : index
    %198 = vector.load %arg22[%c0_112, %c0_113] : memref<16x32xf32, #tpu.memory_space<vmem>>, vector<16x32xf32>
    tpu.vector_store %arg22[%c0_112, %c0_113], %190 {strides = array<i32>} : memref<16x32xf32, #tpu.memory_space<vmem>>, vector<16x32xf32>,
    %c0_i32_114 = arith.constant 0 : i32
    %c32_i32_115 = arith.constant 32 : i32
    %199 = arith.addi %c0_i32_114, %c32_i32_115 : i32
    %c1_i32_116 = arith.constant 1 : i32
    scf.for %arg27 = %c0_i32_114 to %199 step %c1_i32_116  : i32 {
      %366 = arith.index_cast %arg27 : i32 to index
      %367 = memref.load %arg0[%366] : memref<32xi32, #tpu.memory_space<smem>>
      %368 = arith.index_cast %arg27 : i32 to index
      %369 = memref.load %arg1[%368] : memref<32xi32, #tpu.memory_space<smem>>
      %370 = arith.index_cast %367 : i32 to index
      %c0_207 = arith.constant 0 : index
      %371 = vector.load %arg19[%370, %c0_207] : memref<16x32xf32, #tpu.memory_space<vmem>>, vector<1x32xf32>
      %372 = arith.index_cast %arg27 : i32 to index
      %c0_208 = arith.constant 0 : index
      %373 = vector.load %arg24[%372, %c0_208] : memref<32x32xf32, #tpu.memory_space<vmem>>, vector<1x32xf32>
      %374 = arith.addf %371, %373 : vector<1x32xf32>
      %cst_209 = arith.constant 0.000000e+00 : f32
      %375 = vector.broadcast %cst_209 : f32 to vector<1x32xf32>
      %376 = arith.maximumf %374, %375 : vector<1x32xf32>
      %377 = arith.index_cast %369 : i32 to index
      %c0_210 = arith.constant 0 : index
      %378 = vector.load %arg22[%377, %c0_210] : memref<16x32xf32, #tpu.memory_space<vmem>>, vector<1x32xf32>
      %379 = arith.addf %378, %376 : vector<1x32xf32>
      %380 = arith.index_cast %369 : i32 to index
      %c0_211 = arith.constant 0 : index
      %381 = vector.load %arg22[%380, %c0_211] : memref<16x32xf32, #tpu.memory_space<vmem>>, vector<1x32xf32>
      tpu.vector_store %arg22[%380, %c0_211], %379 {strides = array<i32>} : memref<16x32xf32, #tpu.memory_space<vmem>>, vector<1x32xf32>,
    }
    %c32_i32_117 = arith.constant 32 : i32
    %c0_118 = arith.constant 0 : index
    %c0_119 = arith.constant 0 : index
    %200 = vector.load %arg22[%c0_118, %c0_119] : memref<16x32xf32, #tpu.memory_space<vmem>>, vector<16x32xf32>
    %c1_120 = arith.constant 1 : index
    %c0_121 = arith.constant 0 : index
    %c0_122 = arith.constant 0 : index
    %201 = vector.load %arg11[%c1_120, %c0_121, %c0_122] : memref<2x32x64xf32, #tpu.memory_space<vmem>>, vector<1x32x64xf32>
    %202 = vector.shape_cast %201 : vector<1x32x64xf32> to vector<32x64xf32>
    %c1_123 = arith.constant 1 : index
    %c0_124 = arith.constant 0 : index
    %c0_125 = arith.constant 0 : index
    %203 = vector.load %arg12[%c1_123, %c0_124, %c0_125] : memref<2x64x32xf32, #tpu.memory_space<vmem>>, vector<1x64x32xf32>
    %204 = vector.shape_cast %203 : vector<1x64x32xf32> to vector<64x32xf32>
    %cst_126 = arith.constant dense<0.000000e+00> : vector<16x64xf32>
    %205 = tpu.matmul %200, %202, %cst_126 {dimension_numbers = #tpu.dot_dimension_numbers<[1], [0], [0], [1], [0, 0, 1, 1], [], []>} : vector<16x32xf32>, vector<32x64xf32>, vector<16x64xf32> -> vector<16x64xf32>
    %206 = vector.broadcast %182 : vector<1x64xf32> to vector<16x64xf32>
    %207 = arith.addf %205, %206 : vector<16x64xf32>
    %cst_127 = arith.constant 0.000000e+00 : f32
    %208 = vector.broadcast %cst_127 : f32 to vector<16x64xf32>
    %209 = arith.maximumf %207, %208 : vector<16x64xf32>
    %cst_128 = arith.constant dense<0.000000e+00> : vector<16x32xf32>
    %210 = tpu.matmul %209, %204, %cst_128 {dimension_numbers = #tpu.dot_dimension_numbers<[1], [0], [0], [1], [0, 0, 1, 1], [], []>} : vector<16x64xf32>, vector<64x32xf32>, vector<16x32xf32> -> vector<16x32xf32>
    %211 = vector.broadcast %184 : vector<1x32xf32> to vector<16x32xf32>
    %212 = arith.addf %210, %211 : vector<16x32xf32>
    %cst_129 = arith.constant dense<0.000000e+00> : vector<16xf32>
    %213 = vector.multi_reduction <add>, %212, %cst_129 [1] : vector<16x32xf32> to vector<16xf32>
    %214 = vector.shape_cast %213 : vector<16xf32> to vector<16x1xf32>
    %cst_130 = arith.constant 3.200000e+01 : f32
    %215 = vector.broadcast %cst_130 : f32 to vector<16x1xf32>
    %216 = arith.divf %214, %215 : vector<16x1xf32>
    %217 = vector.broadcast %216 : vector<16x1xf32> to vector<16x32xf32>
    %218 = arith.subf %212, %217 : vector<16x32xf32>
    %219 = arith.mulf %218, %218 : vector<16x32xf32>
    %cst_131 = arith.constant dense<0.000000e+00> : vector<16xf32>
    %220 = vector.multi_reduction <add>, %219, %cst_131 [1] : vector<16x32xf32> to vector<16xf32>
    %221 = vector.shape_cast %220 : vector<16xf32> to vector<16x1xf32>
    %cst_132 = arith.constant 3.200000e+01 : f32
    %222 = vector.broadcast %cst_132 : f32 to vector<16x1xf32>
    %223 = arith.divf %221, %222 : vector<16x1xf32>
    %224 = vector.broadcast %216 : vector<16x1xf32> to vector<16x32xf32>
    %225 = arith.subf %212, %224 : vector<16x32xf32>
    %cst_133 = arith.constant 9.99999974E-6 : f32
    %226 = vector.broadcast %cst_133 : f32 to vector<16x1xf32>
    %227 = arith.addf %223, %226 : vector<16x1xf32>
    %228 = math.rsqrt %227 : vector<16x1xf32>
    %229 = vector.broadcast %228 : vector<16x1xf32> to vector<16x32xf32>
    %230 = arith.mulf %225, %229 : vector<16x32xf32>
    %231 = vector.broadcast %185 : vector<1x32xf32> to vector<16x32xf32>
    %232 = arith.mulf %230, %231 : vector<16x32xf32>
    %233 = vector.broadcast %186 : vector<1x32xf32> to vector<16x32xf32>
    %234 = arith.addf %232, %233 : vector<16x32xf32>
    %cst_134 = arith.constant dense<0.000000e+00> : vector<32xf32>
    %235 = vector.multi_reduction <add>, %234, %cst_134 [0] : vector<16x32xf32> to vector<32xf32>
    %236 = vector.shape_cast %235 : vector<32xf32> to vector<1x32xf32>
    %cst_135 = arith.constant 1.600000e+01 : f32
    %237 = vector.broadcast %cst_135 : f32 to vector<1x32xf32>
    %238 = arith.divf %236, %237 : vector<1x32xf32>
    %239 = arith.mulf %238, %189 : vector<1x32xf32>
    %240 = vector.broadcast %239 : vector<1x32xf32> to vector<16x32xf32>
    %241 = arith.subf %234, %240 : vector<16x32xf32>
    %242 = arith.mulf %241, %241 : vector<16x32xf32>
    %cst_136 = arith.constant dense<0.000000e+00> : vector<32xf32>
    %243 = vector.multi_reduction <add>, %242, %cst_136 [0] : vector<16x32xf32> to vector<32xf32>
    %244 = vector.shape_cast %243 : vector<32xf32> to vector<1x32xf32>
    %cst_137 = arith.constant 1.600000e+01 : f32
    %245 = vector.broadcast %cst_137 : f32 to vector<1x32xf32>
    %246 = arith.divf %244, %245 : vector<1x32xf32>
    %cst_138 = arith.constant 9.99999974E-6 : f32
    %247 = vector.broadcast %cst_138 : f32 to vector<1x32xf32>
    %248 = arith.addf %246, %247 : vector<1x32xf32>
    %249 = math.rsqrt %248 : vector<1x32xf32>
    %250 = vector.broadcast %249 : vector<1x32xf32> to vector<16x32xf32>
    %251 = arith.mulf %241, %250 : vector<16x32xf32>
    %252 = vector.broadcast %187 : vector<1x32xf32> to vector<16x32xf32>
    %253 = arith.mulf %252, %251 : vector<16x32xf32>
    %254 = vector.broadcast %188 : vector<1x32xf32> to vector<16x32xf32>
    %255 = arith.addf %253, %254 : vector<16x32xf32>
    %cst_139 = arith.constant 0.000000e+00 : f32
    %256 = vector.broadcast %cst_139 : f32 to vector<16x32xf32>
    %257 = arith.maximumf %255, %256 : vector<16x32xf32>
    %258 = arith.addf %257, %190 : vector<16x32xf32>
    %259 = vector.extract_strided_slice %181 {offsets = [10, 0], sizes = [1, 32], strides = [1, 1]} : vector<16x64xf32> to vector<1x32xf32>
    %260 = vector.extract_strided_slice %181 {offsets = [10, 32], sizes = [1, 32], strides = [1, 1]} : vector<16x64xf32> to vector<1x32xf32>
    %261 = vector.extract_strided_slice %181 {offsets = [11, 0], sizes = [1, 32], strides = [1, 1]} : vector<16x64xf32> to vector<1x32xf32>
    %c0_140 = arith.constant 0 : index
    %c0_141 = arith.constant 0 : index
    %262 = vector.load %arg8[%c0_140, %c0_141] : memref<48x1xf32, #tpu.memory_space<vmem>>, vector<48x1xf32>
    %263 = vector.broadcast %262 : vector<48x1xf32> to vector<48x32xf32>
    %264 = vector.broadcast %259 : vector<1x32xf32> to vector<48x32xf32>
    %265 = arith.mulf %263, %264 : vector<48x32xf32>
    %266 = vector.broadcast %260 : vector<1x32xf32> to vector<48x32xf32>
    %267 = arith.addf %265, %266 : vector<48x32xf32>
    %cst_142 = arith.constant 0.000000e+00 : f32
    %268 = vector.broadcast %cst_142 : f32 to vector<48x32xf32>
    %269 = arith.maximumf %267, %268 : vector<48x32xf32>
    %c1_143 = arith.constant 1 : index
    %c0_144 = arith.constant 0 : index
    %c0_145 = arith.constant 0 : index
    %270 = vector.load %arg16[%c1_143, %c0_144, %c0_145] : memref<2x32x32xf32, #tpu.memory_space<vmem>>, vector<1x32x32xf32>
    %271 = vector.shape_cast %270 : vector<1x32x32xf32> to vector<32x32xf32>
    %cst_146 = arith.constant dense<0.000000e+00> : vector<48x32xf32>
    %272 = tpu.matmul %269, %271, %cst_146 {dimension_numbers = #tpu.dot_dimension_numbers<[1], [0], [0], [1], [0, 0, 1, 1], [], []>} : vector<48x32xf32>, vector<32x32xf32>, vector<48x32xf32> -> vector<48x32xf32>
    %273 = vector.broadcast %261 : vector<1x32xf32> to vector<48x32xf32>
    %274 = arith.addf %272, %273 : vector<48x32xf32>
    %275 = vector.extract_strided_slice %181 {offsets = [5, 0], sizes = [1, 64], strides = [1, 1]} : vector<16x64xf32> to vector<1x64xf32>
    %276 = vector.extract_strided_slice %181 {offsets = [6, 0], sizes = [1, 32], strides = [1, 1]} : vector<16x64xf32> to vector<1x32xf32>
    %277 = vector.extract_strided_slice %181 {offsets = [6, 32], sizes = [1, 32], strides = [1, 1]} : vector<16x64xf32> to vector<1x32xf32>
    %278 = vector.extract_strided_slice %181 {offsets = [7, 0], sizes = [1, 32], strides = [1, 1]} : vector<16x64xf32> to vector<1x32xf32>
    %279 = vector.extract_strided_slice %181 {offsets = [7, 32], sizes = [1, 32], strides = [1, 1]} : vector<16x64xf32> to vector<1x32xf32>
    %280 = vector.extract_strided_slice %181 {offsets = [8, 0], sizes = [1, 32], strides = [1, 1]} : vector<16x64xf32> to vector<1x32xf32>
    %281 = vector.extract_strided_slice %181 {offsets = [8, 32], sizes = [1, 32], strides = [1, 1]} : vector<16x64xf32> to vector<1x32xf32>
    %282 = vector.extract_strided_slice %181 {offsets = [9, 0], sizes = [1, 32], strides = [1, 1]} : vector<16x64xf32> to vector<1x32xf32>
    %c0_147 = arith.constant 0 : index
    %c0_148 = arith.constant 0 : index
    %283 = vector.load %arg20[%c0_147, %c0_148] : memref<32x32xf32, #tpu.memory_space<vmem>>, vector<32x32xf32>
    %c1_149 = arith.constant 1 : index
    %c0_150 = arith.constant 0 : index
    %c0_151 = arith.constant 0 : index
    %284 = vector.load %arg7[%c1_149, %c0_150, %c0_151] : memref<2x32x32xf32, #tpu.memory_space<vmem>>, vector<1x32x32xf32>
    %285 = vector.shape_cast %284 : vector<1x32x32xf32> to vector<32x32xf32>
    %c0_152 = arith.constant 0 : index
    %c0_153 = arith.constant 0 : index
    %286 = vector.load %arg21[%c0_152, %c0_153] : memref<32x32xf32, #tpu.memory_space<vmem>>, vector<32x32xf32>
    tpu.vector_store %arg21[%c0_152, %c0_153], %285 {strides = array<i32>} : memref<32x32xf32, #tpu.memory_space<vmem>>, vector<32x32xf32>,
    %c1_154 = arith.constant 1 : index
    %c0_155 = arith.constant 0 : index
    %c0_156 = arith.constant 0 : index
    %287 = vector.load %arg13[%c1_154, %c0_155, %c0_156] : memref<2x32x32xf32, #tpu.memory_space<vmem>>, vector<1x32x32xf32>
    %288 = vector.shape_cast %287 : vector<1x32x32xf32> to vector<32x32xf32>
    %cst_157 = arith.constant dense<0.000000e+00> : vector<48x32xf32>
    %289 = tpu.matmul %274, %288, %cst_157 {dimension_numbers = #tpu.dot_dimension_numbers<[1], [0], [0], [1], [0, 0, 1, 1], [], []>} : vector<48x32xf32>, vector<32x32xf32>, vector<48x32xf32> -> vector<48x32xf32>
    %290 = vector.broadcast %276 : vector<1x32xf32> to vector<48x32xf32>
    %291 = arith.addf %289, %290 : vector<48x32xf32>
    %c0_158 = arith.constant 0 : index
    %c0_159 = arith.constant 0 : index
    %292 = vector.load %arg25[%c0_158, %c0_159] : memref<48x32xf32, #tpu.memory_space<vmem>>, vector<48x32xf32>
    tpu.vector_store %arg25[%c0_158, %c0_159], %291 {strides = array<i32>} : memref<48x32xf32, #tpu.memory_space<vmem>>, vector<48x32xf32>,
    %c0_160 = arith.constant 0 : index
    %c0_161 = arith.constant 0 : index
    %293 = vector.load %arg21[%c0_160, %c0_161] : memref<32x32xf32, #tpu.memory_space<vmem>>, vector<32x32xf32>
    %c0_162 = arith.constant 0 : index
    %c0_163 = arith.constant 0 : index
    %294 = vector.load %arg23[%c0_162, %c0_163] : memref<32x32xf32, #tpu.memory_space<vmem>>, vector<32x32xf32>
    tpu.vector_store %arg23[%c0_162, %c0_163], %293 {strides = array<i32>} : memref<32x32xf32, #tpu.memory_space<vmem>>, vector<32x32xf32>,
    %c0_i32_164 = arith.constant 0 : i32
    %c48_i32_165 = arith.constant 48 : i32
    %295 = arith.addi %c0_i32_164, %c48_i32_165 : i32
    %c1_i32_166 = arith.constant 1 : i32
    scf.for %arg27 = %c0_i32_164 to %295 step %c1_i32_166  : i32 {
      %366 = arith.index_cast %arg27 : i32 to index
      %367 = memref.load %arg2[%366] : memref<48xi32, #tpu.memory_space<smem>>
      %368 = arith.index_cast %arg27 : i32 to index
      %369 = memref.load %arg3[%368] : memref<48xi32, #tpu.memory_space<smem>>
      %370 = arith.index_cast %367 : i32 to index
      %c0_207 = arith.constant 0 : index
      %371 = vector.load %arg21[%370, %c0_207] : memref<32x32xf32, #tpu.memory_space<vmem>>, vector<1x32xf32>
      %372 = arith.index_cast %arg27 : i32 to index
      %c0_208 = arith.constant 0 : index
      %373 = vector.load %arg25[%372, %c0_208] : memref<48x32xf32, #tpu.memory_space<vmem>>, vector<1x32xf32>
      %374 = arith.addf %371, %373 : vector<1x32xf32>
      %cst_209 = arith.constant 0.000000e+00 : f32
      %375 = vector.broadcast %cst_209 : f32 to vector<1x32xf32>
      %376 = arith.maximumf %374, %375 : vector<1x32xf32>
      %377 = arith.index_cast %369 : i32 to index
      %c0_210 = arith.constant 0 : index
      %378 = vector.load %arg23[%377, %c0_210] : memref<32x32xf32, #tpu.memory_space<vmem>>, vector<1x32xf32>
      %379 = arith.addf %378, %376 : vector<1x32xf32>
      %380 = arith.index_cast %369 : i32 to index
      %c0_211 = arith.constant 0 : index
      %381 = vector.load %arg23[%380, %c0_211] : memref<32x32xf32, #tpu.memory_space<vmem>>, vector<1x32xf32>
      tpu.vector_store %arg23[%380, %c0_211], %379 {strides = array<i32>} : memref<32x32xf32, #tpu.memory_space<vmem>>, vector<1x32xf32>,
    }
    %c48_i32_167 = arith.constant 48 : i32
    %c0_168 = arith.constant 0 : index
    %c0_169 = arith.constant 0 : index
    %296 = vector.load %arg23[%c0_168, %c0_169] : memref<32x32xf32, #tpu.memory_space<vmem>>, vector<32x32xf32>
    %c1_170 = arith.constant 1 : index
    %c0_171 = arith.constant 0 : index
    %c0_172 = arith.constant 0 : index
    %297 = vector.load %arg14[%c1_170, %c0_171, %c0_172] : memref<2x32x64xf32, #tpu.memory_space<vmem>>, vector<1x32x64xf32>
    %298 = vector.shape_cast %297 : vector<1x32x64xf32> to vector<32x64xf32>
    %c1_173 = arith.constant 1 : index
    %c0_174 = arith.constant 0 : index
    %c0_175 = arith.constant 0 : index
    %299 = vector.load %arg15[%c1_173, %c0_174, %c0_175] : memref<2x64x32xf32, #tpu.memory_space<vmem>>, vector<1x64x32xf32>
    %300 = vector.shape_cast %299 : vector<1x64x32xf32> to vector<64x32xf32>
    %cst_176 = arith.constant dense<0.000000e+00> : vector<32x64xf32>
    %301 = tpu.matmul %296, %298, %cst_176 {dimension_numbers = #tpu.dot_dimension_numbers<[1], [0], [0], [1], [0, 0, 1, 1], [], []>} : vector<32x32xf32>, vector<32x64xf32>, vector<32x64xf32> -> vector<32x64xf32>
    %302 = vector.broadcast %275 : vector<1x64xf32> to vector<32x64xf32>
    %303 = arith.addf %301, %302 : vector<32x64xf32>
    %cst_177 = arith.constant 0.000000e+00 : f32
    %304 = vector.broadcast %cst_177 : f32 to vector<32x64xf32>
    %305 = arith.maximumf %303, %304 : vector<32x64xf32>
    %cst_178 = arith.constant dense<0.000000e+00> : vector<32x32xf32>
    %306 = tpu.matmul %305, %300, %cst_178 {dimension_numbers = #tpu.dot_dimension_numbers<[1], [0], [0], [1], [0, 0, 1, 1], [], []>} : vector<32x64xf32>, vector<64x32xf32>, vector<32x32xf32> -> vector<32x32xf32>
    %307 = vector.broadcast %277 : vector<1x32xf32> to vector<32x32xf32>
    %308 = arith.addf %306, %307 : vector<32x32xf32>
    %cst_179 = arith.constant dense<0.000000e+00> : vector<32xf32>
    %309 = vector.multi_reduction <add>, %308, %cst_179 [1] : vector<32x32xf32> to vector<32xf32>
    %310 = vector.shape_cast %309 : vector<32xf32> to vector<32x1xf32>
    %cst_180 = arith.constant 3.200000e+01 : f32
    %311 = vector.broadcast %cst_180 : f32 to vector<32x1xf32>
    %312 = arith.divf %310, %311 : vector<32x1xf32>
    %313 = vector.broadcast %312 : vector<32x1xf32> to vector<32x32xf32>
    %314 = arith.subf %308, %313 : vector<32x32xf32>
    %315 = arith.mulf %314, %314 : vector<32x32xf32>
    %cst_181 = arith.constant dense<0.000000e+00> : vector<32xf32>
    %316 = vector.multi_reduction <add>, %315, %cst_181 [1] : vector<32x32xf32> to vector<32xf32>
    %317 = vector.shape_cast %316 : vector<32xf32> to vector<32x1xf32>
    %cst_182 = arith.constant 3.200000e+01 : f32
    %318 = vector.broadcast %cst_182 : f32 to vector<32x1xf32>
    %319 = arith.divf %317, %318 : vector<32x1xf32>
    %320 = vector.broadcast %312 : vector<32x1xf32> to vector<32x32xf32>
    %321 = arith.subf %308, %320 : vector<32x32xf32>
    %cst_183 = arith.constant 9.99999974E-6 : f32
    %322 = vector.broadcast %cst_183 : f32 to vector<32x1xf32>
    %323 = arith.addf %319, %322 : vector<32x1xf32>
    %324 = math.rsqrt %323 : vector<32x1xf32>
    %325 = vector.broadcast %324 : vector<32x1xf32> to vector<32x32xf32>
    %326 = arith.mulf %321, %325 : vector<32x32xf32>
    %327 = vector.broadcast %278 : vector<1x32xf32> to vector<32x32xf32>
    %328 = arith.mulf %326, %327 : vector<32x32xf32>
    %329 = vector.broadcast %279 : vector<1x32xf32> to vector<32x32xf32>
    %330 = arith.addf %328, %329 : vector<32x32xf32>
    %cst_184 = arith.constant dense<0.000000e+00> : vector<32xf32>
    %331 = vector.multi_reduction <add>, %330, %cst_184 [0] : vector<32x32xf32> to vector<32xf32>
    %332 = vector.shape_cast %331 : vector<32xf32> to vector<1x32xf32>
    %cst_185 = arith.constant 3.200000e+01 : f32
    %333 = vector.broadcast %cst_185 : f32 to vector<1x32xf32>
    %334 = arith.divf %332, %333 : vector<1x32xf32>
    %335 = arith.mulf %334, %282 : vector<1x32xf32>
    %336 = vector.broadcast %335 : vector<1x32xf32> to vector<32x32xf32>
    %337 = arith.subf %330, %336 : vector<32x32xf32>
    %338 = arith.mulf %337, %337 : vector<32x32xf32>
    %cst_186 = arith.constant dense<0.000000e+00> : vector<32xf32>
    %339 = vector.multi_reduction <add>, %338, %cst_186 [0] : vector<32x32xf32> to vector<32xf32>
    %340 = vector.shape_cast %339 : vector<32xf32> to vector<1x32xf32>
    %cst_187 = arith.constant 3.200000e+01 : f32
    %341 = vector.broadcast %cst_187 : f32 to vector<1x32xf32>
    %342 = arith.divf %340, %341 : vector<1x32xf32>
    %cst_188 = arith.constant 9.99999974E-6 : f32
    %343 = vector.broadcast %cst_188 : f32 to vector<1x32xf32>
    %344 = arith.addf %342, %343 : vector<1x32xf32>
    %345 = math.rsqrt %344 : vector<1x32xf32>
    %346 = vector.broadcast %345 : vector<1x32xf32> to vector<32x32xf32>
    %347 = arith.mulf %337, %346 : vector<32x32xf32>
    %348 = vector.broadcast %280 : vector<1x32xf32> to vector<32x32xf32>
    %349 = arith.mulf %348, %347 : vector<32x32xf32>
    %350 = vector.broadcast %281 : vector<1x32xf32> to vector<32x32xf32>
    %351 = arith.addf %349, %350 : vector<32x32xf32>
    %cst_189 = arith.constant 0.000000e+00 : f32
    %352 = vector.broadcast %cst_189 : f32 to vector<32x32xf32>
    %353 = arith.maximumf %351, %352 : vector<32x32xf32>
    %354 = arith.addf %353, %283 : vector<32x32xf32>
    %c0_190 = arith.constant 0 : index
    %c0_191 = arith.constant 0 : index
    %355 = vector.load %arg19[%c0_190, %c0_191] : memref<16x32xf32, #tpu.memory_space<vmem>>, vector<16x32xf32>
    tpu.vector_store %arg19[%c0_190, %c0_191], %258 {strides = array<i32>} : memref<16x32xf32, #tpu.memory_space<vmem>>, vector<16x32xf32>,
    %c0_192 = arith.constant 0 : index
    %c0_193 = arith.constant 0 : index
    %356 = vector.load %arg20[%c0_192, %c0_193] : memref<32x32xf32, #tpu.memory_space<vmem>>, vector<32x32xf32>
    tpu.vector_store %arg20[%c0_192, %c0_193], %354 {strides = array<i32>} : memref<32x32xf32, #tpu.memory_space<vmem>>, vector<32x32xf32>,
    %c0_194 = arith.constant 0 : index
    %c64 = arith.constant 64 : index
    %357 = vector.load %arg26[%c0_194, %c64] : memref<16x96xf32, #tpu.memory_space<vmem>>, vector<16x32xf32>
    tpu.vector_store %arg26[%c0_194, %c64], %258 {strides = array<i32>} : memref<16x96xf32, #tpu.memory_space<vmem>>, vector<16x32xf32>,
    %cst_195 = arith.constant 0.000000e+00 : f32
    %358 = vector.broadcast %cst_195 : f32 to vector<2x96xf32>
    %c0_196 = arith.constant 0 : index
    %c0_197 = arith.constant 0 : index
    %359 = vector.load %arg18[%c0_196, %c0_197] : memref<2x96xf32, #tpu.memory_space<vmem>>, vector<2x96xf32>
    tpu.vector_store %arg18[%c0_196, %c0_197], %358 {strides = array<i32>} : memref<2x96xf32, #tpu.memory_space<vmem>>, vector<2x96xf32>,
    %c0_i32_198 = arith.constant 0 : i32
    %c16_i32 = arith.constant 16 : i32
    %360 = arith.addi %c0_i32_198, %c16_i32 : i32
    %c1_i32_199 = arith.constant 1 : i32
    scf.for %arg27 = %c0_i32_198 to %360 step %c1_i32_199  : i32 {
      %366 = arith.index_cast %arg27 : i32 to index
      %367 = memref.load %arg4[%366] : memref<16xi32, #tpu.memory_space<smem>>
      %368 = arith.index_cast %367 : i32 to index
      %c0_207 = arith.constant 0 : index
      %369 = vector.load %arg18[%368, %c0_207] : memref<2x96xf32, #tpu.memory_space<vmem>>, vector<1x96xf32>
      %370 = arith.index_cast %arg27 : i32 to index
      %c0_208 = arith.constant 0 : index
      %371 = vector.load %arg26[%370, %c0_208] : memref<16x96xf32, #tpu.memory_space<vmem>>, vector<1x96xf32>
      %372 = arith.addf %369, %371 : vector<1x96xf32>
      %373 = arith.index_cast %367 : i32 to index
      %c0_209 = arith.constant 0 : index
      %374 = vector.load %arg18[%373, %c0_209] : memref<2x96xf32, #tpu.memory_space<vmem>>, vector<1x96xf32>
      tpu.vector_store %arg18[%373, %c0_209], %372 {strides = array<i32>} : memref<2x96xf32, #tpu.memory_space<vmem>>, vector<1x96xf32>,
    }
    %c16_i32_200 = arith.constant 16 : i32
    %c0_201 = arith.constant 0 : index
    %c0_202 = arith.constant 0 : index
    %361 = vector.load %arg18[%c0_201, %c0_202] : memref<2x96xf32, #tpu.memory_space<vmem>>, vector<2x96xf32>
    %c0_203 = arith.constant 0 : index
    %c0_204 = arith.constant 0 : index
    %362 = vector.load %arg9[%c0_203, %c0_204] : memref<2x1xf32, #tpu.memory_space<vmem>>, vector<2x1xf32>
    %363 = vector.broadcast %362 : vector<2x1xf32> to vector<2x96xf32>
    %364 = arith.mulf %361, %363 : vector<2x96xf32>
    %c0_205 = arith.constant 0 : index
    %c0_206 = arith.constant 0 : index
    %365 = vector.load %arg18[%c0_205, %c0_206] : memref<2x96xf32, #tpu.memory_space<vmem>>, vector<2x96xf32>
    tpu.vector_store %arg18[%c0_205, %c0_206], %364 {strides = array<i32>} : memref<2x96xf32, #tpu.memory_space<vmem>>, vector<2x96xf32>,
    return
  }
}

</mosaic_0001>

<bundles_post_ra>
// kernel: tpu_custom_call.1
= control target key start
LH: loop header
LB: loop body
LE: loop exit
PB: predicated region body
PF: predicated region fallthrough
CT: control target
= control target key end

     0   :  { %s3130_s0 = inlined_call_operand.vmem [shape: s32[32], index: 0, kind: input, shape index: {}]   ;;  %s3131_s1 = inlined_call_operand.vmem [shape: s32[32], index: 1, kind: input, shape index: {}]   ;;  %s3132_s2 = inlined_call_operand.hbm [shape: s32[48], index: 2, kind: input, shape index: {}]   ;;  %s3133_s3 = inlined_call_operand.hbm [shape: s32[48], index: 3, kind: input, shape index: {}]   ;;  %s3134_s4 = inlined_call_operand.hbm [shape: s32[16], index: 4, kind: input, shape index: {}]   ;;  %s3135_s5 = inlined_call_operand.hbm [shape: f32[16,32], index: 5, kind: input, shape index: {}]   ;;  %s3136_s6 = inlined_call_operand.hbm [shape: f32[32,32], index: 6, kind: input, shape index: {}]   ;;  %s3137_s7 = inlined_call_operand.vmem [shape: f32[2,32,32], index: 7, kind: input, shape index: {}]   ;;  %s3138_s8 = inlined_call_operand.vmem [shape: f32[48,1], index: 8, kind: input, shape index: {}]   ;;  %s3139_s9 = inlined_call_operand.vmem [shape: f32[2,1], index: 9, kind: input, shape index: {}]   ;;  %s3140_s10 = inlined_call_operand.vmem [shape: f32[2,32,32], index: 10, kind: input, shape index: {}]   ;;  %s3141_s11 = inlined_call_operand.vmem [shape: f32[2,32,64], index: 11, kind: input, shape index: {}]   ;;  %s3142_s12 = inlined_call_operand.vmem [shape: f32[2,64,32], index: 12, kind: input, shape index: {}]   ;;  %s3143_s13 = inlined_call_operand.vmem [shape: f32[2,32,32], index: 13, kind: input, shape index: {}]   ;;  %s3144_s14 = inlined_call_operand.vmem [shape: f32[2,32,64], index: 14, kind: input, shape index: {}]   ;;  %s3145_s15 = inlined_call_operand.vmem [shape: f32[2,64,32], index: 15, kind: input, shape index: {}]   ;;  %s3146_s16 = inlined_call_operand.vmem [shape: f32[2,32,32], index: 16, kind: input, shape index: {}]   ;;  %s3147_s17 = inlined_call_operand.hbm [shape: f32[2,16,64], index: 17, kind: input, shape index: {}]   ;;  %s3148_s18 = inlined_call_operand.hbm [shape: f32[2,96], index: 18, kind: output, shape index: {}]  }
   0x1   :  { %3149 = sst [smem:[#allocation33_spill]] %s3130_s0 }
   0x2   :  { %3150 = sst [smem:[#allocation34_spill]] %s3131_s1 }
   0x3   :  { %3151 = sst [smem:[#allocation35_spill]] %s3132_s2 }
   0x4   :  { %3152 = sst [smem:[#allocation36_spill]] %s3139_s9 }
   0x5   :  { %3153 = sst [smem:[#allocation37_spill]] %s3148_s18 }
   0x6   :  { %23 = vsyncpa [#allocation14], 0 }
   0x7   :  { %24 = vsyncpa [#allocation16], 0 }
   0x8   :  { %25 = vsyncpa [#allocation13], 0 }
   0x9   :  { %26 = vsyncpa [#allocation19], 0 }
   0xa   :  { %27 = vsyncpa [#allocation11], 0 }
   0xb   :  { %28 = vsyncpa [#allocation23], 0  ;;  %s62_s29 = sshll.u32 %s3133_s3, 4  ;;  %s63_s29 = int_to_ptr.hbm [resolvable:$true] %s62_s29 }
   0xc   :  { %29 = vsyncpa [#allocation12], 0  ;;  %s2259_s30 = smov [#allocation18]   ;;  %s92_s1 = sshll.u32 %s3136_s6, 4  ;;  %s93_s1 = int_to_ptr.hbm [resolvable:$true] %s92_s1 }
   0xd   :  { %65 = dma.hbm_to_smem %s63_s29, 16, %s2259_s30, [#allocation19]  }
   0xe   :  { %s2260_s20 = smov [#allocation22]   ;;  %s3154_s23 = sld [smem:[#allocation33_spill]] }
   0xf   :  { %s94_s21 = sshll.u32 %s2260_s20, 4  ;;  %s2261_s25 = smov 128   ;;  %s95_s21 = int_to_ptr.vmem [resolvable:$true] %s94_s21 }
  0x10   :  { %s2262_s26 = smov 8   ;;  %s3155_s28 = sld [smem:[#allocation34_spill]] }
  0x11   :  { %100 = dma.hbm_to_vmem [thread:$0]  %s93_s1, 512, %s95_s21, [#allocation23], %s2261_s25, %s2261_s25, %s2262_s26  }
  0x12   :  { %s2263_s6 = smov [#allocation10]   ;;  %s2264_s30 = smov [#allocation15]  }
  0x13   :  { %s3156_s20 = sld [smem:[#allocation35_spill]]  ;;  %s71_s18 = sshll.u32 %s3134_s4, 4  ;;  %s72_s18 = int_to_ptr.hbm [resolvable:$true] %s71_s18 }
  0x14   :  { %s35_s24 = sshll.u32 %s3154_s23, 4  ;;  %s2265_s9 = smov [#allocation17]   ;;  %s36_s24 = int_to_ptr.vmem [resolvable:$true] %s35_s24 }
  0x15   :  { %38 = dma.vmem_to_smem %s36_s24, 16, %s2263_s6, [#allocation14]  }
  0x16   :  { %s44_s29 = sshll.u32 %s3155_s28, 4  ;;  %s2266_s1 = smov [#allocation20]   ;;  %s45_s29 = int_to_ptr.vmem [resolvable:$true] %s44_s29 }
  0x17   :  { %47 = dma.vmem_to_smem %s45_s29, 16, %s2264_s30, [#allocation16]  }
  0x18   :  { %74 = dma.hbm_to_smem %s72_s18, 16, %s2266_s1, [#allocation19]  }
  0x19   :  { %s53_s22 = sshll.u32 %s3156_s20, 4  ;;  %s79_s24 = sshll.u32 %s3135_s5, 4  ;;  %s54_s22 = int_to_ptr.hbm [resolvable:$true] %s53_s22  ;;  %s80_s24 = int_to_ptr.hbm [resolvable:$true] %s79_s24 }
  0x1a   :  { %56 = dma.hbm_to_smem %s54_s22, 16, %s2265_s9, [#allocation13]  }
  0x1b   :  { %s2267_s27 = smov [#allocation21]   ;;  %s125_s30 = sshll.u32 %s3147_s17, 4  ;;  %s126_s30 = int_to_ptr.hbm [resolvable:$true] %s125_s30 }
  0x1c   :  { %s81_s28 = sshll.u32 %s2267_s27, 4  ;;  %s2268_s4 = smov [#allocation24]   ;;  %s82_s28 = int_to_ptr.vmem [resolvable:$true] %s81_s28 }
  0x1d   :  { %87 = dma.hbm_to_vmem [thread:$0]  %s80_s24, 256, %s82_s28, [#allocation11], %s2261_s25, %s2261_s25, %s2262_s26  }
  0x1e   :  { %s127_s9 = sshll.u32 %s2268_s4, 4  ;;  %s128_s9 = int_to_ptr.vmem [resolvable:$true] %s127_s9 }
  0x1f   :  { %133 = dma.hbm_to_vmem [thread:$0]  %s126_s30, 512, %s128_s9, [#allocation23], %s2261_s25, %s2261_s25, %s2262_s26  }
  0x20   :  { %2225 = dma.done.wait [#allocation14], 16  }
  0x21   :  { %2226 = vsyncadd [#allocation14], 4294967280 }
  0x22   :  { %2227 = dma.done.wait [#allocation16], 16  }
  0x23   :  { %2228 = vsyncadd [#allocation16], 4294967280 }
  0x24   :  { %2229 = dma.done.wait [#allocation13], 16  }
  0x25   :  { %2230 = vsyncadd [#allocation13], 4294967280 }
  0x26   :  { %2231 = dma.done.wait [#allocation19], 32  }
  0x27   :  { %2232 = vsyncadd [#allocation19], 4294967264 }
  0x28   :  { %2233 = dma.done.wait [#allocation11], 256  }
  0x29   :  { %2234 = vsyncadd [#allocation11], 4294967040 }
  0x2a   :  { %2235 = dma.done.wait [#allocation23], 1024  }
  0x2b   :  { %2236 = vsyncadd [#allocation23], 4294966272 }
  0x2c   :  { %166 = sfence }
  0x2d   :  { %v2405_v0 = vld [vmem:[#allocation24 + $0x8] sm:$0xff]  ;;  %v194_v2 = vld [vmem:[%s3140_s10 + $0x10] sm:$0xff]  ;;  %v167_v3 = vld [vmem:[#allocation21] sm:$0xff]  ;;  %vm169_vm0 = vcmask 261120   ;;  %s2239_s22 = smov 0  }
  0x2e   :  { %v195_v1 = vld [vmem:[%s3140_s10 + $0x18] sm:$0xff]  ;;  %v193_v4 = vld [vmem:[%s3140_s10 + $0x8] sm:$0xff]  ;;  %170 = vst.msk [vmem:[#allocation2] sm:$0xff] %vm169_vm0, %v167_v3  ;;  %v172_v6 = vld [vmem:[#allocation22] sm:$0xff] }
  0x2f   :  { %221 = vmatpush.msra.mxu0 %v195_v1  ;;  %v168_v5 = vld [vmem:[#allocation21 + $0x8] sm:$0xff]  ;;  %v192_v7 = vld [vmem:[%s3140_s10] sm:$0xff]  ;;  %176 = vst.msk [vmem:[#allocation3] sm:$0xff] %vm169_vm0, %v172_v6  ;;  %v173_v8 = vld [vmem:[#allocation22 + $0x8] sm:$0xff] }
  0x30   :  { %171 = vst.msk [vmem:[#allocation2 + $0x8] sm:$0xff] %vm169_vm0, %v168_v5  ;;  %v174_v9 = vld [vmem:[#allocation22 + $0x10] sm:$0xff]  ;;  %v175_v10 = vld [vmem:[#allocation22 + $0x18] sm:$0xff]  ;;  %v2439_v17 = vld [vmem:[#allocation24] sm:$0xff] }
  0x31   :  { %222 = vmatpush.msra.mxu0 %v194_v2  ;;  %182 = vst.msk [vmem:[#allocation9] sm:$0xff] %vm169_vm0, %v167_v3  ;;  %v2442_v18 = vperm.slane %v2439_v17, 1 }
  0x32   :  { %183 = vst.msk [vmem:[#allocation9 + $0x8] sm:$0xff] %vm169_vm0, %v168_v5 }
  0x33   :  { %223 = vmatpush.msra.mxu0 %v193_v4  ;;  %177 = vst.msk [vmem:[#allocation3 + $0x8] sm:$0xff] %vm169_vm0, %v173_v8 }
  0x34   :  { %178 = vst.msk [vmem:[#allocation3 + $0x10] sm:$0xff] %vm169_vm0, %v174_v9 }
  0x35   :  { %224 = vmatpush.msra.mxu0 %v192_v7  ;;  %v2426_v11 = vld [vmem:[#allocation2] sm:$0xff]  ;;  %179 = vst.msk [vmem:[#allocation3 + $0x18] sm:$0xff] %vm169_vm0, %v175_v10 }
  0x36   :  { %242 = vst.msk [vmem:[#allocation5] sm:$0xff] %vm169_vm0, %v2426_v11  ;;  %v188_v13 = vld [vmem:[#allocation3] sm:$0xff] }
  0x37   :  { %v2429_v12 = vld [vmem:[#allocation2 + $0x8] sm:$0xff]  ;;  %1852 = vmatmul.msk.f32.vlgmr.msra.gmra.mxu0 %vm169_vm0, %v188_v13 }
  0x38   :  { %243 = vst.msk [vmem:[#allocation5 + $0x8] sm:$0xff] %vm169_vm0, %v2429_v12 }
  0x3a   :  { %v189_v14 = vld [vmem:[#allocation3 + $0x8] sm:$0xff] }
  0x3b   :  { %v190_v15 = vld [vmem:[#allocation3 + $0x10] sm:$0xff] }
  0x3c   :  { %v191_v16 = vld [vmem:[#allocation3 + $0x18] sm:$0xff] }
  0x3f   :  { %1853 = vmatmul.msk.f32.gmra.mxu0 %vm169_vm0, %v189_v14 }
  0x47   :  { %1854 = vmatmul.msk.f32.gmra.mxu0 %vm169_vm0, %v190_v15 }
  0x4f   :  { %1855 = vmatmul.msk.f32.gmra.mxu0 %vm169_vm0, %v191_v16 }
  0xb4   :  { %v226_v19 = vpop.f32.mrf.mxu0 }
  0xb5   :  { %v227_v20 = vadd.f32 %v226_v19, %v2442_v18 }
  0xb7   :  { %238 = vst.msk [vmem:[#allocation7] sm:$0xff] %vm169_vm0, %v227_v20 }
  0xbc   :  { %v229_v21 = vpop.f32.mrf.mxu0 }
  0xbd   :  { %v230_v22 = vadd.f32 %v229_v21, %v2442_v18 }
  0xbf   :  { %239 = vst.msk [vmem:[#allocation7 + $0x8] sm:$0xff] %vm169_vm0, %v230_v22 }
  0xc4   :  { %v232_v23 = vpop.f32.mrf.mxu0 }
  0xc5   :  { %v233_v24 = vadd.f32 %v232_v23, %v2442_v18 }
  0xc7   :  { %240 = vst.msk [vmem:[#allocation7 + $0x10] sm:$0xff] %vm169_vm0, %v233_v24 }
  0xcc   :  { %v235_v25 = vpop.f32.mrf.mxu0 }
  0xcd   :  { %v236_v26 = vadd.f32 %v235_v25, %v2442_v18 }
  0xcf   :  { %241 = vst.msk [vmem:[#allocation7 + $0x18] sm:$0xff] %vm169_vm0, %v236_v26 }
  0xd0 LB: > { %s250_s2 = sld [smem:[#allocation10 + %s2241_s22]]  ;;  %s254_s1 = scalar_lea.vmem [#allocation7], %s2241_s22  ;;  %vm261_vm1 = vcmask 253952   ;;  %s2241_s22 = sphi %s2239_s22, %s249_s22  }
  0xd1   : > { %s251_s23 = sld [smem:[#allocation15 + %s2241_s22]]  ;;  %s249_s22 = sadd.s32 1, %s2241_s22  }
  0xd2   : > { %p246_p0 = scmp.ge.s32.totalorder %s249_s22, 32  }
  0xd3   :  { %v268_v33 = vld [vmem:[%s3141_s11 + $0x18] sm:$0xff] (%p246_p0)  ;;  %v267_v34 = vld [vmem:[%s3141_s11 + $0x10] sm:$0xff] (%p246_p0)  ;;  %v266_v35 = vld [vmem:[%s3141_s11 + $0x8] sm:$0xff] (%p246_p0)  ;;  %v2269_v36 = vmov (%p246_p0), 0   ;;  %v2488_v45 = vperm.slane (%p246_p0), %v2405_v0, 2  ;;  %v277_v1 = vperm.slane (%p246_p0), %v2439_v17, 0 }
  0xd4   :  { %296 = vmatpush.msra.mxu1 (%p246_p0), %v268_v33  ;;  %2006 = vset.pattern.permute.xlu0 (%p246_p0), %v2269_v36  ;;  %v276_v37 = vld [vmem:[%s3142_s12 + $0x38] sm:$0xff] (%p246_p0)  ;;  %v460_v38 = vld [vmem:[%s3138_s8] sm:$0xff] (%p246_p0)  ;;  %v275_v39 = vld [vmem:[%s3142_s12 + $0x30] sm:$0xff] (%p246_p0)  ;;  %vm313_vm2 = vcmask (%p246_p0), 523264  }
  0xd5   :  { %2007 = vset.pattern.permute.xlu1 (%p246_p0), %v2269_v36  ;;  %2008 = vset.pattern.permute.xlu2 (%p246_p0), %v2269_v36  ;;  %v265_v40 = vld [vmem:[%s3141_s11] sm:$0xff] (%p246_p0)  ;;  %v274_v41 = vld [vmem:[%s3142_s12 + $0x28] sm:$0xff] (%p246_p0)  ;;  %v272_v44 = vld [vmem:[%s3142_s12 + $0x18] sm:$0xff] (%p246_p0) }
  0xd6   : > { %v255_v27 = vld [vmem:[%s254_s1] sm:$0x1]  ;;  %s252_s21 = scalar_lea.vmem [#allocation2], %s250_s2  ;;  %297 = vmatpush.msra.mxu1 (%p246_p0), %v267_v34  ;;  %328 = vmatpush.msra.mxu2 (%p246_p0), %v276_v37  ;;  %v271_v47 = vld [vmem:[%s3142_s12 + $0x10] sm:$0xff] (%p246_p0)  ;;  %v270_v48 = vld [vmem:[%s3142_s12 + $0x8] sm:$0xff] (%p246_p0) }
  0xd7   : > { %v253_v28 = vld [vmem:[%s252_s21] sm:$0x1]  ;;  %s258_s3 = scalar_lea.vmem [#allocation5], %s251_s23  ;;  %468 = vperm.xlu0 (%p246_p0), %2006, %v460_v38   ;;  %s2270_s21 = smov (%p246_p0), 96   ;;  %v461_v50 = vld [vmem:[%s3138_s8 + $0x8] sm:$0xff] (%p246_p0)  ;;  %v462_v51 = vld [vmem:[%s3138_s8 + $0x10] sm:$0xff] (%p246_p0) }
  0xd8   : > { %v256_v29 = vadd.f32 %v255_v27, %v253_v28  ;;  %v259_v30 = vld [vmem:[%s258_s3] sm:$0x1]  ;;  %298 = vmatpush.msra.mxu1 (%p246_p0), %v266_v35  ;;  %329 = vmatpush.msra.mxu2 (%p246_p0), %v275_v39  ;;  %v465_v52 = vld [vmem:[%s3138_s8 + $0x28] sm:$0xff] (%p246_p0)  ;;  %v463_v53 = vld [vmem:[%s3138_s8 + $0x18] sm:$0xff] (%p246_p0)  ;;  %v523_v39 = vperm.slane (%p246_p0), %v2405_v0, 3  ;;  %s2243_s23 = smov (%p246_p0), 0  }
  0xd9   :  { %v273_v43 = vld [vmem:[%s3142_s12 + $0x20] sm:$0xff] (%p246_p0)  ;;  %473 = vperm.xlu1 (%p246_p0), %2007, %v461_v50   ;;  %v522_v54 = vld [vmem:[%s3146_s16 + $0x18] sm:$0xff] (%p246_p0)  ;;  %v521_v55 = vld [vmem:[%s3146_s16 + $0x10] sm:$0xff] (%p246_p0)  ;;  %483 = vperm.xlu2 (%p246_p0), %2008, %v463_v53  }
  0xda   : > { %v257_v31 = vmax.f32 %v256_v29, 0.0  ;;  %248 = sbr.rel (!%p246_p0) target bundleno = 208 (0xd0), region = 182  ;;  %299 = vmatpush.msra.mxu1 (%p246_p0), %v265_v40  ;;  %330 = vmatpush.msra.mxu2 (%p246_p0), %v274_v41  ;;  %v269_v49 = vld [vmem:[%s3142_s12] sm:$0xff] (%p246_p0)  ;;  %v520_v56 = vld [vmem:[%s3146_s16 + $0x8] sm:$0xff] (%p246_p0)  ;;  %v2540_v20 = vld [vmem:[#allocation3] sm:$0xff] (%p246_p0) }
  0xdb   :  { %554 = vmatpush.msra.mxu3 (%p246_p0), %v522_v54  ;;  %v519_v58 = vld [vmem:[%s3146_s16] sm:$0xff] (%p246_p0)  ;;  %v2542_v21 = vld [vmem:[#allocation3 + $0x8] sm:$0xff] (%p246_p0)  ;;  %v2547_v24 = vld [vmem:[#allocation3 + $0x18] sm:$0xff] (%p246_p0) }
  0xdc   : > { %v260_v32 = vadd.f32 %v259_v30, %v257_v31  ;;  %331 = vmatpush.msra.mxu2 (%p246_p0), %v273_v43  ;;  %v464_v59 = vld [vmem:[%s3138_s8 + $0x20] sm:$0xff] (%p246_p0)  ;;  %v582_v26 = vld [vmem:[%s3137_s7 + $0x8] sm:$0xff] (%p246_p0)  ;;  %v583_v27 = vld [vmem:[%s3137_s7 + $0x10] sm:$0xff] (%p246_p0) }
  0xdd   :  { %555 = vmatpush.msra.mxu3 (%p246_p0), %v521_v55  ;;  %v2544_v22 = vld [vmem:[#allocation3 + $0x10] sm:$0xff] (%p246_p0)  ;;  %v584_v28 = vld [vmem:[%s3137_s7 + $0x18] sm:$0xff] (%p246_p0)  ;;  %586 = vst.msk [vmem:[#allocation4 + $0x8] sm:$0xff] (%p246_p0), %vm169_vm0, %v582_v26  ;;  %v591_v31 = vld [vmem:[%s3143_s13 + $0x10] sm:$0xff] (%p246_p0) }
  0xde   : > { %262 = vst.msk [vmem:[%s258_s3] sm:$0x1] %vm261_vm1, %v260_v32  ;;  %332 = vmatpush.msra.mxu2 (%p246_p0), %v272_v44  ;;  %v581_v25 = vld [vmem:[%s3137_s7] sm:$0xff] (%p246_p0)  ;;  %v592_v29 = vld [vmem:[%s3143_s13 + $0x18] sm:$0xff] (%p246_p0)  ;;  %v590_v32 = vld [vmem:[%s3143_s13 + $0x8] sm:$0xff] (%p246_p0) }
  0xdf   :  { %504 = vrot.lane.b32.xlu0 %v2488_v45, %s2270_s21  ;;  %556 = vmatpush.msra.mxu3 %v520_v56  ;;  %585 = vst.msk [vmem:[#allocation4] sm:$0xff] %vm169_vm0, %v581_v25  ;;  %v589_v34 = vld [vmem:[%s3143_s13] sm:$0xff]  ;;  %v2271_v56 = vmov 32.0  }
  0xe0   :  { %333 = vmatpush.msra.mxu2 %v271_v47  ;;  %624 = vmatpush.msrb.mxu1 %v592_v29  ;;  %587 = vst.msk [vmem:[#allocation4 + $0x10] sm:$0xff] %vm169_vm0, %v583_v27  ;;  %2009 = vrcp.f32 %v2271_v56  ;;  %v394_v29 = vperm.slane %v2439_v17, 2 }
  0xe1   :  { %478 = vperm.xlu1 %2007, %v462_v51   ;;  %557 = vmatpush.msra.mxu3 %v519_v58  ;;  %588 = vst.msk [vmem:[#allocation4 + $0x18] sm:$0xff] %vm169_vm0, %v584_v28 }
  0xe2   :  { %334 = vmatpush.msra.mxu2 %v270_v48  ;;  %488 = vperm.xlu2 %2008, %v464_v59  }
  0xe3   :  { %625 = vmatpush.msrb.mxu1 %v591_v31 }
  0xe4   :  { %335 = vmatpush.msra.mxu2 %v269_v49 }
  0xe5   :  { %v263_v42 = vld [vmem:[#allocation5] sm:$0xff]  ;;  %v264_v46 = vld [vmem:[#allocation5 + $0x8] sm:$0xff]  ;;  %626 = vmatpush.msrb.mxu1 %v590_v32 }
  0xe6   :  { %1856 = vmatmul.msk.f32.vlgmr.msra.gmra.mxu1 %vm169_vm0, %v263_v42 }
  0xe7   :  { %493 = vperm.xlu0 %2006, %v465_v52   ;;  %627 = vmatpush.msrb.mxu1 %v589_v34 }
  0xe9   :  { %310 = vrot.lane.b32.xlu1 %v2442_v18, %s2270_s21 }
  0xee   :  { %1857 = vmatmul.msk.f32.gmra.mxu1 %vm169_vm0, %v264_v46 }
 0x133   :  { %v484_v19 = vpop.permute.xlu2 %483 }
 0x134   :  { %v500_v23 = vmul.f32 %v2488_v45, %v484_v19 }
 0x13c   :  { %v489_v35 = vpop.permute.xlu2 %488 }
 0x13d   :  { %v501_v38 = vmul.f32 %v2488_v45, %v489_v35 }
 0x149   :  { %v469_v57 = vpop.permute.xlu0 %468 }
 0x14a   :  { %v497_v60 = vmul.f32 %v2488_v45, %v469_v57  ;;  %v2010_v57 = vpop.eup %2009 }
 0x14b   :  { %v474_v8 = vpop.permute.xlu1 %473  ;;  %vm354_vm3 = vweird.f32 %v2010_v57 }
 0x14c   :  { %v498_v9 = vmul.f32 %v2488_v45, %v474_v8 }
 0x151   :  { %v505_v61 = vpop.permute.xlu0 %504 }
 0x152   :  { %v507_v62 = vadd.f32 %v505_v61, %v497_v60  ;;  %v508_v10 = vadd.f32 %v505_v61, %v498_v9  ;;  %v510_v30 = vadd.f32 %v505_v61, %v500_v23  ;;  %v511_v40 = vadd.f32 %v505_v61, %v501_v38 }
 0x153   :  { %v479_v14 = vpop.permute.xlu1 %478  ;;  %v350_v60 = vmul.f32 32.0, %v2010_v57 }
 0x154   :  { %v513_v63 = vmax.f32 %v507_v62, 0.0  ;;  %v514_v13 = vmax.f32 %v508_v10, 0.0  ;;  %v499_v15 = vmul.f32 %v2488_v45, %v479_v14  ;;  %v516_v33 = vmax.f32 %v510_v30, 0.0 }
 0x155   :  { %v517_v42 = vmax.f32 %v511_v40, 0.0  ;;  %v2594_v14 = vperm.slane %v2439_v17, 3 }
 0x156   :  { %1860 = vmatmul.msk.f32.vlgmr.msra.gmra.mxu3 %vm169_vm0, %v513_v63  ;;  %v509_v16 = vadd.f32 %v505_v61, %v499_v15  ;;  %v2597_v15 = vperm.slane %v2439_v17, 6 }
 0x158   :  { %v515_v18 = vmax.f32 %v509_v16, 0.0 }
 0x159   :  { %v494_v37 = vpop.permute.xlu0 %493 }
 0x15a   :  { %v502_v41 = vmul.f32 %v2488_v45, %v494_v37 }
 0x15b   :  { %v311_v47 = vpop.permute.xlu1 %310 }
 0x15c   :  { %v512_v46 = vadd.f32 %v505_v61, %v502_v41  ;;  %v351_v61 = vsub.f32 1.0, %v350_v60 }
 0x15e   :  { %1861 = vmatmul.msk.f32.gmra.mxu3 %vm169_vm0, %v514_v13  ;;  %v518_v48 = vmax.f32 %v512_v46, 0.0  ;;  %v352_v62 = vmul.f32 %v2010_v57, %v351_v61 }
 0x160   :  { %v353_v63 = vadd.f32 %v2010_v57, %v352_v62 }
 0x163   :  { %v301_v2 = vpop.f32.mrf.mxu1 }
 0x164   :  { %v302_v3 = vadd.f32 %v301_v2, %v277_v1 }
 0x166   :  { %v307_v4 = vmax.f32 %v302_v3, 0.0  ;;  %1862 = vmatmul.msk.f32.gmra.mxu3 %vm169_vm0, %v515_v18 }
 0x168   :  { %1858 = vmatmul.msk.f32.vlgmr.msra.gmra.mxu2 %vm313_vm2, %v307_v4 }
 0x16b   :  { %v304_v5 = vpop.f32.mrf.mxu1 }
 0x16c   :  { %v305_v6 = vadd.f32 %v304_v5, %v277_v1  ;;  %v2588_v1 = vsel %vm354_vm3, %v2010_v57, %v353_v63 }
 0x16e   :  { %v308_v7 = vmax.f32 %v305_v6, 0.0  ;;  %1863 = vmatmul.msk.f32.gmra.mxu3 %vm169_vm0, %v516_v33 }
 0x170   :  { %1859 = vmatmul.msk.f32.gmra.mxu2 %vm313_vm2, %v308_v7 }
 0x176   :  { %1864 = vmatmul.msk.f32.gmra.mxu3 %vm169_vm0, %v517_v42 }
 0x17e   :  { %1865 = vmatmul.msk.f32.gmra.mxu3 %vm169_vm0, %v518_v48 }
 0x1d9   :  { %v559_v43 = vpop.f32.mrf.mxu3 }
 0x1da   :  { %v560_v44 = vadd.f32 %v559_v43, %v523_v39 }
 0x1dc   :  { %1866 = vmatmul.msk.f32.vlgmr.msrb.gmra.mxu1 %vm169_vm0, %v560_v44 }
 0x1e1   :  { %v562_v54 = vpop.f32.mrf.mxu3 }
 0x1e2   :  { %v563_v55 = vadd.f32 %v562_v54, %v523_v39  ;;  %v2272_v54 = vmov 16.0  }
 0x1e4   :  { %1867 = vmatmul.msk.f32.gmra.mxu1 %vm169_vm0, %v563_v55 }
 0x1e9   :  { %v565_v58 = vpop.f32.mrf.mxu3 }
 0x1ea   :  { %v566_v59 = vadd.f32 %v565_v58, %v523_v39 }
 0x1eb   :  { %v337_v49 = vpop.f32.mrf.mxu2 }
 0x1ec   :  { %v338_v50 = vadd.f32 %v337_v49, %v311_v47  ;;  %1868 = vmatmul.msk.f32.gmra.mxu1 %vm169_vm0, %v566_v59 }
 0x1ee   :  { %v343_v51 = vsel %vm169_vm0, %v338_v50, 0.0 }
 0x1ef   :  { %344 = vadd.xlane.f32.xlu2 %v343_v51 }
 0x1f1   :  { %v568_v2 = vpop.f32.mrf.mxu3 }
 0x1f2   :  { %v569_v4 = vadd.f32 %v568_v2, %v523_v39 }
 0x1f3   :  { %v340_v52 = vpop.f32.mrf.mxu2 }
 0x1f4   :  { %v341_v53 = vadd.f32 %v340_v52, %v311_v47  ;;  %1869 = vmatmul.msk.f32.gmra.mxu1 %vm169_vm0, %v569_v4 }
 0x1f6   :  { %v346_v45 = vsel %vm169_vm0, %v341_v53, 0.0 }
 0x1f7   :  { %347 = vadd.xlane.f32.xlu0 %v346_v45 }
 0x1f9   :  { %v571_v9 = vpop.f32.mrf.mxu3 }
 0x1fa   :  { %v572_v13 = vadd.f32 %v571_v9, %v523_v39 }
 0x1fc   :  { %1870 = vmatmul.msk.f32.gmra.mxu1 %vm169_vm0, %v572_v13 }
 0x201   :  { %v574_v27 = vpop.f32.mrf.mxu3 }
 0x202   :  { %v575_v28 = vadd.f32 %v574_v27, %v523_v39 }
 0x204   :  { %1871 = vmatmul.msk.f32.gmra.mxu1 %vm169_vm0, %v575_v28 }
 0x20b   :  { %453 = vrot.lane.b32.xlu0 %v2594_v14, %s2270_s21 }
 0x259   :  { %v629_v18 = vpop.f32.mrf.mxu1 }
 0x25a   :  { %v630_v19 = vadd.f32 %v629_v18, %v2597_v15 }
 0x25c   :  { %647 = vst.msk [vmem:[#allocation8] sm:$0xff] %vm169_vm0, %v630_v19 }
 0x261   :  { %v632_v30 = vpop.f32.mrf.mxu1 }
 0x262   :  { %v345_v3 = vpop.xlane.xlu2 %344  ;;  %v633_v32 = vadd.f32 %v632_v30, %v2597_v15 }
 0x263   :  { %v356_v5 = vmul.f32 %v2588_v1, %v345_v3 }
 0x264   :  { %648 = vst.msk [vmem:[#allocation8 + $0x8] sm:$0xff] %vm169_vm0, %v633_v32 }
 0x265   :  { %v358_v6 = vsub.f32 %v338_v50, %v356_v5 }
 0x267   :  { %v360_v7 = vmul.f32 %v358_v6, %v358_v6 }
 0x269   :  { %v362_v8 = vsel %vm169_vm0, %v360_v7, 0.0  ;;  %v635_v31 = vpop.f32.mrf.mxu1 }
 0x26a   :  { %v348_v10 = vpop.xlane.xlu0 %347  ;;  %363 = vadd.xlane.f32.xlu1 %v362_v8  ;;  %v636_v33 = vadd.f32 %v635_v31, %v2597_v15 }
 0x26b   :  { %v357_v16 = vmul.f32 %v2588_v1, %v348_v10 }
 0x26c   :  { %649 = vst.msk [vmem:[#allocation8 + $0x10] sm:$0xff] %vm169_vm0, %v636_v33 }
 0x26d   :  { %v359_v23 = vsub.f32 %v341_v53, %v357_v16 }
 0x26f   :  { %v361_v25 = vmul.f32 %v359_v23, %v359_v23 }
 0x271   :  { %v365_v26 = vsel %vm169_vm0, %v361_v25, 0.0  ;;  %v638_v39 = vpop.f32.mrf.mxu1 }
 0x272   :  { %366 = vadd.xlane.f32.xlu2 %v365_v26  ;;  %v639_v3 = vadd.f32 %v638_v39, %v2597_v15 }
 0x274   :  { %650 = vst.msk [vmem:[#allocation8 + $0x18] sm:$0xff] %vm169_vm0, %v639_v3 }
 0x279   :  { %v641_v47 = vpop.f32.mrf.mxu1 }
 0x27a   :  { %v642_v4 = vadd.f32 %v641_v47, %v2597_v15  ;;  %v653_v47 = vld [vmem:[#allocation4] sm:$0xff] }
 0x27b   :  { %657 = vst.msk [vmem:[#allocation6] sm:$0xff] %vm169_vm0, %v653_v47 }
 0x27c   :  { %651 = vst.msk [vmem:[#allocation8 + $0x20] sm:$0xff] %vm169_vm0, %v642_v4 }
 0x281   :  { %v644_v55 = vpop.f32.mrf.mxu1 }
 0x282   :  { %v645_v57 = vadd.f32 %v644_v55, %v2597_v15 }
 0x284   :  { %652 = vst.msk [vmem:[#allocation8 + $0x28] sm:$0xff] %vm169_vm0, %v645_v57 }
 0x28a   :  { %398 = vrot.lane.b32.xlu2 %v394_v29, %s2270_s21 }
 0x2dd   :  { %v364_v34 = vpop.xlane.xlu1 %363 }
 0x2de   :  { %v368_v35 = vmul.f32 %v364_v34, %v2588_v1 }
 0x2e0   :  { %v370_v37 = vadd.f32 1e-05, %v368_v35 }
 0x2e2   :  { %2011 = vrsqrt.f32 %v370_v37  ;;  %vm378_vm5 = vweird.f32 %v370_v37 }
 0x2e5   :  { %v367_v38 = vpop.xlane.xlu2 %366 }
 0x2e6   :  { %v369_v40 = vmul.f32 %v367_v38, %v2588_v1 }
 0x2e8   :  { %v2012_v41 = vpop.eup %2011  ;;  %v371_v42 = vadd.f32 1e-05, %v369_v40 }
 0x2e9   :  { %v373_v43 = vmul.f32 %v2012_v41, %v370_v37  ;;  %vm379_vm4 = vweird.f32 %v2012_v41 }
 0x2ea   :  { %2013 = vrsqrt.f32 %v371_v42  ;;  %vm380_vm6 = vmor %vm378_vm5, %vm379_vm4  ;;  %vm388_vm8 = vweird.f32 %v371_v42 }
 0x2eb   :  { %v374_v44 = vmul.f32 %v2012_v41, %v373_v43  ;;  %2015 = vrcp.f32 %v2272_v54 }
 0x2ed   :  { %v375_v46 = vmul.f32 0.5, %v374_v44  ;;  %v399_v63 = vpop.permute.xlu2 %398 }
 0x2ef   :  { %v376_v48 = vsub.f32 1.5, %v375_v46 }
 0x2f0   :  { %v2014_v49 = vpop.eup %2013 }
 0x2f1   :  { %v383_v50 = vmul.f32 %v2014_v49, %v371_v42  ;;  %v377_v51 = vmul.f32 %v2012_v41, %v376_v48  ;;  %vm389_vm7 = vweird.f32 %v2014_v49  ;;  %v2016_v61 = vpop.eup %2015  ;;  %v654_v48 = vld [vmem:[#allocation4 + $0x8] sm:$0xff] }
 0x2f2   :  { %vm390_vm9 = vmor %vm388_vm8, %vm389_vm7  ;;  %vm417_vm10 = vweird.f32 %v2016_v61  ;;  %658 = vst.msk [vmem:[#allocation6 + $0x8] sm:$0xff] %vm169_vm0, %v654_v48 }
 0x2f3   :  { %v384_v52 = vmul.f32 %v2014_v49, %v383_v50  ;;  %v381_v53 = vsel %vm380_vm6, %v2012_v41, %v377_v51  ;;  %v656_v51 = vld [vmem:[#allocation4 + $0x18] sm:$0xff] }
 0x2f4   :  { %v392_v56 = vmul.f32 %v381_v53, %v358_v6  ;;  %v413_v6 = vmul.f32 16.0, %v2016_v61  ;;  %660 = vst.msk [vmem:[#allocation6 + $0x18] sm:$0xff] %vm169_vm0, %v656_v51 }
 0x2f5   :  { %v385_v45 = vmul.f32 0.5, %v384_v52 }
 0x2f6   :  { %v395_v60 = vmul.f32 %v394_v29, %v392_v56  ;;  %v414_v9 = vsub.f32 1.0, %v413_v6 }
 0x2f7   :  { %v386_v58 = vsub.f32 1.5, %v385_v45 }
 0x2f8   :  { %v401_v7 = vadd.f32 %v399_v63, %v395_v60  ;;  %v415_v19 = vmul.f32 %v2016_v61, %v414_v9 }
 0x2f9   :  { %v387_v59 = vmul.f32 %v2014_v49, %v386_v58 }
 0x2fa   :  { %v403_v10 = vsel %vm169_vm0, %v401_v7, 0.0  ;;  %v416_v26 = vadd.f32 %v2016_v61, %v415_v19 }
 0x2fb   :  { %v391_v62 = vsel %vm390_vm9, %v2014_v49, %v387_v59  ;;  %v655_v49 = vld [vmem:[#allocation4 + $0x10] sm:$0xff] }
 0x2fc   :  { %v393_v2 = vmul.f32 %v391_v62, %v359_v23  ;;  %659 = vst.msk [vmem:[#allocation6 + $0x10] sm:$0xff] %vm169_vm0, %v655_v49 }
 0x2fe   :  { %v396_v5 = vmul.f32 %v394_v29, %v393_v2  ;;  %v2623_v29 = vsel %vm417_vm10, %v2016_v61, %v416_v26 }
 0x300   :  { %v402_v8 = vadd.f32 %v399_v63, %v396_v5  ;;  %v454_v63 = vpop.permute.xlu0 %453 }
 0x302   :  { %v404_v13 = vsel %vm169_vm0, %v402_v8, 0.0 }
 0x303   :  { %v405_v16 = vadd.f32 %v404_v13, %v403_v10 }
 0x305   :  { %v406_v18 = vrot.slane %v405_v16, 4 }
 0x307   :  { %v407_v23 = vadd.f32 %v406_v18, %v405_v16 }
 0x309   :  { %v408_v25 = vrot.slane %v407_v23, 2 }
 0x30b   :  { %v409_v27 = vadd.f32 %v408_v25, %v407_v23 }
 0x30d   :  { %v410_v28 = vrot.slane %v409_v27, 1 }
 0x30f   :  { %v411_v30 = vadd.f32 %v410_v28, %v409_v27 }
 0x311   :  { %v419_v31 = vmul.f32 %v2623_v29, %v411_v30 }
 0x313   :  { %v420_v32 = vmul.f32 %v419_v31, %v2439_v17 }
 0x315   :  { %v421_v33 = vperm.slane %v420_v32, 4 }
 0x317   :  { %v422_v34 = vsub.f32 %v401_v7, %v421_v33  ;;  %v423_v35 = vsub.f32 %v402_v8, %v421_v33 }
 0x319   :  { %v424_v37 = vmul.f32 %v422_v34, %v422_v34  ;;  %v425_v38 = vmul.f32 %v423_v35, %v423_v35 }
 0x31b   :  { %v426_v39 = vsel %vm169_vm0, %v424_v37, 0.0  ;;  %v427_v40 = vsel %vm169_vm0, %v425_v38, 0.0 }
 0x31c   :  { %v428_v41 = vadd.f32 %v427_v40, %v426_v39 }
 0x31e   :  { %v429_v42 = vrot.slane %v428_v41, 4 }
 0x320   :  { %v430_v43 = vadd.f32 %v429_v42, %v428_v41 }
 0x322   :  { %v431_v44 = vrot.slane %v430_v43, 2 }
 0x324   :  { %v432_v46 = vadd.f32 %v431_v44, %v430_v43 }
 0x326   :  { %v433_v50 = vrot.slane %v432_v46, 1 }
 0x328   :  { %v434_v52 = vadd.f32 %v433_v50, %v432_v46 }
 0x32a   :  { %v435_v53 = vmul.f32 %v434_v52, %v2623_v29 }
 0x32c   :  { %v436_v45 = vadd.f32 1e-05, %v435_v53 }
 0x32e   :  { %2017 = vrsqrt.f32 %v436_v45  ;;  %vm443_vm12 = vweird.f32 %v436_v45 }
 0x334   :  { %v2018_v54 = vpop.eup %2017 }
 0x335   :  { %v438_v55 = vmul.f32 %v2018_v54, %v436_v45  ;;  %vm444_vm11 = vweird.f32 %v2018_v54 }
 0x336   :  { %vm445_vm13 = vmor %vm443_vm12, %vm444_vm11 }
 0x337   :  { %v439_v56 = vmul.f32 %v2018_v54, %v438_v55 }
 0x339   :  { %v440_v57 = vmul.f32 0.5, %v439_v56 }
 0x33b   :  { %v441_v58 = vsub.f32 1.5, %v440_v57 }
 0x33d   :  { %v442_v59 = vmul.f32 %v2018_v54, %v441_v58 }
 0x33f   :  { %v446_v60 = vsel %vm445_vm13, %v2018_v54, %v442_v59 }
 0x340   :  { %v447_v61 = vmul.f32 %v446_v60, %v422_v34  ;;  %v448_v62 = vmul.f32 %v446_v60, %v423_v35 }
 0x342   :  { %v450_v2 = vmul.f32 %v2594_v14, %v447_v61  ;;  %v451_v3 = vmul.f32 %v2594_v14, %v448_v62 }
 0x344   :  { %v456_v4 = vadd.f32 %v454_v63, %v450_v2  ;;  %v457_v5 = vadd.f32 %v454_v63, %v451_v3 }
 0x346   :  { %v2637_v6 = vadd.f32 %v456_v4, %v2426_v11  ;;  %v2640_v7 = vadd.f32 %v457_v5, %v2429_v12 }
 0x347 LB: > { %s667_s1 = sld [smem:[#allocation17 + %s2245_s23]]  ;;  %s671_s24 = scalar_lea.vmem [#allocation8], %s2245_s23  ;;  %s2245_s23 = sphi %s2243_s23, %s666_s23  }
 0x348   : > { %s668_s3 = sld [smem:[#allocation18 + %s2245_s23]]  ;;  %v672_v8 = vld [vmem:[%s671_s24] sm:$0x1]  ;;  %s666_s23 = sadd.s32 1, %s2245_s23  }
 0x349   : > { %p663_p1 = scmp.ge.s32.totalorder %s666_s23, 48  }
 0x34a   :  { %v687_v11 = vld [vmem:[%s3144_s14 + $0x18] sm:$0xff] (%p663_p1)  ;;  %v686_v12 = vld [vmem:[%s3144_s14 + $0x10] sm:$0xff] (%p663_p1)  ;;  %743 = vrot.lane.b32.xlu0 (%p663_p1), %v2597_v15, %s2270_s21  ;;  %958 = vst.msk [vmem:[#allocation2] sm:$0xff] (%p663_p1), %vm169_vm0, %v2637_v6  ;;  %v685_v18 = vld [vmem:[%s3144_s14 + $0x8] sm:$0xff] (%p663_p1)  ;;  %v696_v37 = vperm.slane (%p663_p1), %v2439_v17, 5  ;;  %s2273_s4 = smov (%p663_p1), 32  }
 0x34b   :  { %721 = vmatpush.msrb.mxu2 (%p663_p1), %v687_v11  ;;  %959 = vst.msk [vmem:[#allocation2 + $0x8] sm:$0xff] (%p663_p1), %vm169_vm0, %v2640_v7  ;;  %v695_v19 = vld [vmem:[%s3145_s15 + $0x38] sm:$0xff] (%p663_p1)  ;;  %v694_v15 = vld [vmem:[%s3145_s15 + $0x30] sm:$0xff] (%p663_p1)  ;;  %v684_v23 = vld [vmem:[%s3144_s14] sm:$0xff] (%p663_p1) }
 0x34c   :  { %766 = vmatpush.msrb.mxu0 (%p663_p1), %v695_v19  ;;  %v693_v25 = vld [vmem:[%s3145_s15 + $0x28] sm:$0xff] (%p663_p1)  ;;  %v692_v27 = vld [vmem:[%s3145_s15 + $0x20] sm:$0xff] (%p663_p1)  ;;  %v691_v28 = vld [vmem:[%s3145_s15 + $0x18] sm:$0xff] (%p663_p1) }
 0x34d   : > { %s669_s27 = scalar_lea.vmem [#allocation4], %s667_s1  ;;  %722 = vmatpush.msrb.mxu2 (%p663_p1), %v686_v12  ;;  %v690_v33 = vld [vmem:[%s3145_s15 + $0x10] sm:$0xff] (%p663_p1)  ;;  %v689_v34 = vld [vmem:[%s3145_s15 + $0x8] sm:$0xff] (%p663_p1)  ;;  %v688_v35 = vld [vmem:[%s3145_s15] sm:$0xff] (%p663_p1) }
 0x34e   : > { %v670_v9 = vld [vmem:[%s669_s27] sm:$0x1]  ;;  %s675_s28 = scalar_lea.vmem [#allocation6], %s668_s3  ;;  %767 = vmatpush.msrb.mxu0 (%p663_p1), %v694_v15 }
 0x34f   : > { %v673_v10 = vadd.f32 %v672_v8, %v670_v9  ;;  %v676_v14 = vld [vmem:[%s675_s28] sm:$0x1]  ;;  %723 = vmatpush.msrb.mxu2 (%p663_p1), %v685_v18 }
 0x350   :  { %768 = vmatpush.msrb.mxu0 (%p663_p1), %v693_v25 }
 0x351   : > { %v674_v13 = vmax.f32 %v673_v10, 0.0  ;;  %665 = sbr.rel (!%p663_p1) target bundleno = 839 (0x347), region = 193  ;;  %724 = vmatpush.msrb.mxu2 (%p663_p1), %v684_v23 }
 0x352   :  { %769 = vmatpush.msrb.mxu0 (%p663_p1), %v692_v27 }
 0x353   : > { %v677_v16 = vadd.f32 %v676_v14, %v674_v13 }
 0x354   :  { %770 = vmatpush.msrb.mxu0 (%p663_p1), %v691_v28  ;;  %v2723_v28 = vperm.slane (%p663_p1), %v2439_v17, 7 }
 0x355   : > { %679 = vst.msk [vmem:[%s675_s28] sm:$0x1] %vm261_vm1, %v677_v16 }
 0x356   :  { %771 = vmatpush.msrb.mxu0 %v690_v33 }
 0x358   :  { %772 = vmatpush.msrb.mxu0 %v689_v34 }
 0x35a   :  { %773 = vmatpush.msrb.mxu0 %v688_v35 }
 0x35c   :  { %v680_v26 = vld [vmem:[#allocation6] sm:$0xff]  ;;  %v681_v30 = vld [vmem:[#allocation6 + $0x8] sm:$0xff]  ;;  %v682_v31 = vld [vmem:[#allocation6 + $0x10] sm:$0xff] }
 0x35d   :  { %1872 = vmatmul.msk.f32.vlgmr.msrb.gmra.mxu2 %vm169_vm0, %v680_v26  ;;  %v683_v32 = vld [vmem:[#allocation6 + $0x18] sm:$0xff] }
 0x365   :  { %1873 = vmatmul.msk.f32.gmra.mxu2 %vm169_vm0, %v681_v30  ;;  %v2728_v30 = vperm.slane %v2405_v0, 0 }
 0x36d   :  { %1874 = vmatmul.msk.f32.gmra.mxu2 %vm169_vm0, %v682_v31 }
 0x375   :  { %1875 = vmatmul.msk.f32.gmra.mxu2 %vm169_vm0, %v683_v32 }
 0x3bc   :  { %v744_v51 = vpop.permute.xlu0 %743 }
 0x3e0   :  { %v726_v38 = vpop.f32.mrf.mxu2 }
 0x3e1   :  { %v727_v39 = vadd.f32 %v726_v38, %v696_v37 }
 0x3e3   :  { %v738_v40 = vmax.f32 %v727_v39, 0.0 }
 0x3e5   :  { %1876 = vmatmul.msk.f32.vlgmr.msrb.gmra.mxu0 %vm313_vm2, %v738_v40 }
 0x3e8   :  { %v729_v41 = vpop.f32.mrf.mxu2 }
 0x3e9   :  { %v730_v42 = vadd.f32 %v729_v41, %v696_v37 }
 0x3eb   :  { %v739_v43 = vmax.f32 %v730_v42, 0.0 }
 0x3ed   :  { %1877 = vmatmul.msk.f32.gmra.mxu0 %vm313_vm2, %v739_v43 }
 0x3f0   :  { %v732_v44 = vpop.f32.mrf.mxu2 }
 0x3f1   :  { %v733_v46 = vadd.f32 %v732_v44, %v696_v37 }
 0x3f3   :  { %v740_v47 = vmax.f32 %v733_v46, 0.0 }
 0x3f5   :  { %1878 = vmatmul.msk.f32.gmra.mxu0 %vm313_vm2, %v740_v47 }
 0x3f8   :  { %v735_v48 = vpop.f32.mrf.mxu2 }
 0x3f9   :  { %v736_v49 = vadd.f32 %v735_v48, %v696_v37 }
 0x3fb   :  { %v741_v50 = vmax.f32 %v736_v49, 0.0 }
 0x3fd   :  { %1879 = vmatmul.msk.f32.gmra.mxu0 %vm313_vm2, %v741_v50 }
 0x462   :  { %v775_v52 = vpop.f32.mrf.mxu0 }
 0x463   :  { %v776_v53 = vadd.f32 %v775_v52, %v744_v51 }
 0x465   :  { %v787_v45 = vsel %vm169_vm0, %v776_v53, 0.0 }
 0x466   :  { %788 = vadd.xlane.f32.xlu0 %v787_v45 }
 0x46a   :  { %v778_v54 = vpop.f32.mrf.mxu0 }
 0x46b   :  { %v779_v55 = vadd.f32 %v778_v54, %v744_v51 }
 0x46d   :  { %v790_v56 = vsel %vm169_vm0, %v779_v55, 0.0 }
 0x46e   :  { %791 = vadd.xlane.f32.xlu1 %v790_v56 }
 0x472   :  { %v781_v57 = vpop.f32.mrf.mxu0 }
 0x473   :  { %v782_v58 = vadd.f32 %v781_v57, %v744_v51 }
 0x475   :  { %v793_v59 = vsel %vm169_vm0, %v782_v58, 0.0 }
 0x476   :  { %794 = vadd.xlane.f32.xlu1 %v793_v59 }
 0x47a   :  { %v784_v60 = vpop.f32.mrf.mxu0  ;;  %968 = vrot.lane.b32.xlu0 %v2640_v7, %s2273_s4 }
 0x47b   :  { %v785_v61 = vadd.f32 %v784_v60, %v744_v51 }
 0x47d   :  { %v796_v62 = vsel %vm169_vm0, %v785_v61, 0.0 }
 0x47e   :  { %797 = vadd.xlane.f32.xlu2 %v796_v62 }
 0x4d9   :  { %v789_v63 = vpop.xlane.xlu0 %788 }
 0x4da   :  { %v799_v2 = vmul.f32 %v789_v63, %v2588_v1 }
 0x4dc   :  { %v2699_v3 = vsub.f32 %v776_v53, %v799_v2 }
 0x4de   :  { %v807_v4 = vmul.f32 %v2699_v3, %v2699_v3 }
 0x4e0   :  { %v811_v5 = vsel %vm169_vm0, %v807_v4, 0.0 }
 0x4e1   :  { %v792_v8 = vpop.xlane.xlu1 %791  ;;  %812 = vadd.xlane.f32.xlu2 %v811_v5 }
 0x4e2   :  { %v800_v9 = vmul.f32 %v792_v8, %v2588_v1 }
 0x4e4   :  { %v2705_v10 = vsub.f32 %v779_v55, %v800_v9 }
 0x4e6   :  { %v808_v14 = vmul.f32 %v2705_v10, %v2705_v10 }
 0x4e8   :  { %v814_v13 = vsel %vm169_vm0, %v808_v14, 0.0 }
 0x4e9   :  { %815 = vadd.xlane.f32.xlu1 %v814_v13  ;;  %v795_v16 = vpop.xlane.xlu1 %794 }
 0x4ea   :  { %v801_v11 = vmul.f32 %v795_v16, %v2588_v1 }
 0x4ec   :  { %v2711_v12 = vsub.f32 %v782_v58, %v801_v11 }
 0x4ee   :  { %v809_v18 = vmul.f32 %v2711_v12, %v2711_v12 }
 0x4f0   :  { %v817_v19 = vsel %vm169_vm0, %v809_v18, 0.0 }
 0x4f1   :  { %v798_v15 = vpop.xlane.xlu2 %797  ;;  %818 = vadd.xlane.f32.xlu2 %v817_v19 }
 0x4f2   :  { %v802_v23 = vmul.f32 %v798_v15, %v2588_v1 }
 0x4f4   :  { %v2717_v25 = vsub.f32 %v785_v61, %v802_v23 }
 0x4f6   :  { %v810_v26 = vmul.f32 %v2717_v25, %v2717_v25 }
 0x4f8   :  { %v820_v27 = vsel %vm169_vm0, %v810_v26, 0.0 }
 0x4f9   :  { %821 = vadd.xlane.f32.xlu1 %v820_v27 }
 0x509   :  { %881 = vrot.lane.b32.xlu2 %v2723_v28, %s2270_s21 }
 0x511   :  { %966 = vrot.lane.b32.xlu2 %v2637_v6, %s2273_s4 }
 0x512   :  { %947 = vrot.lane.b32.xlu1 %v2728_v30, %s2270_s21 }
 0x554   :  { %v813_v31 = vpop.xlane.xlu2 %812 }
 0x555   :  { %v823_v32 = vmul.f32 %v813_v31, %v2588_v1 }
 0x557   :  { %v827_v33 = vadd.f32 1e-05, %v823_v32 }
 0x559   :  { %2019 = vrsqrt.f32 %v827_v33  ;;  %vm837_vm5 = vweird.f32 %v827_v33 }
 0x55c   :  { %v816_v34 = vpop.xlane.xlu1 %815 }
 0x55d   :  { %v824_v35 = vmul.f32 %v816_v34, %v2588_v1 }
 0x55f   :  { %v2020_v37 = vpop.eup %2019  ;;  %v828_v17 = vadd.f32 1e-05, %v824_v35 }
 0x560   :  { %v832_v38 = vmul.f32 %v2020_v37, %v827_v33  ;;  %vm838_vm15 = vweird.f32 %v2020_v37 }
 0x561   :  { %2021 = vrsqrt.f32 %v828_v17  ;;  %vm847_vm3 = vweird.f32 %v828_v17  ;;  %vm839_vm6 = vmor %vm837_vm5, %vm838_vm15 }
 0x562   :  { %v833_v41 = vmul.f32 %v2020_v37, %v832_v38 }
 0x564   :  { %v819_v39 = vpop.xlane.xlu2 %818  ;;  %v834_v46 = vmul.f32 0.5, %v833_v41 }
 0x565   :  { %v825_v40 = vmul.f32 %v819_v39, %v2588_v1 }
 0x566   :  { %v835_v51 = vsub.f32 1.5, %v834_v46 }
 0x567   :  { %v2022_v42 = vpop.eup %2021  ;;  %v829_v43 = vadd.f32 1e-05, %v825_v40 }
 0x568   :  { %v842_v44 = vmul.f32 %v2022_v42, %v828_v17  ;;  %vm848_vm14 = vweird.f32 %v2022_v42  ;;  %v836_v56 = vmul.f32 %v2020_v37, %v835_v51 }
 0x569   :  { %2023 = vrsqrt.f32 %v829_v43  ;;  %vm849_vm4 = vmor %vm847_vm3, %vm848_vm14  ;;  %vm857_vm8 = vweird.f32 %v829_v43  ;;  %vm972_vm3 = vcmask 523520  }
 0x56a   :  { %v843_v47 = vmul.f32 %v2022_v42, %v842_v44  ;;  %v840_v60 = vsel %vm839_vm6, %v2020_v37, %v836_v56 }
 0x56b   :  { %v871_v5 = vmul.f32 %v840_v60, %v2699_v3 }
 0x56c   :  { %v844_v48 = vmul.f32 0.5, %v843_v47  ;;  %v822_v49 = vpop.xlane.xlu1 %821 }
 0x56d   :  { %v826_v50 = vmul.f32 %v822_v49, %v2588_v1  ;;  %v876_v13 = vmul.f32 %v2723_v28, %v871_v5  ;;  %v2757_v5 = vld [vmem:[#allocation24 + $0x18] sm:$0xff] }
 0x56e   :  { %v845_v52 = vsub.f32 1.5, %v844_v48 }
 0x56f   :  { %v2024_v53 = vpop.eup %2023  ;;  %v830_v45 = vadd.f32 1e-05, %v826_v50 }
 0x570   :  { %v846_v54 = vmul.f32 %v2022_v42, %v845_v52  ;;  %v852_v55 = vmul.f32 %v2024_v53, %v829_v43  ;;  %vm858_vm7 = vweird.f32 %v2024_v53 }
 0x571   :  { %2025 = vrsqrt.f32 %v830_v45  ;;  %vm859_vm9 = vmor %vm857_vm8, %vm858_vm7  ;;  %vm867_vm11 = vweird.f32 %v830_v45 }
 0x572   :  { %v853_v57 = vmul.f32 %v2024_v53, %v852_v55  ;;  %v850_v58 = vsel %vm849_vm4, %v2022_v42, %v846_v54 }
 0x573   :  { %v872_v63 = vmul.f32 %v850_v58, %v2705_v10  ;;  %v882_v10 = vpop.permute.xlu2 %881 }
 0x574   :  { %v854_v59 = vmul.f32 0.5, %v853_v57  ;;  %v884_v15 = vadd.f32 %v882_v10, %v876_v13  ;;  %v1881_v13 = vld [vmem:[%s3140_s10 + $0x28] sm:$0xff] }
 0x575   :  { %v877_v7 = vmul.f32 %v2723_v28, %v872_v63 }
 0x576   :  { %v855_v61 = vsub.f32 1.5, %v854_v59  ;;  %v888_v31 = vsel %vm169_vm0, %v884_v15, 0.0 }
 0x577   :  { %v2026_v62 = vpop.eup %2025  ;;  %v885_v18 = vadd.f32 %v882_v10, %v877_v7  ;;  %v1883_v7 = vld [vmem:[%s3140_s10 + $0x38] sm:$0xff] }
 0x578   :  { %v856_v2 = vmul.f32 %v2024_v53, %v855_v61  ;;  %v862_v4 = vmul.f32 %v2026_v62, %v830_v45  ;;  %vm868_vm10 = vweird.f32 %v2026_v62  ;;  %1014 = vmatpush.msrb.mxu3 %v1883_v7 }
 0x579   :  { %vm869_vm12 = vmor %vm867_vm11, %vm868_vm10 }
 0x57a   :  { %v860_v8 = vsel %vm859_vm9, %v2024_v53, %v856_v2  ;;  %v863_v9 = vmul.f32 %v2026_v62, %v862_v4 }
 0x57b   :  { %v873_v14 = vmul.f32 %v860_v8, %v2711_v12  ;;  %v889_v12 = vsel %vm169_vm0, %v885_v18, 0.0  ;;  %v2759_v8 = vld [vmem:[#allocation2] sm:$0xff] }
 0x57c   :  { %v864_v6 = vmul.f32 0.5, %v863_v9  ;;  %v890_v33 = vadd.f32 %v889_v12, %v888_v31  ;;  %v2761_v9 = vld [vmem:[#allocation2 + $0x8] sm:$0xff]  ;;  %1035 = vst.msk [vmem:[#allocation5] sm:$0xff] %vm169_vm0, %v2759_v8 }
 0x57d   :  { %v878_v16 = vmul.f32 %v2723_v28, %v873_v14  ;;  %1036 = vst.msk [vmem:[#allocation5 + $0x8] sm:$0xff] %vm169_vm0, %v2761_v9 }
 0x57e   :  { %v865_v11 = vsub.f32 1.5, %v864_v6  ;;  %v1882_v6 = vld [vmem:[%s3140_s10 + $0x30] sm:$0xff] }
 0x57f   :  { %v886_v3 = vadd.f32 %v882_v10, %v878_v16  ;;  %1015 = vmatpush.msrb.mxu3 %v1882_v6  ;;  %v1880_v16 = vld [vmem:[%s3140_s10 + $0x20] sm:$0xff]  ;;  %s2247_s10 = smov 0  }
 0x580   :  { %v866_v19 = vmul.f32 %v2026_v62, %v865_v11 }
 0x581   :  { %v891_v32 = vsel %vm169_vm0, %v886_v3, 0.0  ;;  %1016 = vmatpush.msrb.mxu3 %v1881_v13 }
 0x582   :  { %v870_v23 = vsel %vm869_vm12, %v2026_v62, %v866_v19  ;;  %v892_v35 = vadd.f32 %v891_v32, %v890_v33 }
 0x583   :  { %v874_v26 = vmul.f32 %v870_v23, %v2717_v25  ;;  %1017 = vmatpush.msrb.mxu3 %v1880_v16 }
 0x584   :  { %v948_v32 = vpop.permute.xlu1 %947 }
 0x585   :  { %v879_v27 = vmul.f32 %v2723_v28, %v874_v26 }
 0x587   :  { %v887_v34 = vadd.f32 %v882_v10, %v879_v27 }
 0x589   :  { %v893_v37 = vsel %vm169_vm0, %v887_v34, 0.0 }
 0x58a   :  { %v894_v17 = vadd.f32 %v893_v37, %v892_v35 }
 0x58c   :  { %v895_v38 = vrot.slane %v894_v17, 4 }
 0x58e   :  { %v896_v39 = vadd.f32 %v895_v38, %v894_v17 }
 0x590   :  { %v897_v40 = vrot.slane %v896_v39, 2 }
 0x592   :  { %v898_v41 = vadd.f32 %v897_v40, %v896_v39 }
 0x594   :  { %v899_v42 = vrot.slane %v898_v41, 1 }
 0x596   :  { %v900_v25 = vadd.f32 %v899_v42, %v898_v41 }
 0x598   :  { %v901_v43 = vmul.f32 %v900_v25, %v2588_v1 }
 0x59a   :  { %v902_v28 = vmul.f32 %v901_v43, %v2405_v0 }
 0x59c   :  { %v903_v44 = vperm.slane %v902_v28, 1 }
 0x59e   :  { %v904_v46 = vsub.f32 %v884_v15, %v903_v44  ;;  %v905_v47 = vsub.f32 %v885_v18, %v903_v44  ;;  %v906_v48 = vsub.f32 %v886_v3, %v903_v44  ;;  %v907_v49 = vsub.f32 %v887_v34, %v903_v44  ;;  %v969_v44 = vpop.permute.xlu0 %968 }
 0x59f   :  { %974 = vst.msk [vmem:[#allocation9 + $0x8] sm:$0xff] %vm972_vm3, %v969_v44 }
 0x5a0   :  { %v908_v50 = vmul.f32 %v904_v46, %v904_v46  ;;  %v909_v51 = vmul.f32 %v905_v47, %v905_v47  ;;  %v910_v52 = vmul.f32 %v906_v48, %v906_v48  ;;  %v911_v53 = vmul.f32 %v907_v49, %v907_v49 }
 0x5a2   :  { %v912_v45 = vsel %vm169_vm0, %v908_v50, 0.0  ;;  %v913_v54 = vsel %vm169_vm0, %v909_v51, 0.0  ;;  %v915_v56 = vsel %vm169_vm0, %v910_v52, 0.0  ;;  %v917_v58 = vsel %vm169_vm0, %v911_v53, 0.0 }
 0x5a3   :  { %v914_v55 = vadd.f32 %v913_v54, %v912_v45 }
 0x5a5   :  { %v916_v57 = vadd.f32 %v915_v56, %v914_v55 }
 0x5a7   :  { %v918_v0 = vadd.f32 %v917_v58, %v916_v57 }
 0x5a9   :  { %v919_v59 = vrot.slane %v918_v0, 4 }
 0x5ab   :  { %v920_v60 = vadd.f32 %v919_v59, %v918_v0 }
 0x5ad   :  { %v921_v61 = vrot.slane %v920_v60, 2 }
 0x5af   :  { %v922_v62 = vadd.f32 %v921_v61, %v920_v60 }
 0x5b1   :  { %v923_v63 = vrot.slane %v922_v62, 1 }
 0x5b3   :  { %v924_v2 = vadd.f32 %v923_v63, %v922_v62 }
 0x5b5   :  { %v925_v4 = vmul.f32 %v924_v2, %v2588_v1 }
 0x5b7   :  { %v926_v14 = vadd.f32 1e-05, %v925_v4 }
 0x5b9   :  { %2027 = vrsqrt.f32 %v926_v14  ;;  %vm933_vm14 = vweird.f32 %v926_v14 }
 0x5bf   :  { %v2028_v11 = vpop.eup %2027 }
 0x5c0   :  { %v928_v10 = vmul.f32 %v2028_v11, %v926_v14  ;;  %vm934_vm13 = vweird.f32 %v2028_v11 }
 0x5c1   :  { %vm935_vm15 = vmor %vm933_vm14, %vm934_vm13 }
 0x5c2   :  { %v929_v18 = vmul.f32 %v2028_v11, %v928_v10 }
 0x5c4   :  { %v930_v19 = vmul.f32 0.5, %v929_v18 }
 0x5c6   :  { %v931_v15 = vsub.f32 1.5, %v930_v19 }
 0x5c8   :  { %v932_v3 = vmul.f32 %v2028_v11, %v931_v15 }
 0x5ca   :  { %v936_v23 = vsel %vm935_vm15, %v2028_v11, %v932_v3 }
 0x5cb   :  { %v937_v26 = vmul.f32 %v936_v23, %v904_v46  ;;  %v938_v12 = vmul.f32 %v936_v23, %v905_v47  ;;  %v939_v27 = vmul.f32 %v936_v23, %v906_v48  ;;  %v940_v31 = vmul.f32 %v936_v23, %v907_v49 }
 0x5cd   :  { %v942_v33 = vmul.f32 %v2728_v30, %v937_v26  ;;  %v943_v34 = vmul.f32 %v2728_v30, %v938_v12  ;;  %v944_v35 = vmul.f32 %v2728_v30, %v939_v27  ;;  %v945_v37 = vmul.f32 %v2728_v30, %v940_v31 }
 0x5cf   :  { %v950_v17 = vadd.f32 %v948_v32, %v942_v33  ;;  %v951_v38 = vadd.f32 %v948_v32, %v943_v34  ;;  %v952_v39 = vadd.f32 %v948_v32, %v944_v35  ;;  %v953_v40 = vadd.f32 %v948_v32, %v945_v37 }
 0x5d1   :  { %v954_v41 = vadd.f32 %v950_v17, %v2540_v20  ;;  %v955_v42 = vadd.f32 %v951_v38, %v2542_v21  ;;  %v956_v25 = vadd.f32 %v952_v39, %v2544_v22  ;;  %v957_v43 = vadd.f32 %v953_v40, %v2547_v24  ;;  %v2795_v22 = vld [vmem:[#allocation24 + $0x10] sm:$0xff]  ;;  %v967_v24 = vpop.permute.xlu2 %966 }
 0x5d2   :  { %973 = vst.msk [vmem:[#allocation9] sm:$0xff] %vm972_vm3, %v967_v24  ;;  %v2798_v46 = vperm.slane %v2795_v22, 1 }
 0x5d3   :  { %960 = vst.msk [vmem:[#allocation3] sm:$0xff] %vm169_vm0, %v954_v41 }
 0x5d4   :  { %961 = vst.msk [vmem:[#allocation3 + $0x8] sm:$0xff] %vm169_vm0, %v955_v42 }
 0x5d5   :  { %962 = vst.msk [vmem:[#allocation3 + $0x10] sm:$0xff] %vm169_vm0, %v956_v25 }
 0x5d6   :  { %963 = vst.msk [vmem:[#allocation3 + $0x18] sm:$0xff] %vm169_vm0, %v957_v43 }
 0x5da   :  { %v980_v30 = vld [vmem:[#allocation3] sm:$0xff] }
 0x5db   :  { %1884 = vmatmul.msk.f32.vlgmr.msrb.gmra.mxu3 %vm169_vm0, %v980_v30  ;;  %v981_v28 = vld [vmem:[#allocation3 + $0x8] sm:$0xff] }
 0x5dc   :  { %v982_v20 = vld [vmem:[#allocation3 + $0x10] sm:$0xff] }
 0x5dd   :  { %v983_v21 = vld [vmem:[#allocation3 + $0x18] sm:$0xff] }
 0x5e3   :  { %1885 = vmatmul.msk.f32.gmra.mxu3 %vm169_vm0, %v981_v28 }
 0x5eb   :  { %1886 = vmatmul.msk.f32.gmra.mxu3 %vm169_vm0, %v982_v20 }
 0x5f3   :  { %1887 = vmatmul.msk.f32.gmra.mxu3 %vm169_vm0, %v983_v21 }
 0x65e   :  { %v1019_v47 = vpop.f32.mrf.mxu3 }
 0x65f   :  { %v1020_v48 = vadd.f32 %v1019_v47, %v2798_v46 }
 0x661   :  { %1031 = vst.msk [vmem:[#allocation7] sm:$0xff] %vm169_vm0, %v1020_v48 }
 0x666   :  { %v1022_v49 = vpop.f32.mrf.mxu3 }
 0x667   :  { %v1023_v50 = vadd.f32 %v1022_v49, %v2798_v46 }
 0x669   :  { %1032 = vst.msk [vmem:[#allocation7 + $0x8] sm:$0xff] %vm169_vm0, %v1023_v50 }
 0x66e   :  { %v1025_v51 = vpop.f32.mrf.mxu3 }
 0x66f   :  { %v1026_v52 = vadd.f32 %v1025_v51, %v2798_v46 }
 0x671   :  { %1033 = vst.msk [vmem:[#allocation7 + $0x10] sm:$0xff] %vm169_vm0, %v1026_v52 }
 0x676   :  { %v1028_v53 = vpop.f32.mrf.mxu3 }
 0x677   :  { %v1029_v45 = vadd.f32 %v1028_v53, %v2798_v46 }
 0x679   :  { %1034 = vst.msk [vmem:[#allocation7 + $0x18] sm:$0xff] %vm169_vm0, %v1029_v45 }
 0x67a LB: > { %s1043_s20 = sld [smem:[#allocation10 + %s2249_s10]]  ;;  %s1047_s2 = scalar_lea.vmem [#allocation7], %s2249_s10  ;;  %s2249_s10 = sphi %s2247_s10, %s1042_s10  }
 0x67b   : > { %s1044_s22 = sld [smem:[#allocation15 + %s2249_s10]]  ;;  %s1042_s10 = sadd.s32 1, %s2249_s10  }
 0x67c   : > { %p1039_p2 = scmp.ge.s32.totalorder %s1042_s10, 32  }
 0x67d   :  { %v1891_v59 = vld [vmem:[%s3141_s11 + $0x38] sm:$0xff] (%p1039_p2)  ;;  %v1890_v60 = vld [vmem:[%s3141_s11 + $0x30] sm:$0xff] (%p1039_p2)  ;;  %2029 = vset.pattern.permute.xlu0 (%p1039_p2), %v2269_v36  ;;  %2030 = vset.pattern.permute.xlu1 (%p1039_p2), %v2269_v36  ;;  %v1889_v61 = vld [vmem:[%s3141_s11 + $0x28] sm:$0xff] (%p1039_p2)  ;;  %v2840_v13 = vperm.slane (%p1039_p2), %v2757_v5, 2  ;;  %v1072_v42 = vperm.slane (%p1039_p2), %v2795_v22, 0 }
 0x67e   :  { %1091 = vmatpush.msra.mxu2 (%p1039_p2), %v1891_v59  ;;  %2031 = vset.pattern.permute.xlu2 (%p1039_p2), %v2269_v36  ;;  %v1242_v62 = vld [vmem:[%s3138_s8] sm:$0xff] (%p1039_p2)  ;;  %v1899_v63 = vld [vmem:[%s3142_s12 + $0x78] sm:$0xff] (%p1039_p2)  ;;  %v1898_v2 = vld [vmem:[%s3142_s12 + $0x70] sm:$0xff] (%p1039_p2) }
 0x67f   :  { %1250 = vperm.xlu0 (%p1039_p2), %2029, %v1242_v62   ;;  %v1888_v4 = vld [vmem:[%s3141_s11 + $0x20] sm:$0xff] (%p1039_p2)  ;;  %1122 = vmatpush.msra.mxu0 (%p1039_p2), %v1899_v63  ;;  %v1243_v14 = vld [vmem:[%s3138_s8 + $0x8] sm:$0xff] (%p1039_p2)  ;;  %v1895_v11 = vld [vmem:[%s3142_s12 + $0x58] sm:$0xff] (%p1039_p2)  ;;  %v1306_v62 = vperm.slane (%p1039_p2), %v2757_v5, 3 }
 0x680   : > { %v1048_v54 = vld [vmem:[%s1047_s2] sm:$0x1]  ;;  %s1045_s23 = scalar_lea.vmem [#allocation2], %s1043_s20  ;;  %1092 = vmatpush.msra.mxu2 (%p1039_p2), %v1890_v60  ;;  %v1897_v6 = vld [vmem:[%s3142_s12 + $0x68] sm:$0xff] (%p1039_p2)  ;;  %1255 = vperm.xlu1 (%p1039_p2), %2030, %v1243_v14   ;;  %v1894_v18 = vld [vmem:[%s3142_s12 + $0x50] sm:$0xff] (%p1039_p2) }
 0x681   : > { %v1046_v55 = vld [vmem:[%s1045_s23] sm:$0x1]  ;;  %s1051_s1 = scalar_lea.vmem [#allocation5], %s1044_s22  ;;  %1123 = vmatpush.msra.mxu0 (%p1039_p2), %v1898_v2  ;;  %v1893_v19 = vld [vmem:[%s3142_s12 + $0x48] sm:$0xff] (%p1039_p2)  ;;  %v1244_v3 = vld [vmem:[%s3138_s8 + $0x10] sm:$0xff] (%p1039_p2) }
 0x682   : > { %v1049_v56 = vadd.f32 %v1048_v54, %v1046_v55  ;;  %v1052_v57 = vld [vmem:[%s1051_s1] sm:$0x1]  ;;  %1093 = vmatpush.msra.mxu2 (%p1039_p2), %v1889_v61  ;;  %v1247_v23 = vld [vmem:[%s3138_s8 + $0x28] sm:$0xff] (%p1039_p2)  ;;  %v1245_v26 = vld [vmem:[%s3138_s8 + $0x18] sm:$0xff] (%p1039_p2) }
 0x683   :  { %v1896_v16 = vld [vmem:[%s3142_s12 + $0x60] sm:$0xff] (%p1039_p2)  ;;  %1124 = vmatpush.msra.mxu0 (%p1039_p2), %v1897_v6  ;;  %v1907_v27 = vld [vmem:[%s3146_s16 + $0x38] sm:$0xff] (%p1039_p2)  ;;  %v1906_v31 = vld [vmem:[%s3146_s16 + $0x30] sm:$0xff] (%p1039_p2)  ;;  %1265 = vperm.xlu2 (%p1039_p2), %2031, %v1245_v26  }
 0x684   : > { %v1050_v58 = vmax.f32 %v1049_v56, 0.0  ;;  %1041 = sbr.rel (!%p1039_p2) target bundleno = 1658 (0x67a), region = 204  ;;  %1094 = vmatpush.msra.mxu2 (%p1039_p2), %v1888_v4  ;;  %v1892_v15 = vld [vmem:[%s3142_s12 + $0x40] sm:$0xff] (%p1039_p2)  ;;  %1337 = vmatpush.msra.mxu1 (%p1039_p2), %v1907_v27  ;;  %v1905_v32 = vld [vmem:[%s3146_s16 + $0x28] sm:$0xff] (%p1039_p2)  ;;  %v2896_v50 = vld [vmem:[#allocation3] sm:$0xff] (%p1039_p2) }
 0x685   :  { %1125 = vmatpush.msra.mxu0 (%p1039_p2), %v1896_v16  ;;  %v1904_v34 = vld [vmem:[%s3146_s16 + $0x20] sm:$0xff] (%p1039_p2)  ;;  %v2898_v51 = vld [vmem:[#allocation3 + $0x8] sm:$0xff] (%p1039_p2)  ;;  %v2903_v45 = vld [vmem:[#allocation3 + $0x18] sm:$0xff] (%p1039_p2) }
 0x686   : > { %v1053_v0 = vadd.f32 %v1052_v57, %v1050_v58  ;;  %1338 = vmatpush.msra.mxu1 (%p1039_p2), %v1906_v31  ;;  %v1246_v37 = vld [vmem:[%s3138_s8 + $0x20] sm:$0xff] (%p1039_p2)  ;;  %v1915_v55 = vld [vmem:[%s3137_s7 + $0x28] sm:$0xff] (%p1039_p2)  ;;  %v1916_v56 = vld [vmem:[%s3137_s7 + $0x30] sm:$0xff] (%p1039_p2) }
 0x687   :  { %1286 = vrot.lane.b32.xlu0 (%p1039_p2), %v2840_v13, %s2270_s21  ;;  %1126 = vmatpush.msra.mxu0 (%p1039_p2), %v1895_v11  ;;  %v2900_v52 = vld [vmem:[#allocation3 + $0x10] sm:$0xff] (%p1039_p2)  ;;  %v1917_v57 = vld [vmem:[%s3137_s7 + $0x38] sm:$0xff] (%p1039_p2)  ;;  %1370 = vst.msk [vmem:[#allocation4 + $0x8] sm:$0xff] (%p1039_p2), %vm169_vm0, %v1915_v55  ;;  %v1920_v59 = vld [vmem:[%s3143_s13 + $0x30] sm:$0xff] (%p1039_p2) }
 0x688   : > { %1055 = vst.msk [vmem:[%s1051_s1] sm:$0x1] %vm261_vm1, %v1053_v0  ;;  %1260 = vperm.xlu1 (%p1039_p2), %2030, %v1244_v3   ;;  %1339 = vmatpush.msra.mxu1 (%p1039_p2), %v1905_v32  ;;  %v1914_v54 = vld [vmem:[%s3137_s7 + $0x20] sm:$0xff] (%p1039_p2)  ;;  %v1921_v58 = vld [vmem:[%s3143_s13 + $0x38] sm:$0xff] (%p1039_p2)  ;;  %v1919_v60 = vld [vmem:[%s3143_s13 + $0x28] sm:$0xff] (%p1039_p2) }
 0x689   :  { %1127 = vmatpush.msra.mxu0 %v1894_v18  ;;  %1369 = vst.msk [vmem:[#allocation4] sm:$0xff] %vm169_vm0, %v1914_v54  ;;  %1409 = vmatpush.msrb.mxu2 %v1921_v58  ;;  %v1918_v63 = vld [vmem:[%s3143_s13 + $0x20] sm:$0xff]  ;;  %s2251_s13 = smov 0  }
 0x68a   :  { %1340 = vmatpush.msra.mxu1 %v1904_v34  ;;  %1371 = vst.msk [vmem:[#allocation4 + $0x10] sm:$0xff] %vm169_vm0, %v1916_v56 }
 0x68b   :  { %1128 = vmatpush.msra.mxu0 %v1893_v19  ;;  %1270 = vperm.xlu2 %2031, %v1246_v37   ;;  %1372 = vst.msk [vmem:[#allocation4 + $0x18] sm:$0xff] %vm169_vm0, %v1917_v57 }
 0x68c   :  { %1410 = vmatpush.msrb.mxu2 %v1920_v59 }
 0x68d   :  { %1129 = vmatpush.msra.mxu0 %v1892_v15 }
 0x68e   :  { %1411 = vmatpush.msrb.mxu2 %v1919_v60 }
 0x68f   :  { %v1056_v7 = vld [vmem:[#allocation5] sm:$0xff]  ;;  %v1057_v10 = vld [vmem:[#allocation5 + $0x8] sm:$0xff]  ;;  %1275 = vperm.xlu0 %2029, %v1247_v23  }
 0x690   :  { %1900 = vmatmul.msk.f32.vlgmr.msra.gmra.mxu2 %vm169_vm0, %v1056_v7  ;;  %1105 = vrot.lane.b32.xlu1 %v2798_v46, %s2270_s21 }
 0x691   :  { %1412 = vmatpush.msrb.mxu2 %v1918_v63 }
 0x698   :  { %1901 = vmatmul.msk.f32.gmra.mxu2 %vm169_vm0, %v1057_v10 }
 0x6dd   :  { %v1266_v49 = vpop.permute.xlu2 %1265 }
 0x6de   :  { %v1282_v53 = vmul.f32 %v2840_v13, %v1266_v49 }
 0x6e5   :  { %v1271_v2 = vpop.permute.xlu2 %1270 }
 0x6e6   :  { %v1283_v14 = vmul.f32 %v2840_v13, %v1271_v2 }
 0x6f1   :  { %v1251_v12 = vpop.permute.xlu0 %1250 }
 0x6f2   :  { %v1279_v33 = vmul.f32 %v2840_v13, %v1251_v12  ;;  %v1256_v35 = vpop.permute.xlu1 %1255 }
 0x6f3   :  { %v1280_v39 = vmul.f32 %v2840_v13, %v1256_v35 }
 0x6f9   :  { %v1287_v17 = vpop.permute.xlu0 %1286 }
 0x6fa   :  { %v1289_v38 = vadd.f32 %v1287_v17, %v1279_v33  ;;  %v1290_v41 = vadd.f32 %v1287_v17, %v1280_v39  ;;  %v1261_v44 = vpop.permute.xlu1 %1260  ;;  %v1292_v0 = vadd.f32 %v1287_v17, %v1282_v53  ;;  %v1293_v16 = vadd.f32 %v1287_v17, %v1283_v14 }
 0x6fb   :  { %v1281_v46 = vmul.f32 %v2840_v13, %v1261_v44  ;;  %v1181_v53 = vperm.slane %v2795_v22, 2 }
 0x6fc   :  { %v1295_v40 = vmax.f32 %v1289_v38, 0.0  ;;  %v1296_v25 = vmax.f32 %v1290_v41, 0.0  ;;  %v1298_v61 = vmax.f32 %v1292_v0, 0.0  ;;  %v1299_v10 = vmax.f32 %v1293_v16, 0.0 }
 0x6fd   :  { %v1291_v47 = vadd.f32 %v1287_v17, %v1281_v46 }
 0x6fe   :  { %1908 = vmatmul.msk.f32.vlgmr.msra.gmra.mxu1 %vm169_vm0, %v1295_v40 }
 0x6ff   :  { %v1297_v48 = vmax.f32 %v1291_v47, 0.0 }
 0x701   :  { %v1276_v4 = vpop.permute.xlu0 %1275 }
 0x702   :  { %v1284_v11 = vmul.f32 %v2840_v13, %v1276_v4  ;;  %v1106_v15 = vpop.permute.xlu1 %1105 }
 0x704   :  { %v1294_v18 = vadd.f32 %v1287_v17, %v1284_v11 }
 0x706   :  { %1909 = vmatmul.msk.f32.gmra.mxu1 %vm169_vm0, %v1296_v25  ;;  %v1300_v23 = vmax.f32 %v1294_v18, 0.0 }
 0x70e   :  { %1910 = vmatmul.msk.f32.gmra.mxu1 %vm169_vm0, %v1297_v48 }
 0x713   :  { %v1096_v43 = vpop.f32.mrf.mxu2 }
 0x714   :  { %v1097_v30 = vadd.f32 %v1096_v43, %v1072_v42 }
 0x716   :  { %v1102_v28 = vmax.f32 %v1097_v30, 0.0  ;;  %1911 = vmatmul.msk.f32.gmra.mxu1 %vm169_vm0, %v1298_v61  ;;  %v2949_v30 = vperm.slane %v2795_v22, 3 }
 0x718   :  { %1902 = vmatmul.msk.f32.vlgmr.msra.gmra.mxu0 %vm313_vm2, %v1102_v28  ;;  %v2952_v28 = vperm.slane %v2795_v22, 6 }
 0x71b   :  { %v1099_v20 = vpop.f32.mrf.mxu2 }
 0x71c   :  { %v1100_v21 = vadd.f32 %v1099_v20, %v1072_v42 }
 0x71e   :  { %v1103_v24 = vmax.f32 %v1100_v21, 0.0  ;;  %1912 = vmatmul.msk.f32.gmra.mxu1 %vm169_vm0, %v1299_v10 }
 0x720   :  { %1903 = vmatmul.msk.f32.gmra.mxu0 %vm313_vm2, %v1103_v24 }
 0x726   :  { %1913 = vmatmul.msk.f32.gmra.mxu1 %vm169_vm0, %v1300_v23 }
 0x77b   :  { %v1342_v7 = vpop.f32.mrf.mxu1 }
 0x77c   :  { %v1343_v6 = vadd.f32 %v1342_v7, %v1306_v62 }
 0x77e   :  { %1922 = vmatmul.msk.f32.vlgmr.msrb.gmra.mxu2 %vm169_vm0, %v1343_v6 }
 0x783   :  { %v1345_v19 = vpop.f32.mrf.mxu1 }
 0x784   :  { %v1346_v3 = vadd.f32 %v1345_v19, %v1306_v62 }
 0x786   :  { %1923 = vmatmul.msk.f32.gmra.mxu2 %vm169_vm0, %v1346_v3 }
 0x78b   :  { %v1348_v33 = vpop.f32.mrf.mxu1 }
 0x78c   :  { %v1349_v34 = vadd.f32 %v1348_v33, %v1306_v62 }
 0x78e   :  { %1924 = vmatmul.msk.f32.gmra.mxu2 %vm169_vm0, %v1349_v34 }
 0x793   :  { %v1351_v35 = vpop.f32.mrf.mxu1 }
 0x794   :  { %v1352_v37 = vadd.f32 %v1351_v35, %v1306_v62 }
 0x795   :  { %v1131_v26 = vpop.f32.mrf.mxu0 }
 0x796   :  { %v1132_v12 = vadd.f32 %v1131_v26, %v1106_v15  ;;  %1925 = vmatmul.msk.f32.gmra.mxu2 %vm169_vm0, %v1352_v37 }
 0x798   :  { %v1137_v27 = vsel %vm169_vm0, %v1132_v12, 0.0 }
 0x799   :  { %1138 = vadd.xlane.f32.xlu2 %v1137_v27 }
 0x79b   :  { %v1354_v39 = vpop.f32.mrf.mxu1 }
 0x79c   :  { %v1355_v40 = vadd.f32 %v1354_v39, %v1306_v62 }
 0x79d   :  { %v1134_v13 = vpop.f32.mrf.mxu0 }
 0x79e   :  { %v1135_v31 = vadd.f32 %v1134_v13, %v1106_v15  ;;  %1926 = vmatmul.msk.f32.gmra.mxu2 %vm169_vm0, %v1355_v40 }
 0x7a0   :  { %v1140_v32 = vsel %vm169_vm0, %v1135_v31, 0.0 }
 0x7a1   :  { %1141 = vadd.xlane.f32.xlu0 %v1140_v32 }
 0x7a3   :  { %v1357_v21 = vpop.f32.mrf.mxu1 }
 0x7a4   :  { %v1358_v44 = vadd.f32 %v1357_v21, %v1306_v62 }
 0x7a6   :  { %1927 = vmatmul.msk.f32.gmra.mxu2 %vm169_vm0, %v1358_v44 }
 0x7b5   :  { %1233 = vrot.lane.b32.xlu0 %v2949_v30, %s2270_s21 }
 0x801   :  { %v1414_v24 = vpop.f32.mrf.mxu2 }
 0x802   :  { %v1415_v46 = vadd.f32 %v1414_v24, %v2952_v28 }
 0x804   :  { %1432 = vst.msk [vmem:[#allocation8] sm:$0xff] %vm169_vm0, %v1415_v46 }
 0x809   :  { %v1417_v54 = vpop.f32.mrf.mxu2 }
 0x80a   :  { %v1418_v56 = vadd.f32 %v1417_v54, %v2952_v28 }
 0x80c   :  { %v1139_v17 = vpop.xlane.xlu2 %1138  ;;  %1433 = vst.msk [vmem:[#allocation8 + $0x8] sm:$0xff] %vm169_vm0, %v1418_v56 }
 0x80d   :  { %v1143_v38 = vmul.f32 %v1139_v17, %v2588_v1 }
 0x80f   :  { %v1145_v41 = vsub.f32 %v1132_v12, %v1143_v38 }
 0x811   :  { %v1147_v42 = vmul.f32 %v1145_v41, %v1145_v41  ;;  %v1420_v55 = vpop.f32.mrf.mxu2 }
 0x812   :  { %v1421_v57 = vadd.f32 %v1420_v55, %v2952_v28 }
 0x813   :  { %v1149_v25 = vsel %vm169_vm0, %v1147_v42, 0.0 }
 0x814   :  { %v1142_v43 = vpop.xlane.xlu0 %1141  ;;  %1150 = vadd.xlane.f32.xlu1 %v1149_v25  ;;  %1434 = vst.msk [vmem:[#allocation8 + $0x10] sm:$0xff] %vm169_vm0, %v1421_v57 }
 0x815   :  { %v1144_v20 = vmul.f32 %v1142_v43, %v2588_v1 }
 0x817   :  { %v1146_v47 = vsub.f32 %v1135_v31, %v1144_v20 }
 0x819   :  { %v1148_v48 = vmul.f32 %v1146_v47, %v1146_v47  ;;  %v1423_v62 = vpop.f32.mrf.mxu2 }
 0x81a   :  { %v1424_v17 = vadd.f32 %v1423_v62, %v2952_v28 }
 0x81b   :  { %v1152_v49 = vsel %vm169_vm0, %v1148_v48, 0.0 }
 0x81c   :  { %1153 = vadd.xlane.f32.xlu2 %v1152_v49  ;;  %1435 = vst.msk [vmem:[#allocation8 + $0x18] sm:$0xff] %vm169_vm0, %v1424_v17 }
 0x821   :  { %v1426_v16 = vpop.f32.mrf.mxu2 }
 0x822   :  { %v1427_v38 = vadd.f32 %v1426_v16, %v2952_v28 }
 0x824   :  { %1436 = vst.msk [vmem:[#allocation8 + $0x20] sm:$0xff] %vm169_vm0, %v1427_v38 }
 0x829   :  { %v1429_v12 = vpop.f32.mrf.mxu2 }
 0x82a   :  { %v1430_v27 = vadd.f32 %v1429_v12, %v2952_v28 }
 0x82c   :  { %1437 = vst.msk [vmem:[#allocation8 + $0x28] sm:$0xff] %vm169_vm0, %v1430_v27  ;;  %v1234_v27 = vpop.permute.xlu0 %1233 }
 0x834   :  { %1185 = vrot.lane.b32.xlu2 %v1181_v53, %s2270_s21 }
 0x887   :  { %v1151_v58 = vpop.xlane.xlu1 %1150 }
 0x888   :  { %v1155_v0 = vmul.f32 %v1151_v58, %v2588_v1 }
 0x88a   :  { %v1157_v59 = vadd.f32 1e-05, %v1155_v0 }
 0x88c   :  { %2032 = vrsqrt.f32 %v1157_v59  ;;  %vm1165_vm5 = vweird.f32 %v1157_v59 }
 0x88f   :  { %v1154_v60 = vpop.xlane.xlu2 %1153 }
 0x890   :  { %v1156_v61 = vmul.f32 %v1154_v60, %v2588_v1 }
 0x892   :  { %v2033_v63 = vpop.eup %2032  ;;  %v1158_v2 = vadd.f32 1e-05, %v1156_v61 }
 0x893   :  { %v1160_v4 = vmul.f32 %v2033_v63, %v1157_v59  ;;  %vm1166_vm4 = vweird.f32 %v2033_v63 }
 0x894   :  { %2034 = vrsqrt.f32 %v1158_v2  ;;  %vm1167_vm6 = vmor %vm1165_vm5, %vm1166_vm4  ;;  %vm1175_vm8 = vweird.f32 %v1158_v2 }
 0x895   :  { %v1161_v14 = vmul.f32 %v2033_v63, %v1160_v4  ;;  %v1440_v4 = vld [vmem:[#allocation4 + $0x10] sm:$0xff] }
 0x896   :  { %1444 = vst.msk [vmem:[#allocation6 + $0x10] sm:$0xff] %vm169_vm0, %v1440_v4 }
 0x897   :  { %v1162_v7 = vmul.f32 0.5, %v1161_v14  ;;  %v1186_v33 = vpop.permute.xlu2 %1185 }
 0x899   :  { %v1163_v6 = vsub.f32 1.5, %v1162_v7  ;;  %v1441_v7 = vld [vmem:[#allocation4 + $0x18] sm:$0xff] }
 0x89a   :  { %v2035_v11 = vpop.eup %2034  ;;  %1445 = vst.msk [vmem:[#allocation6 + $0x18] sm:$0xff] %vm169_vm0, %v1441_v7 }
 0x89b   :  { %v1164_v10 = vmul.f32 %v2033_v63, %v1163_v6  ;;  %v1170_v18 = vmul.f32 %v2035_v11, %v1158_v2  ;;  %vm1176_vm7 = vweird.f32 %v2035_v11  ;;  %v1439_v2 = vld [vmem:[#allocation4 + $0x8] sm:$0xff] }
 0x89c   :  { %vm1177_vm9 = vmor %vm1175_vm8, %vm1176_vm7  ;;  %1443 = vst.msk [vmem:[#allocation6 + $0x8] sm:$0xff] %vm169_vm0, %v1439_v2 }
 0x89d   :  { %v1171_v19 = vmul.f32 %v2035_v11, %v1170_v18  ;;  %v1168_v15 = vsel %vm1167_vm6, %v2033_v63, %v1164_v10  ;;  %v1438_v63 = vld [vmem:[#allocation4] sm:$0xff] }
 0x89e   :  { %v1179_v23 = vmul.f32 %v1168_v15, %v1145_v41  ;;  %1442 = vst.msk [vmem:[#allocation6] sm:$0xff] %vm169_vm0, %v1438_v63 }
 0x89f   :  { %v1172_v3 = vmul.f32 0.5, %v1171_v19 }
 0x8a0   :  { %v1182_v31 = vmul.f32 %v1181_v53, %v1179_v23 }
 0x8a1   :  { %v1173_v26 = vsub.f32 1.5, %v1172_v3 }
 0x8a2   :  { %v1188_v37 = vadd.f32 %v1186_v33, %v1182_v31 }
 0x8a3   :  { %v1174_v13 = vmul.f32 %v2035_v11, %v1173_v26 }
 0x8a4   :  { %v1190_v40 = vsel %vm169_vm0, %v1188_v37, 0.0 }
 0x8a5   :  { %v1178_v32 = vsel %vm1177_vm9, %v2035_v11, %v1174_v13 }
 0x8a6   :  { %v1180_v34 = vmul.f32 %v1178_v32, %v1146_v47 }
 0x8a8   :  { %v1183_v35 = vmul.f32 %v1181_v53, %v1180_v34 }
 0x8aa   :  { %v1189_v39 = vadd.f32 %v1186_v33, %v1183_v35 }
 0x8ac   :  { %v1191_v41 = vsel %vm169_vm0, %v1189_v39, 0.0 }
 0x8ad   :  { %v1192_v42 = vadd.f32 %v1191_v41, %v1190_v40 }
 0x8af   :  { %v1193_v25 = vrot.slane %v1192_v42, 4 }
 0x8b1   :  { %v1194_v43 = vadd.f32 %v1193_v25, %v1192_v42 }
 0x8b3   :  { %v1195_v20 = vrot.slane %v1194_v43, 2 }
 0x8b5   :  { %v1196_v21 = vadd.f32 %v1195_v20, %v1194_v43 }
 0x8b7   :  { %v1197_v24 = vrot.slane %v1196_v21, 1 }
 0x8b9   :  { %v1198_v44 = vadd.f32 %v1197_v24, %v1196_v21 }
 0x8bb   :  { %v1199_v46 = vmul.f32 %v1198_v44, %v2623_v29 }
 0x8bd   :  { %v1200_v47 = vmul.f32 %v1199_v46, %v2795_v22 }
 0x8bf   :  { %v1201_v48 = vperm.slane %v1200_v47, 4 }
 0x8c1   :  { %v1202_v49 = vsub.f32 %v1188_v37, %v1201_v48  ;;  %v1203_v53 = vsub.f32 %v1189_v39, %v1201_v48 }
 0x8c3   :  { %v1204_v54 = vmul.f32 %v1202_v49, %v1202_v49  ;;  %v1205_v55 = vmul.f32 %v1203_v53, %v1203_v53 }
 0x8c5   :  { %v1206_v56 = vsel %vm169_vm0, %v1204_v54, 0.0  ;;  %v1207_v57 = vsel %vm169_vm0, %v1205_v55, 0.0 }
 0x8c6   :  { %v1208_v58 = vadd.f32 %v1207_v57, %v1206_v56 }
 0x8c8   :  { %v1209_v0 = vrot.slane %v1208_v58, 4 }
 0x8ca   :  { %v1210_v59 = vadd.f32 %v1209_v0, %v1208_v58 }
 0x8cc   :  { %v1211_v60 = vrot.slane %v1210_v59, 2 }
 0x8ce   :  { %v1212_v61 = vadd.f32 %v1211_v60, %v1210_v59 }
 0x8d0   :  { %v1213_v62 = vrot.slane %v1212_v61, 1 }
 0x8d2   :  { %v1214_v14 = vadd.f32 %v1213_v62, %v1212_v61 }
 0x8d4   :  { %v1215_v6 = vmul.f32 %v1214_v14, %v2623_v29 }
 0x8d6   :  { %v1216_v16 = vadd.f32 1e-05, %v1215_v6 }
 0x8d8   :  { %2036 = vrsqrt.f32 %v1216_v16  ;;  %vm1223_vm11 = vweird.f32 %v1216_v16 }
 0x8de   :  { %v2037_v11 = vpop.eup %2036 }
 0x8df   :  { %v1218_v10 = vmul.f32 %v2037_v11, %v1216_v16  ;;  %vm1224_vm10 = vweird.f32 %v2037_v11 }
 0x8e0   :  { %vm1225_vm12 = vmor %vm1223_vm11, %vm1224_vm10 }
 0x8e1   :  { %v1219_v18 = vmul.f32 %v2037_v11, %v1218_v10 }
 0x8e3   :  { %v1220_v19 = vmul.f32 0.5, %v1219_v18 }
 0x8e5   :  { %v1221_v15 = vsub.f32 1.5, %v1220_v19 }
 0x8e7   :  { %v1222_v3 = vmul.f32 %v2037_v11, %v1221_v15 }
 0x8e9   :  { %v1226_v23 = vsel %vm1225_vm12, %v2037_v11, %v1222_v3 }
 0x8ea   :  { %v1227_v26 = vmul.f32 %v1226_v23, %v1202_v49  ;;  %v1228_v12 = vmul.f32 %v1226_v23, %v1203_v53 }
 0x8ec   :  { %v1230_v29 = vmul.f32 %v2949_v30, %v1227_v26  ;;  %v1231_v13 = vmul.f32 %v2949_v30, %v1228_v12 }
 0x8ee   :  { %v1236_v31 = vadd.f32 %v1234_v27, %v1230_v29  ;;  %v1237_v32 = vadd.f32 %v1234_v27, %v1231_v13 }
 0x8f0   :  { %v1238_v33 = vmax.f32 %v1236_v31, 0.0  ;;  %v1239_v34 = vmax.f32 %v1237_v32, 0.0 }
 0x8f2   :  { %v2989_v35 = vadd.f32 %v1238_v33, %v2759_v8  ;;  %v2992_v37 = vadd.f32 %v1239_v34, %v2761_v9 }
 0x8f3 LB: > { %s1452_s17 = sld [smem:[#allocation17 + %s2253_s13]]  ;;  %s1456_s18 = scalar_lea.vmem [#allocation8], %s2253_s13  ;;  %s2253_s13 = sphi %s2251_s13, %s1451_s13  }
 0x8f4   : > { %s1453_s12 = sld [smem:[#allocation18 + %s2253_s13]]  ;;  %v1457_v17 = vld [vmem:[%s1456_s18] sm:$0x1]  ;;  %s1451_s13 = sadd.s32 1, %s2253_s13  }
 0x8f5   : > { %p1448_p3 = scmp.ge.s32.totalorder %s1451_s13, 48  }
 0x8f6   :  { %v1931_v8 = vld [vmem:[%s3144_s14 + $0x38] sm:$0xff] (%p1448_p3)  ;;  %v1930_v9 = vld [vmem:[%s3144_s14 + $0x30] sm:$0xff] (%p1448_p3)  ;;  %1530 = vrot.lane.b32.xlu0 (%p1448_p3), %v2952_v28, %s2270_s21  ;;  %1749 = vst.msk [vmem:[#allocation2] sm:$0xff] (%p1448_p3), %vm169_vm0, %v2989_v35  ;;  %v1929_v42 = vld [vmem:[%s3144_s14 + $0x28] sm:$0xff] (%p1448_p3)  ;;  %v1483_v55 = vperm.slane (%p1448_p3), %v2795_v22, 5  ;;  %vm1763_vm10 = vcmask (%p1448_p3), 785920  }
 0x8f7   :  { %1508 = vmatpush.msrb.mxu0 (%p1448_p3), %v1931_v8  ;;  %1750 = vst.msk [vmem:[#allocation2 + $0x8] sm:$0xff] (%p1448_p3), %vm169_vm0, %v2992_v37  ;;  %v1939_v25 = vld [vmem:[%s3145_s15 + $0x78] sm:$0xff] (%p1448_p3)  ;;  %v1938_v28 = vld [vmem:[%s3145_s15 + $0x70] sm:$0xff] (%p1448_p3)  ;;  %v1928_v43 = vld [vmem:[%s3144_s14 + $0x20] sm:$0xff] (%p1448_p3)  ;;  %vm1766_vm11 = vcmask (%p1448_p3), 779264  }
 0x8f8   :  { %1553 = vmatpush.msra.mxu3 (%p1448_p3), %v1939_v25  ;;  %v1937_v20 = vld [vmem:[%s3145_s15 + $0x68] sm:$0xff] (%p1448_p3)  ;;  %v1936_v24 = vld [vmem:[%s3145_s15 + $0x60] sm:$0xff] (%p1448_p3)  ;;  %v1935_v44 = vld [vmem:[%s3145_s15 + $0x58] sm:$0xff] (%p1448_p3) }
 0x8f9   : > { %s1454_s25 = scalar_lea.vmem [#allocation4], %s1452_s17  ;;  %1509 = vmatpush.msrb.mxu0 (%p1448_p3), %v1930_v9  ;;  %v1934_v49 = vld [vmem:[%s3145_s15 + $0x50] sm:$0xff] (%p1448_p3)  ;;  %v1933_v53 = vld [vmem:[%s3145_s15 + $0x48] sm:$0xff] (%p1448_p3)  ;;  %v1932_v54 = vld [vmem:[%s3145_s15 + $0x40] sm:$0xff] (%p1448_p3)  ;;  %s2274_s15 = smov (%p1448_p3), 64  }
 0x8fa   : > { %v1455_v30 = vld [vmem:[%s1454_s25] sm:$0x1]  ;;  %s1460_s26 = scalar_lea.vmem [#allocation6], %s1453_s12  ;;  %1554 = vmatpush.msra.mxu3 (%p1448_p3), %v1938_v28 }
 0x8fb   : > { %v1458_v38 = vadd.f32 %v1457_v17, %v1455_v30  ;;  %v1461_v39 = vld [vmem:[%s1460_s26] sm:$0x1]  ;;  %1510 = vmatpush.msrb.mxu0 (%p1448_p3), %v1929_v42 }
 0x8fc   :  { %1555 = vmatpush.msra.mxu3 (%p1448_p3), %v1937_v20 }
 0x8fd   : > { %v1459_v40 = vmax.f32 %v1458_v38, 0.0  ;;  %1450 = sbr.rel (!%p1448_p3) target bundleno = 2291 (0x8f3), region = 215  ;;  %1511 = vmatpush.msrb.mxu0 (%p1448_p3), %v1928_v43 }
 0x8fe   :  { %1556 = vmatpush.msra.mxu3 (%p1448_p3), %v1936_v24  ;;  %v3082_v24 = vperm.slane (%p1448_p3), %v2757_v5, 0 }
 0x8ff   : > { %v1462_v41 = vadd.f32 %v1461_v39, %v1459_v40 }
 0x900   :  { %1557 = vmatpush.msra.mxu3 (%p1448_p3), %v1935_v44 }
 0x901   : > { %1464 = vst.msk [vmem:[%s1460_s26] sm:$0x1] %vm261_vm1, %v1462_v41 }
 0x902   :  { %1558 = vmatpush.msra.mxu3 %v1934_v49 }
 0x904   :  { %1559 = vmatpush.msra.mxu3 %v1933_v53 }
 0x906   :  { %1560 = vmatpush.msra.mxu3 %v1932_v54 }
 0x908   :  { %v1465_v21 = vld [vmem:[#allocation6] sm:$0xff]  ;;  %v1466_v46 = vld [vmem:[#allocation6 + $0x8] sm:$0xff]  ;;  %v1467_v47 = vld [vmem:[#allocation6 + $0x10] sm:$0xff] }
 0x909   :  { %1940 = vmatmul.msk.f32.vlgmr.msrb.gmra.mxu0 %vm169_vm0, %v1465_v21  ;;  %v1468_v48 = vld [vmem:[#allocation6 + $0x18] sm:$0xff]  ;;  %v3076_v21 = vperm.slane %v2795_v22, 7 }
 0x911   :  { %1941 = vmatmul.msk.f32.gmra.mxu0 %vm169_vm0, %v1466_v46 }
 0x919   :  { %1942 = vmatmul.msk.f32.gmra.mxu0 %vm169_vm0, %v1467_v47 }
 0x921   :  { %1943 = vmatmul.msk.f32.gmra.mxu0 %vm169_vm0, %v1468_v48 }
 0x968   :  { %v1531_v7 = vpop.permute.xlu0 %1530 }
 0x986   :  { %v1513_v56 = vpop.f32.mrf.mxu0 }
 0x987   :  { %v1514_v57 = vadd.f32 %v1513_v56, %v1483_v55 }
 0x989   :  { %v1525_v58 = vmax.f32 %v1514_v57, 0.0 }
 0x98b   :  { %1944 = vmatmul.msk.f32.vlgmr.msra.gmra.mxu3 %vm313_vm2, %v1525_v58 }
 0x98e   :  { %v1516_v0 = vpop.f32.mrf.mxu0 }
 0x98f   :  { %v1517_v59 = vadd.f32 %v1516_v0, %v1483_v55 }
 0x991   :  { %v1526_v60 = vmax.f32 %v1517_v59, 0.0 }
 0x993   :  { %1945 = vmatmul.msk.f32.gmra.mxu3 %vm313_vm2, %v1526_v60 }
 0x996   :  { %v1519_v61 = vpop.f32.mrf.mxu0 }
 0x997   :  { %v1520_v62 = vadd.f32 %v1519_v61, %v1483_v55 }
 0x999   :  { %v1527_v63 = vmax.f32 %v1520_v62, 0.0 }
 0x99b   :  { %1946 = vmatmul.msk.f32.gmra.mxu3 %vm313_vm2, %v1527_v63 }
 0x99e   :  { %v1522_v2 = vpop.f32.mrf.mxu0 }
 0x99f   :  { %v1523_v4 = vadd.f32 %v1522_v2, %v1483_v55 }
 0x9a1   :  { %v1528_v14 = vmax.f32 %v1523_v4, 0.0 }
 0x9a3   :  { %1947 = vmatmul.msk.f32.gmra.mxu3 %vm313_vm2, %v1528_v14 }
 0xa0e   :  { %v1562_v6 = vpop.f32.mrf.mxu3 }
 0xa0f   :  { %v1563_v16 = vadd.f32 %v1562_v6, %v1531_v7 }
 0xa11   :  { %v1574_v11 = vsel %vm169_vm0, %v1563_v16, 0.0 }
 0xa12   :  { %1575 = vadd.xlane.f32.xlu0 %v1574_v11 }
 0xa16   :  { %v1565_v10 = vpop.f32.mrf.mxu3 }
 0xa17   :  { %v1566_v18 = vadd.f32 %v1565_v10, %v1531_v7 }
 0xa19   :  { %v1577_v19 = vsel %vm169_vm0, %v1566_v18, 0.0 }
 0xa1a   :  { %1578 = vadd.xlane.f32.xlu1 %v1577_v19 }
 0xa1e   :  { %v1568_v15 = vpop.f32.mrf.mxu3 }
 0xa1f   :  { %v1569_v3 = vadd.f32 %v1568_v15, %v1531_v7 }
 0xa21   :  { %v1580_v23 = vsel %vm169_vm0, %v1569_v3, 0.0 }
 0xa22   :  { %1581 = vadd.xlane.f32.xlu1 %v1580_v23 }
 0xa26   :  { %v1571_v26 = vpop.f32.mrf.mxu3  ;;  %1759 = vrot.lane.b32.xlu0 %v2992_v37, %s2274_s15 }
 0xa27   :  { %v1572_v12 = vadd.f32 %v1571_v26, %v1531_v7 }
 0xa29   :  { %v1583_v27 = vsel %vm169_vm0, %v1572_v12, 0.0 }
 0xa2a   :  { %1584 = vadd.xlane.f32.xlu2 %v1583_v27 }
 0xa85   :  { %v1576_v29 = vpop.xlane.xlu0 %1575 }
 0xa86   :  { %v1586_v13 = vmul.f32 %v1576_v29, %v2588_v1 }
 0xa88   :  { %v3051_v31 = vsub.f32 %v1563_v16, %v1586_v13 }
 0xa8a   :  { %v1594_v32 = vmul.f32 %v3051_v31, %v3051_v31 }
 0xa8c   :  { %v1598_v33 = vsel %vm169_vm0, %v1594_v32, 0.0 }
 0xa8d   :  { %v1579_v34 = vpop.xlane.xlu1 %1578  ;;  %1599 = vadd.xlane.f32.xlu2 %v1598_v33 }
 0xa8e   :  { %v1587_v17 = vmul.f32 %v1579_v34, %v2588_v1 }
 0xa90   :  { %v3058_v30 = vsub.f32 %v1566_v18, %v1587_v17 }
 0xa92   :  { %v1595_v38 = vmul.f32 %v3058_v30, %v3058_v30 }
 0xa94   :  { %v1601_v39 = vsel %vm169_vm0, %v1595_v38, 0.0 }
 0xa95   :  { %1602 = vadd.xlane.f32.xlu1 %v1601_v39  ;;  %v1582_v40 = vpop.xlane.xlu1 %1581 }
 0xa96   :  { %v1588_v41 = vmul.f32 %v1582_v40, %v2588_v1 }
 0xa98   :  { %v3064_v8 = vsub.f32 %v1569_v3, %v1588_v41 }
 0xa9a   :  { %v1596_v9 = vmul.f32 %v3064_v8, %v3064_v8 }
 0xa9c   :  { %v1604_v42 = vsel %vm169_vm0, %v1596_v9, 0.0 }
 0xa9d   :  { %v1585_v25 = vpop.xlane.xlu2 %1584  ;;  %1605 = vadd.xlane.f32.xlu2 %v1604_v42 }
 0xa9e   :  { %v1589_v37 = vmul.f32 %v1585_v25, %v2588_v1 }
 0xaa0   :  { %v3070_v28 = vsub.f32 %v1572_v12, %v1589_v37 }
 0xaa2   :  { %v1597_v43 = vmul.f32 %v3070_v28, %v3070_v28 }
 0xaa4   :  { %v1607_v20 = vsel %vm169_vm0, %v1597_v43, 0.0 }
 0xaa5   :  { %1608 = vadd.xlane.f32.xlu1 %v1607_v20 }
 0xab5   :  { %1668 = vrot.lane.b32.xlu2 %v3076_v21, %s2270_s21 }
 0xabd   :  { %1757 = vrot.lane.b32.xlu2 %v2989_v35, %s2274_s15 }
 0xabe   :  { %1734 = vrot.lane.b32.xlu1 %v3082_v24, %s2270_s21  ;;  %s2255_s21 = smov 0  }
 0xb00   :  { %v1600_v44 = vpop.xlane.xlu2 %1599 }
 0xb01   :  { %v1610_v46 = vmul.f32 %v1600_v44, %v2588_v1 }
 0xb03   :  { %v1614_v47 = vadd.f32 1e-05, %v1610_v46 }
 0xb05   :  { %2038 = vrsqrt.f32 %v1614_v47  ;;  %vm1624_vm15 = vweird.f32 %v1614_v47 }
 0xb08   :  { %v1603_v48 = vpop.xlane.xlu1 %1602 }
 0xb09   :  { %v1611_v22 = vmul.f32 %v1603_v48, %v2588_v1 }
 0xb0b   :  { %v2039_v49 = vpop.eup %2038  ;;  %v1615_v53 = vadd.f32 1e-05, %v1611_v22 }
 0xb0c   :  { %v1619_v54 = vmul.f32 %v2039_v49, %v1614_v47  ;;  %vm1625_vm2 = vweird.f32 %v2039_v49 }
 0xb0d   :  { %2040 = vrsqrt.f32 %v1615_v53  ;;  %vm1634_vm13 = vweird.f32 %v1615_v53  ;;  %vm1626_vm3 = vmor %vm1624_vm15, %vm1625_vm2 }
 0xb0e   :  { %v1620_v56 = vmul.f32 %v2039_v49, %v1619_v54 }
 0xb10   :  { %v1606_v55 = vpop.xlane.xlu2 %1605  ;;  %v1621_v59 = vmul.f32 0.5, %v1620_v56 }
 0xb11   :  { %v1612_v35 = vmul.f32 %v1606_v55, %v2588_v1 }
 0xb12   :  { %v1622_v2 = vsub.f32 1.5, %v1621_v59 }
 0xb13   :  { %v2041_v57 = vpop.eup %2040  ;;  %v1616_v58 = vadd.f32 1e-05, %v1612_v35 }
 0xb14   :  { %v1629_v0 = vmul.f32 %v2041_v57, %v1615_v53  ;;  %vm1635_vm1 = vweird.f32 %v2041_v57  ;;  %v1623_v11 = vmul.f32 %v2039_v49, %v1622_v2 }
 0xb15   :  { %2042 = vrsqrt.f32 %v1616_v58  ;;  %vm1636_vm14 = vmor %vm1634_vm13, %vm1635_vm1  ;;  %vm1644_vm5 = vweird.f32 %v1616_v58 }
 0xb16   :  { %v1630_v60 = vmul.f32 %v2041_v57, %v1629_v0  ;;  %v1627_v15 = vsel %vm1626_vm3, %v2039_v49, %v1623_v11 }
 0xb17   :  { %v1658_v29 = vmul.f32 %v1627_v15, %v3051_v31 }
 0xb18   :  { %v1631_v61 = vmul.f32 0.5, %v1630_v60  ;;  %v1609_v62 = vpop.xlane.xlu1 %1608 }
 0xb19   :  { %v1613_v63 = vmul.f32 %v1609_v62, %v2588_v1  ;;  %v1663_v38 = vmul.f32 %v3076_v21, %v1658_v29 }
 0xb1a   :  { %v1632_v4 = vsub.f32 1.5, %v1631_v61 }
 0xb1b   :  { %v2043_v14 = vpop.eup %2042  ;;  %v1617_v7 = vadd.f32 1e-05, %v1613_v63 }
 0xb1c   :  { %v1633_v6 = vmul.f32 %v2041_v57, %v1632_v4  ;;  %v1639_v16 = vmul.f32 %v2043_v14, %v1616_v58  ;;  %vm1645_vm4 = vweird.f32 %v2043_v14 }
 0xb1d   :  { %2044 = vrsqrt.f32 %v1617_v7  ;;  %vm1646_vm6 = vmor %vm1644_vm5, %vm1645_vm4  ;;  %vm1654_vm8 = vweird.f32 %v1617_v7 }
 0xb1e   :  { %v1640_v10 = vmul.f32 %v2043_v14, %v1639_v16  ;;  %v1637_v18 = vsel %vm1636_vm14, %v2041_v57, %v1633_v6 }
 0xb1f   :  { %v1659_v26 = vmul.f32 %v1637_v18, %v3058_v30  ;;  %v1669_v30 = vpop.permute.xlu2 %1668 }
 0xb20   :  { %v1641_v19 = vmul.f32 0.5, %v1640_v10  ;;  %v1671_v42 = vadd.f32 %v1669_v30, %v1663_v38 }
 0xb21   :  { %v1664_v34 = vmul.f32 %v3076_v21, %v1659_v26 }
 0xb22   :  { %v1642_v3 = vsub.f32 1.5, %v1641_v19  ;;  %v1675_v20 = vsel %vm169_vm0, %v1671_v42, 0.0 }
 0xb23   :  { %v2045_v23 = vpop.eup %2044  ;;  %v1672_v41 = vadd.f32 %v1669_v30, %v1664_v34 }
 0xb24   :  { %v1643_v12 = vmul.f32 %v2043_v14, %v1642_v3  ;;  %v1649_v27 = vmul.f32 %v2045_v23, %v1617_v7  ;;  %vm1655_vm7 = vweird.f32 %v2045_v23 }
 0xb25   :  { %vm1656_vm9 = vmor %vm1654_vm8, %vm1655_vm7 }
 0xb26   :  { %v1647_v13 = vsel %vm1646_vm6, %v2043_v14, %v1643_v12  ;;  %v1650_v32 = vmul.f32 %v2045_v23, %v1649_v27 }
 0xb27   :  { %v1660_v33 = vmul.f32 %v1647_v13, %v3064_v8  ;;  %v1676_v8 = vsel %vm169_vm0, %v1672_v41, 0.0  ;;  %v1758_v29 = vpop.permute.xlu2 %1757  ;;  %v1760_v13 = vpop.permute.xlu0 %1759 }
 0xb28   :  { %v1651_v17 = vmul.f32 0.5, %v1650_v32  ;;  %v1677_v46 = vadd.f32 %v1676_v8, %v1675_v20  ;;  %1764 = vst.msk [vmem:[#allocation9] sm:$0xff] %vm1763_vm10, %v1758_v29  ;;  %v2275_v32 = vmov 0.0  }
 0xb29   :  { %v1665_v39 = vmul.f32 %v3076_v21, %v1660_v33  ;;  %1765 = vst.msk [vmem:[#allocation9 + $0x8] sm:$0xff] %vm1763_vm10, %v1760_v13 }
 0xb2a   :  { %v1652_v40 = vsub.f32 1.5, %v1651_v17  ;;  %1767 = vst.msk [vmem:[#allocation25] sm:$0x3] %vm1766_vm11, %v2275_v32 }
 0xb2b   :  { %v1673_v31 = vadd.f32 %v1669_v30, %v1665_v39 }
 0xb2c   :  { %v1653_v9 = vmul.f32 %v2045_v23, %v1652_v40 }
 0xb2d   :  { %v1678_v44 = vsel %vm169_vm0, %v1673_v31, 0.0 }
 0xb2e   :  { %v1657_v25 = vsel %vm1656_vm9, %v2045_v23, %v1653_v9  ;;  %v1679_v48 = vadd.f32 %v1678_v44, %v1677_v46 }
 0xb2f   :  { %v1661_v37 = vmul.f32 %v1657_v25, %v3070_v28 }
 0xb31   :  { %v1666_v43 = vmul.f32 %v3076_v21, %v1661_v37 }
 0xb33   :  { %v1674_v47 = vadd.f32 %v1669_v30, %v1666_v43 }
 0xb35   :  { %v1680_v22 = vsel %vm169_vm0, %v1674_v47, 0.0 }
 0xb36   :  { %v1681_v49 = vadd.f32 %v1680_v22, %v1679_v48 }
 0xb38   :  { %v1682_v53 = vrot.slane %v1681_v49, 4 }
 0xb3a   :  { %v1683_v54 = vadd.f32 %v1682_v53, %v1681_v49 }
 0xb3c   :  { %v1684_v55 = vrot.slane %v1683_v54, 2 }
 0xb3e   :  { %v1685_v35 = vadd.f32 %v1684_v55, %v1683_v54 }
 0xb40   :  { %v1686_v56 = vrot.slane %v1685_v35, 1 }
 0xb42   :  { %v1687_v28 = vadd.f32 %v1686_v56, %v1685_v35 }
 0xb44   :  { %v1688_v57 = vmul.f32 %v1687_v28, %v2588_v1 }
 0xb46   :  { %v1689_v21 = vmul.f32 %v1688_v57, %v2757_v5 }
 0xb48   :  { %v1690_v58 = vperm.slane %v1689_v21, 1 }
 0xb4a   :  { %v1691_v0 = vsub.f32 %v1671_v42, %v1690_v58  ;;  %v1692_v59 = vsub.f32 %v1672_v41, %v1690_v58  ;;  %v1693_v60 = vsub.f32 %v1673_v31, %v1690_v58  ;;  %v1694_v61 = vsub.f32 %v1674_v47, %v1690_v58  ;;  %v1735_v31 = vpop.permute.xlu1 %1734 }
 0xb4c   :  { %v1695_v62 = vmul.f32 %v1691_v0, %v1691_v0  ;;  %v1696_v63 = vmul.f32 %v1692_v59, %v1692_v59  ;;  %v1697_v2 = vmul.f32 %v1693_v60, %v1693_v60  ;;  %v1698_v4 = vmul.f32 %v1694_v61, %v1694_v61 }
 0xb4e   :  { %v1699_v14 = vsel %vm169_vm0, %v1695_v62, 0.0  ;;  %v1700_v7 = vsel %vm169_vm0, %v1696_v63, 0.0  ;;  %v1702_v16 = vsel %vm169_vm0, %v1697_v2, 0.0  ;;  %v1704_v10 = vsel %vm169_vm0, %v1698_v4, 0.0 }
 0xb4f   :  { %v1701_v6 = vadd.f32 %v1700_v7, %v1699_v14 }
 0xb51   :  { %v1703_v11 = vadd.f32 %v1702_v16, %v1701_v6 }
 0xb53   :  { %v1705_v5 = vadd.f32 %v1704_v10, %v1703_v11 }
 0xb55   :  { %v1706_v18 = vrot.slane %v1705_v5, 4 }
 0xb57   :  { %v1707_v19 = vadd.f32 %v1706_v18, %v1705_v5 }
 0xb59   :  { %v1708_v15 = vrot.slane %v1707_v19, 2 }
 0xb5b   :  { %v1709_v3 = vadd.f32 %v1708_v15, %v1707_v19 }
 0xb5d   :  { %v1710_v23 = vrot.slane %v1709_v3, 1 }
 0xb5f   :  { %v1711_v26 = vadd.f32 %v1710_v23, %v1709_v3 }
 0xb61   :  { %v1712_v12 = vmul.f32 %v1711_v26, %v2588_v1 }
 0xb63   :  { %v1713_v27 = vadd.f32 1e-05, %v1712_v12 }
 0xb65   :  { %2046 = vrsqrt.f32 %v1713_v27  ;;  %vm1720_vm1 = vweird.f32 %v1713_v27 }
 0xb6b   :  { %v2047_v33 = vpop.eup %2046 }
 0xb6c   :  { %v1715_v34 = vmul.f32 %v2047_v33, %v1713_v27  ;;  %vm1721_vm12 = vweird.f32 %v2047_v33 }
 0xb6d   :  { %vm1722_vm2 = vmor %vm1720_vm1, %vm1721_vm12 }
 0xb6e   :  { %v1716_v17 = vmul.f32 %v2047_v33, %v1715_v34 }
 0xb70   :  { %v1717_v38 = vmul.f32 0.5, %v1716_v17 }
 0xb72   :  { %v1718_v39 = vsub.f32 1.5, %v1717_v38 }
 0xb74   :  { %v1719_v40 = vmul.f32 %v2047_v33, %v1718_v39 }
 0xb76   :  { %v1723_v1 = vsel %vm1722_vm2, %v2047_v33, %v1719_v40 }
 0xb77   :  { %v1724_v30 = vmul.f32 %v1723_v1, %v1691_v0  ;;  %v1725_v41 = vmul.f32 %v1723_v1, %v1692_v59  ;;  %v1726_v9 = vmul.f32 %v1723_v1, %v1693_v60  ;;  %v1727_v42 = vmul.f32 %v1723_v1, %v1694_v61 }
 0xb79   :  { %v1729_v25 = vmul.f32 %v3082_v24, %v1724_v30  ;;  %v1730_v37 = vmul.f32 %v3082_v24, %v1725_v41  ;;  %v1731_v8 = vmul.f32 %v3082_v24, %v1726_v9  ;;  %v1732_v43 = vmul.f32 %v3082_v24, %v1727_v42 }
 0xb7b   :  { %v1737_v20 = vadd.f32 %v1735_v31, %v1729_v25  ;;  %v1738_v44 = vadd.f32 %v1735_v31, %v1730_v37  ;;  %v1739_v46 = vadd.f32 %v1735_v31, %v1731_v8  ;;  %v1740_v47 = vadd.f32 %v1735_v31, %v1732_v43 }
 0xb7d   :  { %v1741_v48 = vmax.f32 %v1737_v20, 0.0  ;;  %v1742_v22 = vmax.f32 %v1738_v44, 0.0  ;;  %v1743_v49 = vmax.f32 %v1739_v46, 0.0  ;;  %v1744_v53 = vmax.f32 %v1740_v47, 0.0 }
 0xb7f   :  { %v1745_v54 = vadd.f32 %v1741_v48, %v2896_v50  ;;  %v1746_v55 = vadd.f32 %v1742_v22, %v2898_v51  ;;  %v1747_v35 = vadd.f32 %v1743_v49, %v2900_v52  ;;  %v1748_v56 = vadd.f32 %v1744_v53, %v2903_v45 }
 0xb81   :  { %1751 = vst.msk [vmem:[#allocation3] sm:$0xff] %vm169_vm0, %v1745_v54 }
 0xb82   :  { %1752 = vst.msk [vmem:[#allocation3 + $0x8] sm:$0xff] %vm169_vm0, %v1746_v55 }
 0xb83   :  { %1753 = vst.msk [vmem:[#allocation3 + $0x10] sm:$0xff] %vm169_vm0, %v1747_v35 }
 0xb84   :  { %1754 = vst.msk [vmem:[#allocation3 + $0x18] sm:$0xff] %vm169_vm0, %v1748_v56 }
 0xb85 LB: > { %s1774_s17 = sld [smem:[#allocation20 + %s2257_s21]]  ;;  %s1777_s12 = scalar_lea.vmem [#allocation9], %s2257_s21  ;;  %vm1780_vm13 = vcmask 778240   ;;  %s2257_s21 = sphi %s2255_s21, %s1773_s21  }
 0xb86   : > { %v1778_v50 = vld [vmem:[%s1777_s12] sm:$0x1]  ;;  %s1773_s21 = sadd.s32 1, %s2257_s21  }
 0xb87   : > { %p1770_p4 = scmp.ge.s32.totalorder %s1773_s21, 16  }
 0xb88   :  { %2048 = vset.pattern.permute.xlu0 (%p1770_p4), %v2269_v36  ;;  %s3157_s0 = sld [smem:[#allocation36_spill]] (%p1770_p4)  ;;  %s2276_s19 = smov (%p1770_p4), [#allocation25]  }
 0xb89   :  { %s1796_s10 = sshll.u32 (%p1770_p4), %s2276_s19, 4  ;;  %s3158_s2 = sld [smem:[#allocation37_spill]] (%p1770_p4)  ;;  %s1797_s10 = int_to_ptr.vmem [resolvable:$true] %s1796_s10 }
 0xb8b   : > { %s1775_s18 = scalar_lea.vmem [#allocation25], %s1774_s17  ;;  %1772 = sbr.rel (!%p1770_p4) target bundleno = 2949 (0xb85), region = 226 }
 0xb8c   : > { %v1776_v51 = vld [vmem:[%s1775_s18] sm:$0x1] }
 0xb8d   : > { %v1779_v52 = vadd.f32 %v1778_v50, %v1776_v51 }
 0xb8e   :  { %v1783_v45 = vld [vmem:[%s3157_s0] sm:$0x3] (%p1770_p4) }
 0xb8f   : > { %1781 = vst.msk [vmem:[%s1775_s18] sm:$0x1] %vm1780_vm13, %v1779_v52  ;;  %1786 = vperm.xlu0 (%p1770_p4), %2048, %v1783_v45   ;;  %s1798_s8 = sshll.u32 (%p1770_p4), %s3158_s2, 4  ;;  %s1799_s8 = int_to_ptr.hbm [resolvable:$true] %s1798_s8 }
 0xb96   :  { %v1782_v24 = vld [vmem:[#allocation25] sm:$0x3] }
 0xc01   :  { %v1787_v28 = vpop.permute.xlu0 %1786 }
 0xc02   :  { %v1789_v57 = vmul.f32 %v1787_v28, %v1782_v24 }
 0xc04   :  { %1790 = vst.msk [vmem:[#allocation25] sm:$0x3] %vm1766_vm11, %v1789_v57 }
 0xc05   :  { %1801 = dma.vmem_to_hbm [thread:$0]  %s1797_s10, 32, %s1799_s8, [#allocation12]  }
 0xc06   :  { %2237 = dma.done.wait [#allocation12], 32  }
 0xc07   :  { %2238 = vsyncadd [#allocation12], 4294967264 }
 0xc08   :  { %1806 = vsyncpa [#allocation11], 1 }
 0xc09   :  { %1807 = vsyncpa [#allocation23], 1 }
 0xc0a   :  { %1808 = vsyncpa [#allocation12], 1 }
 0xc0b   :  { %1809 = vsyncpa [#allocation13], 1 }
 0xc0c   :  { %1810 = vsyncpa [#allocation19], 1 }
 0xc0d   :  { %1811 = vsyncpa [#allocation14], 1 }
 0xc0e   :  { %1812 = vsyncpa [#allocation16], 1 }

</bundles_post_ra>
